<compile_context>
chip_gen: v5e
topology: v5e:2x2
jax: 0.10.0
libtpu: 0.0.40
codegen_flags: <defaults>
</compile_context>

<pallas_src>
import functools

import jax
import jax.numpy as jnp
from jax.experimental import pallas as pl
from jax.experimental.pallas import tpu as pltpu

NEG_SLOPE = 0.01        # F.leaky_relu default negative_slope
C1 = 16                 # dense canvas (input/conv1/conv2) is 16 x 16
R1 = C1 * C1            # 256 rows / sample on the dense canvas
C2 = 8                  # compact canvas (pool/conv3/conv4) is 8 x 8
R2 = C2 * C2            # 64 rows / sample on the compact canvas
CHUNK = 256             # rows per MXU matmul on the dense canvas

SHIFTS_DENSE = (0, 1, 16, 17)    # 2x2 taps, dense canvas row = 16h + w
SHIFTS_COMPACT = (0, 1, 8, 9)    # 2x2 taps, compact canvas row = 8h + w


# ------------------------------ kernel helpers ------------------------------ #

def _leaky(x):
    return jnp.where(x >= 0.0, x, NEG_SLOPE * x)


def _conv_mxu(src_ref, dst_ref, w_ref, b_ref, *, rows, chunk, shifts, ic, oc):
    """2x2 conv = 4 contiguous row-shifted reads + MXU matmuls (f32 acc)."""
    # Loop-invariant loads / broadcasts hoisted out of the chunk loop.
    bias = jnp.broadcast_to(b_ref[...], (chunk, oc))
    wk = [w_ref[pl.ds(t * ic, ic), :] for t in range(4)]          # (ic, oc) each
    for base in range(0, rows, chunk):
        acc = jnp.zeros((chunk, oc), jnp.float32)
        for t, s in enumerate(shifts):
            a = src_ref[pl.ds(base + s, chunk), :]                # (chunk, ic)
            acc = acc + jnp.dot(a, wk[t], preferred_element_type=jnp.float32)
        dst_ref[pl.ds(base, chunk), :] = _leaky(acc + bias)


def _fused_kernel(x_ref, w1_ref, b1_ref, w2_ref, b2_ref, w3_ref, b3_ref,
                  w4_ref, b4_ref, wd_ref, b5_ref, o_ref,
                  s1, s2, sp, s3, s4, *, batch):
    rows1 = batch * R1
    rows2 = batch * R2

    # Zero only the scratch tail rows that shifted taps may read for discarded
    # out-of-range output positions, so every read touches finite data.
    s1[pl.ds(rows1, 32), :] = jnp.zeros((32, s1.shape[1]), jnp.float32)
    sp[pl.ds(rows2, 16), :] = jnp.zeros((16, sp.shape[1]), jnp.float32)
    s3[pl.ds(rows2, 16), :] = jnp.zeros((16, s3.shape[1]), jnp.float32)

    # conv1: taps pre-gathered on the host (im2col-lite) -> one K=8 matmul/chunk.
    b1 = jnp.broadcast_to(b1_ref[...], (CHUNK, 32))
    w1 = w1_ref[...]                                              # (8, 32)
    for base in range(0, rows1, CHUNK):
        a = x_ref[pl.ds(base, CHUNK), :]                          # (CHUNK, 8)
        y = jnp.dot(a, w1, preferred_element_type=jnp.float32)
        s1[pl.ds(base, CHUNK), :] = _leaky(y + b1)

    # conv2: 32 -> 64 on the dense canvas (MXU).
    _conv_mxu(s1, s2, w2_ref, b2_ref, rows=rows1, chunk=CHUNK,
              shifts=SHIFTS_DENSE, ic=32, oc=64)

    # 2x2/stride-2 max-pool, compacted onto the dense 8x8 canvas via
    # sublane-strided reads of the conv2 canvas:
    #   pool(n, ph, pw) = max over taps of s2[256n + 32ph + 16dh + dw + 2pw].
    for n in range(batch):
        for ph in range(C2):
            src = n * R1 + 32 * ph
            q = s2[pl.ds(src + 0, C2, stride=2), :]
            q = jnp.maximum(q, s2[pl.ds(src + 1, C2, stride=2), :])
            q = jnp.maximum(q, s2[pl.ds(src + 16, C2, stride=2), :])
            q = jnp.maximum(q, s2[pl.ds(src + 17, C2, stride=2), :])
            sp[pl.ds(n * R2 + C2 * ph, C2), :] = q

    # conv3 (64->128) and conv4 (128->128) on the compact canvas: one chunk each.
    _conv_mxu(sp, s3, w3_ref, b3_ref, rows=rows2, chunk=rows2,
              shifts=SHIFTS_COMPACT, ic=64, oc=128)
    _conv_mxu(s3, s4, w4_ref, b4_ref, rows=rows2, chunk=rows2,
              shifts=SHIFTS_COMPACT, ic=128, oc=128)

    # dense1: Linear(3200 -> 2) as one (64,128) VPU multiply + one lane+sublane
    # reduction per (n, j) against the compact-canvas-packed dense weight
    # (zeros at non-valid canvas positions -> garbage rows contribute 0).
    b5 = b5_ref[...]                                              # (1, 2)
    wdj = [wd_ref[pl.ds(j * R2, R2), :] for j in range(2)]        # (64, 128) each
    for n in range(batch):
        a = s4[pl.ds(n * R2, R2), :]                              # (64, 128)
        for j in range(2):
            v = jnp.sum(jnp.sum(a * wdj[j], axis=1, keepdims=True),
                        axis=0, keepdims=True)                    # (1, 1)
            o_ref[n:n + 1, j:j + 1] = v + b5[0:1, j:j + 1]


# ------------------------------ pallas_call wrapper ------------------------- #

def _pallas_forward(x_taps, p, batch):
    rows1 = batch * R1
    rows2 = batch * R2
    kernel = functools.partial(_fused_kernel, batch=batch)
    vmem = pl.BlockSpec(memory_space=pltpu.MemorySpace.VMEM)
    return pl.pallas_call(
        kernel,
        out_shape=jax.ShapeDtypeStruct((batch, 2), jnp.float32),
        in_specs=[vmem] * 11,
        out_specs=vmem,
        scratch_shapes=[
            pltpu.VMEM((rows1 + 32, 32), jnp.float32),     # conv1 activations
            pltpu.VMEM((rows1, 64), jnp.float32),          # conv2 activations
            pltpu.VMEM((rows2 + 16, 64), jnp.float32),     # pooled (compact canvas)
            pltpu.VMEM((rows2 + 16, 128), jnp.float32),    # conv3 activations
            pltpu.VMEM((rows2, 128), jnp.float32),         # conv4 activations
        ],
    )(x_taps, p['w1'], p['b1'], p['w2'], p['b2'], p['w3'], p['b3'],
      p['w4'], p['b4'], p['wd'], p['b5'])


@jax.jit
def model2_forward(x_nchw, packed):
    n = x_nchw.shape[0]
    # Only per-call XLA work: tiny NCHW -> padded, tap-gathered flat canvas.
    x = jnp.transpose(x_nchw, (0, 2, 3, 1))                   # (N, 14, 14, 2)
    x = jnp.pad(x, ((0, 0), (1, 2), (1, 2), (0, 0)))          # 17x17 zero frame
    taps = [x[:, kh:kh + C1, kw:kw + C1, :]                   # 4 shifted windows
            for kh in (0, 1) for kw in (0, 1)]
    xt = jnp.concatenate(taps, axis=-1)                       # (N, 16, 16, 8)
    xt = xt.reshape(n * R1, 8)                                # flat canvas rows
    return _pallas_forward(xt, packed, n)


# ------------------------------ params ------------------------------------- #

def init_params(key):
    """PyTorch-layout parameters with nn.Conv2d/nn.Linear default init."""
    ks = jax.random.split(key, 10)

    def conv_init(kw, kb, oc, ic, kh, kww):
        fan_in = ic * kh * kww
        bound = 1.0 / jnp.sqrt(float(fan_in))
        w = jax.random.uniform(kw, (oc, ic, kh, kww), jnp.float32, -bound, bound)
        b = jax.random.uniform(kb, (oc,), jnp.float32, -bound, bound)
        return w, b

    w1, b1 = conv_init(ks[0], ks[1], 32, 2, 2, 2)
    w2, b2 = conv_init(ks[2], ks[3], 64, 32, 2, 2)
    w3, b3 = conv_init(ks[4], ks[5], 128, 64, 2, 2)
    w4, b4 = conv_init(ks[6], ks[7], 128, 128, 2, 2)
    bound = 1.0 / jnp.sqrt(3200.0)
    w5 = jax.random.uniform(ks[8], (2, 3200), jnp.float32, -bound, bound)
    b5 = jax.random.uniform(ks[9], (2,), jnp.float32, -bound, bound)
    return dict(w1=w1, b1=b1, w2=w2, b2=b2, w3=w3, b3=b3,
                w4=w4, b4=b4, w5=w5, b5=b5)


def pack_params(p):
    """One-time re-layout of the PyTorch weights into the kernel's layout."""
    def cpack(w):   # (OC, IC, 2, 2) -> (4*IC, OC); row order = (kh, kw, ic)
        return jnp.transpose(w, (2, 3, 1, 0)).reshape(-1, w.shape[0])

    # Dense weight scattered onto the COMPACT 8x8 conv4 canvas: row j*64+8h+w,
    # lane c holds W5[j, c*25 + 5h + w] for h,w < 5; zeros everywhere else so
    # garbage canvas positions contribute exactly 0.
    w5 = p['w5'].reshape(2, 128, 5, 5)                  # (j, c, h, w)
    w5 = jnp.transpose(w5, (0, 2, 3, 1))                # (j, h, w, c)
    canvas = jnp.zeros((2, C2, C2, 128), jnp.float32)
    canvas = canvas.at[:, :5, :5, :].set(w5)
    wd = canvas.reshape(2 * R2, 128)

    return dict(
        w1=cpack(p['w1']), b1=p['b1'].reshape(1, -1),
        w2=cpack(p['w2']), b2=p['b2'].reshape(1, -1),
        w3=cpack(p['w3']), b3=p['b3'].reshape(1, -1),
        w4=cpack(p['w4']), b4=p['b4'].reshape(1, -1),
        wd=wd, b5=p['b5'].reshape(1, -1))


# ------------------------------ pure-JAX reference -------------------------- #

def _reference_forward(x, p):
    def conv(h, w, b, pad):
        out = jax.lax.conv_general_dilated(
            h, w, window_strides=(1, 1), padding=[(pad, pad), (pad, pad)],
            dimension_numbers=('NCHW', 'OIHW', 'NCHW'))
        out = out + b[None, :, None, None]
        return jnp.where(out >= 0.0, out, NEG_SLOPE * out)

    h = conv(x, p['w1'], p['b1'], 1)
    h = conv(h, p['w2'], p['b2'], 0)
    h = jax.lax.reduce_window(h, -jnp.inf, jax.lax.max,
                              (1, 1, 2, 2), (1, 1, 2, 2), 'VALID')
    h = conv(h, p['w3'], p['b3'], 0)
    h = conv(h, p['w4'], p['b4'], 0)
    h = h.reshape(h.shape[0], -1)                       # torch.flatten(x, 1)
    return h @ p['w5'].T + p['b5']


if __name__ == "__main__":
    key = jax.random.PRNGKey(0)
    k_x, k_p = jax.random.split(key)
    # dense1 expects 3200 = 128*5*5  ->  input is (N, 2, 14, 14) NCHW.
    x = jax.random.normal(k_x, (2, 2, 14, 14), dtype=jnp.float32)
    params = init_params(k_p)
    packed = pack_params(params)

    out = jax.block_until_ready(model2_forward(x, packed))
    assert out.shape == (2, 2), out.shape

    ref = jax.block_until_ready(_reference_forward(x, params))
    max_err = float(jnp.max(jnp.abs(out - ref)))
    assert max_err < 2e-3, f"mismatch vs reference: max abs err {max_err}"

    print("KERNEL_OK")
</pallas_src>

<mosaic_0001>
module attributes {stable_mosaic.version = 11 : i64} {
  func.func @_fused_kernel(%arg0: memref<512x8xf32, #tpu.memory_space<vmem>>, %arg1: memref<8x32xf32, #tpu.memory_space<vmem>>, %arg2: memref<1x32xf32, #tpu.memory_space<vmem>>, %arg3: memref<128x64xf32, #tpu.memory_space<vmem>>, %arg4: memref<1x64xf32, #tpu.memory_space<vmem>>, %arg5: memref<256x128xf32, #tpu.memory_space<vmem>>, %arg6: memref<1x128xf32, #tpu.memory_space<vmem>>, %arg7: memref<512x128xf32, #tpu.memory_space<vmem>>, %arg8: memref<1x128xf32, #tpu.memory_space<vmem>>, %arg9: memref<128x128xf32, #tpu.memory_space<vmem>>, %arg10: memref<1x2xf32, #tpu.memory_space<vmem>>, %arg11: memref<2x2xf32, #tpu.memory_space<vmem>>, %arg12: memref<544x32xf32, #tpu.memory_space<vmem>>, %arg13: memref<512x64xf32, #tpu.memory_space<vmem>>, %arg14: memref<144x64xf32, #tpu.memory_space<vmem>>, %arg15: memref<144x128xf32, #tpu.memory_space<vmem>>, %arg16: memref<128x128xf32, #tpu.memory_space<vmem>>) attributes {dimension_semantics = [], scalar_prefetch = 0 : i64, scratch_operands = 5 : i64, tpu.core_type = #tpu.core_type<tc>} {
    %cst = arith.constant 0.000000e+00 : f32
    %0 = vector.broadcast %cst : f32 to vector<32x32xf32>
    %c512 = arith.constant 512 : index
    %c0 = arith.constant 0 : index
    %1 = vector.load %arg12[%c512, %c0] : memref<544x32xf32, #tpu.memory_space<vmem>>, vector<32x32xf32>
    tpu.vector_store %arg12[%c512, %c0], %0 {strides = array<i32>} : memref<544x32xf32, #tpu.memory_space<vmem>>, vector<32x32xf32>,
    %cst_0 = arith.constant 0.000000e+00 : f32
    %2 = vector.broadcast %cst_0 : f32 to vector<16x64xf32>
    %c128 = arith.constant 128 : index
    %c0_1 = arith.constant 0 : index
    %3 = vector.load %arg14[%c128, %c0_1] : memref<144x64xf32, #tpu.memory_space<vmem>>, vector<16x64xf32>
    tpu.vector_store %arg14[%c128, %c0_1], %2 {strides = array<i32>} : memref<144x64xf32, #tpu.memory_space<vmem>>, vector<16x64xf32>,
    %cst_2 = arith.constant 0.000000e+00 : f32
    %4 = vector.broadcast %cst_2 : f32 to vector<16x128xf32>
    %c128_3 = arith.constant 128 : index
    %c0_4 = arith.constant 0 : index
    %5 = vector.load %arg15[%c128_3, %c0_4] : memref<144x128xf32, #tpu.memory_space<vmem>>, vector<16x128xf32>
    tpu.vector_store %arg15[%c128_3, %c0_4], %4 {strides = array<i32>} : memref<144x128xf32, #tpu.memory_space<vmem>>, vector<16x128xf32>,
    %c0_5 = arith.constant 0 : index
    %c0_6 = arith.constant 0 : index
    %6 = vector.load %arg2[%c0_5, %c0_6] : memref<1x32xf32, #tpu.memory_space<vmem>>, vector<1x32xf32>
    %7 = vector.shape_cast %6 : vector<1x32xf32> to vector<1x32xf32>
    %8 = vector.broadcast %7 : vector<1x32xf32> to vector<256x32xf32>
    %c0_7 = arith.constant 0 : index
    %c0_8 = arith.constant 0 : index
    %9 = vector.load %arg1[%c0_7, %c0_8] : memref<8x32xf32, #tpu.memory_space<vmem>>, vector<8x32xf32>
    %c0_9 = arith.constant 0 : index
    %c0_10 = arith.constant 0 : index
    %10 = vector.load %arg0[%c0_9, %c0_10] : memref<512x8xf32, #tpu.memory_space<vmem>>, vector<256x8xf32>
    %cst_11 = arith.constant dense<0.000000e+00> : vector<256x32xf32>
    %11 = tpu.matmul %10, %9, %cst_11 {dimension_numbers = #tpu.dot_dimension_numbers<[1], [0], [0], [1], [0, 0, 1, 1], [], []>} : vector<256x8xf32>, vector<8x32xf32>, vector<256x32xf32> -> vector<256x32xf32>
    %12 = arith.addf %11, %8 : vector<256x32xf32>
    %cst_12 = arith.constant 0.000000e+00 : f32
    %13 = vector.broadcast %cst_12 : f32 to vector<256x32xf32>
    %14 = arith.cmpf oge, %12, %13 : vector<256x32xf32>
    %cst_13 = arith.constant 0.00999999977 : f32
    %15 = vector.broadcast %cst_13 : f32 to vector<256x32xf32>
    %16 = arith.mulf %15, %12 : vector<256x32xf32>
    %17 = arith.select %14, %12, %16 : vector<256x32xi1>, vector<256x32xf32>
    %c0_14 = arith.constant 0 : index
    %c0_15 = arith.constant 0 : index
    %18 = vector.load %arg12[%c0_14, %c0_15] : memref<544x32xf32, #tpu.memory_space<vmem>>, vector<256x32xf32>
    tpu.vector_store %arg12[%c0_14, %c0_15], %17 {strides = array<i32>} : memref<544x32xf32, #tpu.memory_space<vmem>>, vector<256x32xf32>,
    %c256 = arith.constant 256 : index
    %c0_16 = arith.constant 0 : index
    %19 = vector.load %arg0[%c256, %c0_16] : memref<512x8xf32, #tpu.memory_space<vmem>>, vector<256x8xf32>
    %cst_17 = arith.constant dense<0.000000e+00> : vector<256x32xf32>
    %20 = tpu.matmul %19, %9, %cst_17 {dimension_numbers = #tpu.dot_dimension_numbers<[1], [0], [0], [1], [0, 0, 1, 1], [], []>} : vector<256x8xf32>, vector<8x32xf32>, vector<256x32xf32> -> vector<256x32xf32>
    %21 = arith.addf %20, %8 : vector<256x32xf32>
    %cst_18 = arith.constant 0.000000e+00 : f32
    %22 = vector.broadcast %cst_18 : f32 to vector<256x32xf32>
    %23 = arith.cmpf oge, %21, %22 : vector<256x32xf32>
    %cst_19 = arith.constant 0.00999999977 : f32
    %24 = vector.broadcast %cst_19 : f32 to vector<256x32xf32>
    %25 = arith.mulf %24, %21 : vector<256x32xf32>
    %26 = arith.select %23, %21, %25 : vector<256x32xi1>, vector<256x32xf32>
    %c256_20 = arith.constant 256 : index
    %c0_21 = arith.constant 0 : index
    %27 = vector.load %arg12[%c256_20, %c0_21] : memref<544x32xf32, #tpu.memory_space<vmem>>, vector<256x32xf32>
    tpu.vector_store %arg12[%c256_20, %c0_21], %26 {strides = array<i32>} : memref<544x32xf32, #tpu.memory_space<vmem>>, vector<256x32xf32>,
    %c0_22 = arith.constant 0 : index
    %c0_23 = arith.constant 0 : index
    %28 = vector.load %arg4[%c0_22, %c0_23] : memref<1x64xf32, #tpu.memory_space<vmem>>, vector<1x64xf32>
    %29 = vector.shape_cast %28 : vector<1x64xf32> to vector<1x64xf32>
    %30 = vector.broadcast %29 : vector<1x64xf32> to vector<256x64xf32>
    %c0_24 = arith.constant 0 : index
    %c0_25 = arith.constant 0 : index
    %31 = vector.load %arg3[%c0_24, %c0_25] : memref<128x64xf32, #tpu.memory_space<vmem>>, vector<32x64xf32>
    %c32 = arith.constant 32 : index
    %c0_26 = arith.constant 0 : index
    %32 = vector.load %arg3[%c32, %c0_26] : memref<128x64xf32, #tpu.memory_space<vmem>>, vector<32x64xf32>
    %c64 = arith.constant 64 : index
    %c0_27 = arith.constant 0 : index
    %33 = vector.load %arg3[%c64, %c0_27] : memref<128x64xf32, #tpu.memory_space<vmem>>, vector<32x64xf32>
    %c96 = arith.constant 96 : index
    %c0_28 = arith.constant 0 : index
    %34 = vector.load %arg3[%c96, %c0_28] : memref<128x64xf32, #tpu.memory_space<vmem>>, vector<32x64xf32>
    %cst_29 = arith.constant 0.000000e+00 : f32
    %35 = vector.broadcast %cst_29 : f32 to vector<256x64xf32>
    %c0_30 = arith.constant 0 : index
    %c0_31 = arith.constant 0 : index
    %36 = vector.load %arg12[%c0_30, %c0_31] : memref<544x32xf32, #tpu.memory_space<vmem>>, vector<256x32xf32>
    %cst_32 = arith.constant dense<0.000000e+00> : vector<256x64xf32>
    %37 = tpu.matmul %36, %31, %cst_32 {dimension_numbers = #tpu.dot_dimension_numbers<[1], [0], [0], [1], [0, 0, 1, 1], [], []>} : vector<256x32xf32>, vector<32x64xf32>, vector<256x64xf32> -> vector<256x64xf32>
    %38 = arith.addf %35, %37 : vector<256x64xf32>
    %c1 = arith.constant 1 : index
    %c0_33 = arith.constant 0 : index
    %39 = vector.load %arg12[%c1, %c0_33] : memref<544x32xf32, #tpu.memory_space<vmem>>, vector<256x32xf32>
    %cst_34 = arith.constant dense<0.000000e+00> : vector<256x64xf32>
    %40 = tpu.matmul %39, %32, %cst_34 {dimension_numbers = #tpu.dot_dimension_numbers<[1], [0], [0], [1], [0, 0, 1, 1], [], []>} : vector<256x32xf32>, vector<32x64xf32>, vector<256x64xf32> -> vector<256x64xf32>
    %41 = arith.addf %38, %40 : vector<256x64xf32>
    %c16 = arith.constant 16 : index
    %c0_35 = arith.constant 0 : index
    %42 = vector.load %arg12[%c16, %c0_35] : memref<544x32xf32, #tpu.memory_space<vmem>>, vector<256x32xf32>
    %cst_36 = arith.constant dense<0.000000e+00> : vector<256x64xf32>
    %43 = tpu.matmul %42, %33, %cst_36 {dimension_numbers = #tpu.dot_dimension_numbers<[1], [0], [0], [1], [0, 0, 1, 1], [], []>} : vector<256x32xf32>, vector<32x64xf32>, vector<256x64xf32> -> vector<256x64xf32>
    %44 = arith.addf %41, %43 : vector<256x64xf32>
    %c17 = arith.constant 17 : index
    %c0_37 = arith.constant 0 : index
    %45 = vector.load %arg12[%c17, %c0_37] : memref<544x32xf32, #tpu.memory_space<vmem>>, vector<256x32xf32>
    %cst_38 = arith.constant dense<0.000000e+00> : vector<256x64xf32>
    %46 = tpu.matmul %45, %34, %cst_38 {dimension_numbers = #tpu.dot_dimension_numbers<[1], [0], [0], [1], [0, 0, 1, 1], [], []>} : vector<256x32xf32>, vector<32x64xf32>, vector<256x64xf32> -> vector<256x64xf32>
    %47 = arith.addf %44, %46 : vector<256x64xf32>
    %48 = arith.addf %47, %30 : vector<256x64xf32>
    %cst_39 = arith.constant 0.000000e+00 : f32
    %49 = vector.broadcast %cst_39 : f32 to vector<256x64xf32>
    %50 = arith.cmpf oge, %48, %49 : vector<256x64xf32>
    %cst_40 = arith.constant 0.00999999977 : f32
    %51 = vector.broadcast %cst_40 : f32 to vector<256x64xf32>
    %52 = arith.mulf %51, %48 : vector<256x64xf32>
    %53 = arith.select %50, %48, %52 : vector<256x64xi1>, vector<256x64xf32>
    %c0_41 = arith.constant 0 : index
    %c0_42 = arith.constant 0 : index
    %54 = vector.load %arg13[%c0_41, %c0_42] : memref<512x64xf32, #tpu.memory_space<vmem>>, vector<256x64xf32>
    tpu.vector_store %arg13[%c0_41, %c0_42], %53 {strides = array<i32>} : memref<512x64xf32, #tpu.memory_space<vmem>>, vector<256x64xf32>,
    %cst_43 = arith.constant 0.000000e+00 : f32
    %55 = vector.broadcast %cst_43 : f32 to vector<256x64xf32>
    %c256_44 = arith.constant 256 : index
    %c0_45 = arith.constant 0 : index
    %56 = vector.load %arg12[%c256_44, %c0_45] : memref<544x32xf32, #tpu.memory_space<vmem>>, vector<256x32xf32>
    %cst_46 = arith.constant dense<0.000000e+00> : vector<256x64xf32>
    %57 = tpu.matmul %56, %31, %cst_46 {dimension_numbers = #tpu.dot_dimension_numbers<[1], [0], [0], [1], [0, 0, 1, 1], [], []>} : vector<256x32xf32>, vector<32x64xf32>, vector<256x64xf32> -> vector<256x64xf32>
    %58 = arith.addf %55, %57 : vector<256x64xf32>
    %c257 = arith.constant 257 : index
    %c0_47 = arith.constant 0 : index
    %59 = vector.load %arg12[%c257, %c0_47] : memref<544x32xf32, #tpu.memory_space<vmem>>, vector<256x32xf32>
    %cst_48 = arith.constant dense<0.000000e+00> : vector<256x64xf32>
    %60 = tpu.matmul %59, %32, %cst_48 {dimension_numbers = #tpu.dot_dimension_numbers<[1], [0], [0], [1], [0, 0, 1, 1], [], []>} : vector<256x32xf32>, vector<32x64xf32>, vector<256x64xf32> -> vector<256x64xf32>
    %61 = arith.addf %58, %60 : vector<256x64xf32>
    %c272 = arith.constant 272 : index
    %c0_49 = arith.constant 0 : index
    %62 = vector.load %arg12[%c272, %c0_49] : memref<544x32xf32, #tpu.memory_space<vmem>>, vector<256x32xf32>
    %cst_50 = arith.constant dense<0.000000e+00> : vector<256x64xf32>
    %63 = tpu.matmul %62, %33, %cst_50 {dimension_numbers = #tpu.dot_dimension_numbers<[1], [0], [0], [1], [0, 0, 1, 1], [], []>} : vector<256x32xf32>, vector<32x64xf32>, vector<256x64xf32> -> vector<256x64xf32>
    %64 = arith.addf %61, %63 : vector<256x64xf32>
    %c273 = arith.constant 273 : index
    %c0_51 = arith.constant 0 : index
    %65 = vector.load %arg12[%c273, %c0_51] : memref<544x32xf32, #tpu.memory_space<vmem>>, vector<256x32xf32>
    %cst_52 = arith.constant dense<0.000000e+00> : vector<256x64xf32>
    %66 = tpu.matmul %65, %34, %cst_52 {dimension_numbers = #tpu.dot_dimension_numbers<[1], [0], [0], [1], [0, 0, 1, 1], [], []>} : vector<256x32xf32>, vector<32x64xf32>, vector<256x64xf32> -> vector<256x64xf32>
    %67 = arith.addf %64, %66 : vector<256x64xf32>
    %68 = arith.addf %67, %30 : vector<256x64xf32>
    %cst_53 = arith.constant 0.000000e+00 : f32
    %69 = vector.broadcast %cst_53 : f32 to vector<256x64xf32>
    %70 = arith.cmpf oge, %68, %69 : vector<256x64xf32>
    %cst_54 = arith.constant 0.00999999977 : f32
    %71 = vector.broadcast %cst_54 : f32 to vector<256x64xf32>
    %72 = arith.mulf %71, %68 : vector<256x64xf32>
    %73 = arith.select %70, %68, %72 : vector<256x64xi1>, vector<256x64xf32>
    %c256_55 = arith.constant 256 : index
    %c0_56 = arith.constant 0 : index
    %74 = vector.load %arg13[%c256_55, %c0_56] : memref<512x64xf32, #tpu.memory_space<vmem>>, vector<256x64xf32>
    tpu.vector_store %arg13[%c256_55, %c0_56], %73 {strides = array<i32>} : memref<512x64xf32, #tpu.memory_space<vmem>>, vector<256x64xf32>,
    %c0_57 = arith.constant 0 : index
    %c0_58 = arith.constant 0 : index
    %75 = tpu.strided_load %arg13[%c0_57, %c0_58] {strides = array<i32: 2, 1>} : memref<512x64xf32, #tpu.memory_space<vmem>>, vector<8x64xf32>
    %c1_59 = arith.constant 1 : index
    %c0_60 = arith.constant 0 : index
    %76 = tpu.strided_load %arg13[%c1_59, %c0_60] {strides = array<i32: 2, 1>} : memref<512x64xf32, #tpu.memory_space<vmem>>, vector<8x64xf32>
    %77 = arith.maximumf %75, %76 : vector<8x64xf32>
    %c16_61 = arith.constant 16 : index
    %c0_62 = arith.constant 0 : index
    %78 = tpu.strided_load %arg13[%c16_61, %c0_62] {strides = array<i32: 2, 1>} : memref<512x64xf32, #tpu.memory_space<vmem>>, vector<8x64xf32>
    %79 = arith.maximumf %77, %78 : vector<8x64xf32>
    %c17_63 = arith.constant 17 : index
    %c0_64 = arith.constant 0 : index
    %80 = tpu.strided_load %arg13[%c17_63, %c0_64] {strides = array<i32: 2, 1>} : memref<512x64xf32, #tpu.memory_space<vmem>>, vector<8x64xf32>
    %81 = arith.maximumf %79, %80 : vector<8x64xf32>
    %c0_65 = arith.constant 0 : index
    %c0_66 = arith.constant 0 : index
    %82 = vector.load %arg14[%c0_65, %c0_66] : memref<144x64xf32, #tpu.memory_space<vmem>>, vector<8x64xf32>
    tpu.vector_store %arg14[%c0_65, %c0_66], %81 {strides = array<i32>} : memref<144x64xf32, #tpu.memory_space<vmem>>, vector<8x64xf32>,
    %c32_67 = arith.constant 32 : index
    %c0_68 = arith.constant 0 : index
    %83 = tpu.strided_load %arg13[%c32_67, %c0_68] {strides = array<i32: 2, 1>} : memref<512x64xf32, #tpu.memory_space<vmem>>, vector<8x64xf32>
    %c33 = arith.constant 33 : index
    %c0_69 = arith.constant 0 : index
    %84 = tpu.strided_load %arg13[%c33, %c0_69] {strides = array<i32: 2, 1>} : memref<512x64xf32, #tpu.memory_space<vmem>>, vector<8x64xf32>
    %85 = arith.maximumf %83, %84 : vector<8x64xf32>
    %c48 = arith.constant 48 : index
    %c0_70 = arith.constant 0 : index
    %86 = tpu.strided_load %arg13[%c48, %c0_70] {strides = array<i32: 2, 1>} : memref<512x64xf32, #tpu.memory_space<vmem>>, vector<8x64xf32>
    %87 = arith.maximumf %85, %86 : vector<8x64xf32>
    %c49 = arith.constant 49 : index
    %c0_71 = arith.constant 0 : index
    %88 = tpu.strided_load %arg13[%c49, %c0_71] {strides = array<i32: 2, 1>} : memref<512x64xf32, #tpu.memory_space<vmem>>, vector<8x64xf32>
    %89 = arith.maximumf %87, %88 : vector<8x64xf32>
    %c8 = arith.constant 8 : index
    %c0_72 = arith.constant 0 : index
    %90 = vector.load %arg14[%c8, %c0_72] : memref<144x64xf32, #tpu.memory_space<vmem>>, vector<8x64xf32>
    tpu.vector_store %arg14[%c8, %c0_72], %89 {strides = array<i32>} : memref<144x64xf32, #tpu.memory_space<vmem>>, vector<8x64xf32>,
    %c64_73 = arith.constant 64 : index
    %c0_74 = arith.constant 0 : index
    %91 = tpu.strided_load %arg13[%c64_73, %c0_74] {strides = array<i32: 2, 1>} : memref<512x64xf32, #tpu.memory_space<vmem>>, vector<8x64xf32>
    %c65 = arith.constant 65 : index
    %c0_75 = arith.constant 0 : index
    %92 = tpu.strided_load %arg13[%c65, %c0_75] {strides = array<i32: 2, 1>} : memref<512x64xf32, #tpu.memory_space<vmem>>, vector<8x64xf32>
    %93 = arith.maximumf %91, %92 : vector<8x64xf32>
    %c80 = arith.constant 80 : index
    %c0_76 = arith.constant 0 : index
    %94 = tpu.strided_load %arg13[%c80, %c0_76] {strides = array<i32: 2, 1>} : memref<512x64xf32, #tpu.memory_space<vmem>>, vector<8x64xf32>
    %95 = arith.maximumf %93, %94 : vector<8x64xf32>
    %c81 = arith.constant 81 : index
    %c0_77 = arith.constant 0 : index
    %96 = tpu.strided_load %arg13[%c81, %c0_77] {strides = array<i32: 2, 1>} : memref<512x64xf32, #tpu.memory_space<vmem>>, vector<8x64xf32>
    %97 = arith.maximumf %95, %96 : vector<8x64xf32>
    %c16_78 = arith.constant 16 : index
    %c0_79 = arith.constant 0 : index
    %98 = vector.load %arg14[%c16_78, %c0_79] : memref<144x64xf32, #tpu.memory_space<vmem>>, vector<8x64xf32>
    tpu.vector_store %arg14[%c16_78, %c0_79], %97 {strides = array<i32>} : memref<144x64xf32, #tpu.memory_space<vmem>>, vector<8x64xf32>,
    %c96_80 = arith.constant 96 : index
    %c0_81 = arith.constant 0 : index
    %99 = tpu.strided_load %arg13[%c96_80, %c0_81] {strides = array<i32: 2, 1>} : memref<512x64xf32, #tpu.memory_space<vmem>>, vector<8x64xf32>
    %c97 = arith.constant 97 : index
    %c0_82 = arith.constant 0 : index
    %100 = tpu.strided_load %arg13[%c97, %c0_82] {strides = array<i32: 2, 1>} : memref<512x64xf32, #tpu.memory_space<vmem>>, vector<8x64xf32>
    %101 = arith.maximumf %99, %100 : vector<8x64xf32>
    %c112 = arith.constant 112 : index
    %c0_83 = arith.constant 0 : index
    %102 = tpu.strided_load %arg13[%c112, %c0_83] {strides = array<i32: 2, 1>} : memref<512x64xf32, #tpu.memory_space<vmem>>, vector<8x64xf32>
    %103 = arith.maximumf %101, %102 : vector<8x64xf32>
    %c113 = arith.constant 113 : index
    %c0_84 = arith.constant 0 : index
    %104 = tpu.strided_load %arg13[%c113, %c0_84] {strides = array<i32: 2, 1>} : memref<512x64xf32, #tpu.memory_space<vmem>>, vector<8x64xf32>
    %105 = arith.maximumf %103, %104 : vector<8x64xf32>
    %c24 = arith.constant 24 : index
    %c0_85 = arith.constant 0 : index
    %106 = vector.load %arg14[%c24, %c0_85] : memref<144x64xf32, #tpu.memory_space<vmem>>, vector<8x64xf32>
    tpu.vector_store %arg14[%c24, %c0_85], %105 {strides = array<i32>} : memref<144x64xf32, #tpu.memory_space<vmem>>, vector<8x64xf32>,
    %c128_86 = arith.constant 128 : index
    %c0_87 = arith.constant 0 : index
    %107 = tpu.strided_load %arg13[%c128_86, %c0_87] {strides = array<i32: 2, 1>} : memref<512x64xf32, #tpu.memory_space<vmem>>, vector<8x64xf32>
    %c129 = arith.constant 129 : index
    %c0_88 = arith.constant 0 : index
    %108 = tpu.strided_load %arg13[%c129, %c0_88] {strides = array<i32: 2, 1>} : memref<512x64xf32, #tpu.memory_space<vmem>>, vector<8x64xf32>
    %109 = arith.maximumf %107, %108 : vector<8x64xf32>
    %c144 = arith.constant 144 : index
    %c0_89 = arith.constant 0 : index
    %110 = tpu.strided_load %arg13[%c144, %c0_89] {strides = array<i32: 2, 1>} : memref<512x64xf32, #tpu.memory_space<vmem>>, vector<8x64xf32>
    %111 = arith.maximumf %109, %110 : vector<8x64xf32>
    %c145 = arith.constant 145 : index
    %c0_90 = arith.constant 0 : index
    %112 = tpu.strided_load %arg13[%c145, %c0_90] {strides = array<i32: 2, 1>} : memref<512x64xf32, #tpu.memory_space<vmem>>, vector<8x64xf32>
    %113 = arith.maximumf %111, %112 : vector<8x64xf32>
    %c32_91 = arith.constant 32 : index
    %c0_92 = arith.constant 0 : index
    %114 = vector.load %arg14[%c32_91, %c0_92] : memref<144x64xf32, #tpu.memory_space<vmem>>, vector<8x64xf32>
    tpu.vector_store %arg14[%c32_91, %c0_92], %113 {strides = array<i32>} : memref<144x64xf32, #tpu.memory_space<vmem>>, vector<8x64xf32>,
    %c160 = arith.constant 160 : index
    %c0_93 = arith.constant 0 : index
    %115 = tpu.strided_load %arg13[%c160, %c0_93] {strides = array<i32: 2, 1>} : memref<512x64xf32, #tpu.memory_space<vmem>>, vector<8x64xf32>
    %c161 = arith.constant 161 : index
    %c0_94 = arith.constant 0 : index
    %116 = tpu.strided_load %arg13[%c161, %c0_94] {strides = array<i32: 2, 1>} : memref<512x64xf32, #tpu.memory_space<vmem>>, vector<8x64xf32>
    %117 = arith.maximumf %115, %116 : vector<8x64xf32>
    %c176 = arith.constant 176 : index
    %c0_95 = arith.constant 0 : index
    %118 = tpu.strided_load %arg13[%c176, %c0_95] {strides = array<i32: 2, 1>} : memref<512x64xf32, #tpu.memory_space<vmem>>, vector<8x64xf32>
    %119 = arith.maximumf %117, %118 : vector<8x64xf32>
    %c177 = arith.constant 177 : index
    %c0_96 = arith.constant 0 : index
    %120 = tpu.strided_load %arg13[%c177, %c0_96] {strides = array<i32: 2, 1>} : memref<512x64xf32, #tpu.memory_space<vmem>>, vector<8x64xf32>
    %121 = arith.maximumf %119, %120 : vector<8x64xf32>
    %c40 = arith.constant 40 : index
    %c0_97 = arith.constant 0 : index
    %122 = vector.load %arg14[%c40, %c0_97] : memref<144x64xf32, #tpu.memory_space<vmem>>, vector<8x64xf32>
    tpu.vector_store %arg14[%c40, %c0_97], %121 {strides = array<i32>} : memref<144x64xf32, #tpu.memory_space<vmem>>, vector<8x64xf32>,
    %c192 = arith.constant 192 : index
    %c0_98 = arith.constant 0 : index
    %123 = tpu.strided_load %arg13[%c192, %c0_98] {strides = array<i32: 2, 1>} : memref<512x64xf32, #tpu.memory_space<vmem>>, vector<8x64xf32>
    %c193 = arith.constant 193 : index
    %c0_99 = arith.constant 0 : index
    %124 = tpu.strided_load %arg13[%c193, %c0_99] {strides = array<i32: 2, 1>} : memref<512x64xf32, #tpu.memory_space<vmem>>, vector<8x64xf32>
    %125 = arith.maximumf %123, %124 : vector<8x64xf32>
    %c208 = arith.constant 208 : index
    %c0_100 = arith.constant 0 : index
    %126 = tpu.strided_load %arg13[%c208, %c0_100] {strides = array<i32: 2, 1>} : memref<512x64xf32, #tpu.memory_space<vmem>>, vector<8x64xf32>
    %127 = arith.maximumf %125, %126 : vector<8x64xf32>
    %c209 = arith.constant 209 : index
    %c0_101 = arith.constant 0 : index
    %128 = tpu.strided_load %arg13[%c209, %c0_101] {strides = array<i32: 2, 1>} : memref<512x64xf32, #tpu.memory_space<vmem>>, vector<8x64xf32>
    %129 = arith.maximumf %127, %128 : vector<8x64xf32>
    %c48_102 = arith.constant 48 : index
    %c0_103 = arith.constant 0 : index
    %130 = vector.load %arg14[%c48_102, %c0_103] : memref<144x64xf32, #tpu.memory_space<vmem>>, vector<8x64xf32>
    tpu.vector_store %arg14[%c48_102, %c0_103], %129 {strides = array<i32>} : memref<144x64xf32, #tpu.memory_space<vmem>>, vector<8x64xf32>,
    %c224 = arith.constant 224 : index
    %c0_104 = arith.constant 0 : index
    %131 = tpu.strided_load %arg13[%c224, %c0_104] {strides = array<i32: 2, 1>} : memref<512x64xf32, #tpu.memory_space<vmem>>, vector<8x64xf32>
    %c225 = arith.constant 225 : index
    %c0_105 = arith.constant 0 : index
    %132 = tpu.strided_load %arg13[%c225, %c0_105] {strides = array<i32: 2, 1>} : memref<512x64xf32, #tpu.memory_space<vmem>>, vector<8x64xf32>
    %133 = arith.maximumf %131, %132 : vector<8x64xf32>
    %c240 = arith.constant 240 : index
    %c0_106 = arith.constant 0 : index
    %134 = tpu.strided_load %arg13[%c240, %c0_106] {strides = array<i32: 2, 1>} : memref<512x64xf32, #tpu.memory_space<vmem>>, vector<8x64xf32>
    %135 = arith.maximumf %133, %134 : vector<8x64xf32>
    %c241 = arith.constant 241 : index
    %c0_107 = arith.constant 0 : index
    %136 = tpu.strided_load %arg13[%c241, %c0_107] {strides = array<i32: 2, 1>} : memref<512x64xf32, #tpu.memory_space<vmem>>, vector<8x64xf32>
    %137 = arith.maximumf %135, %136 : vector<8x64xf32>
    %c56 = arith.constant 56 : index
    %c0_108 = arith.constant 0 : index
    %138 = vector.load %arg14[%c56, %c0_108] : memref<144x64xf32, #tpu.memory_space<vmem>>, vector<8x64xf32>
    tpu.vector_store %arg14[%c56, %c0_108], %137 {strides = array<i32>} : memref<144x64xf32, #tpu.memory_space<vmem>>, vector<8x64xf32>,
    %c256_109 = arith.constant 256 : index
    %c0_110 = arith.constant 0 : index
    %139 = tpu.strided_load %arg13[%c256_109, %c0_110] {strides = array<i32: 2, 1>} : memref<512x64xf32, #tpu.memory_space<vmem>>, vector<8x64xf32>
    %c257_111 = arith.constant 257 : index
    %c0_112 = arith.constant 0 : index
    %140 = tpu.strided_load %arg13[%c257_111, %c0_112] {strides = array<i32: 2, 1>} : memref<512x64xf32, #tpu.memory_space<vmem>>, vector<8x64xf32>
    %141 = arith.maximumf %139, %140 : vector<8x64xf32>
    %c272_113 = arith.constant 272 : index
    %c0_114 = arith.constant 0 : index
    %142 = tpu.strided_load %arg13[%c272_113, %c0_114] {strides = array<i32: 2, 1>} : memref<512x64xf32, #tpu.memory_space<vmem>>, vector<8x64xf32>
    %143 = arith.maximumf %141, %142 : vector<8x64xf32>
    %c273_115 = arith.constant 273 : index
    %c0_116 = arith.constant 0 : index
    %144 = tpu.strided_load %arg13[%c273_115, %c0_116] {strides = array<i32: 2, 1>} : memref<512x64xf32, #tpu.memory_space<vmem>>, vector<8x64xf32>
    %145 = arith.maximumf %143, %144 : vector<8x64xf32>
    %c64_117 = arith.constant 64 : index
    %c0_118 = arith.constant 0 : index
    %146 = vector.load %arg14[%c64_117, %c0_118] : memref<144x64xf32, #tpu.memory_space<vmem>>, vector<8x64xf32>
    tpu.vector_store %arg14[%c64_117, %c0_118], %145 {strides = array<i32>} : memref<144x64xf32, #tpu.memory_space<vmem>>, vector<8x64xf32>,
    %c288 = arith.constant 288 : index
    %c0_119 = arith.constant 0 : index
    %147 = tpu.strided_load %arg13[%c288, %c0_119] {strides = array<i32: 2, 1>} : memref<512x64xf32, #tpu.memory_space<vmem>>, vector<8x64xf32>
    %c289 = arith.constant 289 : index
    %c0_120 = arith.constant 0 : index
    %148 = tpu.strided_load %arg13[%c289, %c0_120] {strides = array<i32: 2, 1>} : memref<512x64xf32, #tpu.memory_space<vmem>>, vector<8x64xf32>
    %149 = arith.maximumf %147, %148 : vector<8x64xf32>
    %c304 = arith.constant 304 : index
    %c0_121 = arith.constant 0 : index
    %150 = tpu.strided_load %arg13[%c304, %c0_121] {strides = array<i32: 2, 1>} : memref<512x64xf32, #tpu.memory_space<vmem>>, vector<8x64xf32>
    %151 = arith.maximumf %149, %150 : vector<8x64xf32>
    %c305 = arith.constant 305 : index
    %c0_122 = arith.constant 0 : index
    %152 = tpu.strided_load %arg13[%c305, %c0_122] {strides = array<i32: 2, 1>} : memref<512x64xf32, #tpu.memory_space<vmem>>, vector<8x64xf32>
    %153 = arith.maximumf %151, %152 : vector<8x64xf32>
    %c72 = arith.constant 72 : index
    %c0_123 = arith.constant 0 : index
    %154 = vector.load %arg14[%c72, %c0_123] : memref<144x64xf32, #tpu.memory_space<vmem>>, vector<8x64xf32>
    tpu.vector_store %arg14[%c72, %c0_123], %153 {strides = array<i32>} : memref<144x64xf32, #tpu.memory_space<vmem>>, vector<8x64xf32>,
    %c320 = arith.constant 320 : index
    %c0_124 = arith.constant 0 : index
    %155 = tpu.strided_load %arg13[%c320, %c0_124] {strides = array<i32: 2, 1>} : memref<512x64xf32, #tpu.memory_space<vmem>>, vector<8x64xf32>
    %c321 = arith.constant 321 : index
    %c0_125 = arith.constant 0 : index
    %156 = tpu.strided_load %arg13[%c321, %c0_125] {strides = array<i32: 2, 1>} : memref<512x64xf32, #tpu.memory_space<vmem>>, vector<8x64xf32>
    %157 = arith.maximumf %155, %156 : vector<8x64xf32>
    %c336 = arith.constant 336 : index
    %c0_126 = arith.constant 0 : index
    %158 = tpu.strided_load %arg13[%c336, %c0_126] {strides = array<i32: 2, 1>} : memref<512x64xf32, #tpu.memory_space<vmem>>, vector<8x64xf32>
    %159 = arith.maximumf %157, %158 : vector<8x64xf32>
    %c337 = arith.constant 337 : index
    %c0_127 = arith.constant 0 : index
    %160 = tpu.strided_load %arg13[%c337, %c0_127] {strides = array<i32: 2, 1>} : memref<512x64xf32, #tpu.memory_space<vmem>>, vector<8x64xf32>
    %161 = arith.maximumf %159, %160 : vector<8x64xf32>
    %c80_128 = arith.constant 80 : index
    %c0_129 = arith.constant 0 : index
    %162 = vector.load %arg14[%c80_128, %c0_129] : memref<144x64xf32, #tpu.memory_space<vmem>>, vector<8x64xf32>
    tpu.vector_store %arg14[%c80_128, %c0_129], %161 {strides = array<i32>} : memref<144x64xf32, #tpu.memory_space<vmem>>, vector<8x64xf32>,
    %c352 = arith.constant 352 : index
    %c0_130 = arith.constant 0 : index
    %163 = tpu.strided_load %arg13[%c352, %c0_130] {strides = array<i32: 2, 1>} : memref<512x64xf32, #tpu.memory_space<vmem>>, vector<8x64xf32>
    %c353 = arith.constant 353 : index
    %c0_131 = arith.constant 0 : index
    %164 = tpu.strided_load %arg13[%c353, %c0_131] {strides = array<i32: 2, 1>} : memref<512x64xf32, #tpu.memory_space<vmem>>, vector<8x64xf32>
    %165 = arith.maximumf %163, %164 : vector<8x64xf32>
    %c368 = arith.constant 368 : index
    %c0_132 = arith.constant 0 : index
    %166 = tpu.strided_load %arg13[%c368, %c0_132] {strides = array<i32: 2, 1>} : memref<512x64xf32, #tpu.memory_space<vmem>>, vector<8x64xf32>
    %167 = arith.maximumf %165, %166 : vector<8x64xf32>
    %c369 = arith.constant 369 : index
    %c0_133 = arith.constant 0 : index
    %168 = tpu.strided_load %arg13[%c369, %c0_133] {strides = array<i32: 2, 1>} : memref<512x64xf32, #tpu.memory_space<vmem>>, vector<8x64xf32>
    %169 = arith.maximumf %167, %168 : vector<8x64xf32>
    %c88 = arith.constant 88 : index
    %c0_134 = arith.constant 0 : index
    %170 = vector.load %arg14[%c88, %c0_134] : memref<144x64xf32, #tpu.memory_space<vmem>>, vector<8x64xf32>
    tpu.vector_store %arg14[%c88, %c0_134], %169 {strides = array<i32>} : memref<144x64xf32, #tpu.memory_space<vmem>>, vector<8x64xf32>,
    %c384 = arith.constant 384 : index
    %c0_135 = arith.constant 0 : index
    %171 = tpu.strided_load %arg13[%c384, %c0_135] {strides = array<i32: 2, 1>} : memref<512x64xf32, #tpu.memory_space<vmem>>, vector<8x64xf32>
    %c385 = arith.constant 385 : index
    %c0_136 = arith.constant 0 : index
    %172 = tpu.strided_load %arg13[%c385, %c0_136] {strides = array<i32: 2, 1>} : memref<512x64xf32, #tpu.memory_space<vmem>>, vector<8x64xf32>
    %173 = arith.maximumf %171, %172 : vector<8x64xf32>
    %c400 = arith.constant 400 : index
    %c0_137 = arith.constant 0 : index
    %174 = tpu.strided_load %arg13[%c400, %c0_137] {strides = array<i32: 2, 1>} : memref<512x64xf32, #tpu.memory_space<vmem>>, vector<8x64xf32>
    %175 = arith.maximumf %173, %174 : vector<8x64xf32>
    %c401 = arith.constant 401 : index
    %c0_138 = arith.constant 0 : index
    %176 = tpu.strided_load %arg13[%c401, %c0_138] {strides = array<i32: 2, 1>} : memref<512x64xf32, #tpu.memory_space<vmem>>, vector<8x64xf32>
    %177 = arith.maximumf %175, %176 : vector<8x64xf32>
    %c96_139 = arith.constant 96 : index
    %c0_140 = arith.constant 0 : index
    %178 = vector.load %arg14[%c96_139, %c0_140] : memref<144x64xf32, #tpu.memory_space<vmem>>, vector<8x64xf32>
    tpu.vector_store %arg14[%c96_139, %c0_140], %177 {strides = array<i32>} : memref<144x64xf32, #tpu.memory_space<vmem>>, vector<8x64xf32>,
    %c416 = arith.constant 416 : index
    %c0_141 = arith.constant 0 : index
    %179 = tpu.strided_load %arg13[%c416, %c0_141] {strides = array<i32: 2, 1>} : memref<512x64xf32, #tpu.memory_space<vmem>>, vector<8x64xf32>
    %c417 = arith.constant 417 : index
    %c0_142 = arith.constant 0 : index
    %180 = tpu.strided_load %arg13[%c417, %c0_142] {strides = array<i32: 2, 1>} : memref<512x64xf32, #tpu.memory_space<vmem>>, vector<8x64xf32>
    %181 = arith.maximumf %179, %180 : vector<8x64xf32>
    %c432 = arith.constant 432 : index
    %c0_143 = arith.constant 0 : index
    %182 = tpu.strided_load %arg13[%c432, %c0_143] {strides = array<i32: 2, 1>} : memref<512x64xf32, #tpu.memory_space<vmem>>, vector<8x64xf32>
    %183 = arith.maximumf %181, %182 : vector<8x64xf32>
    %c433 = arith.constant 433 : index
    %c0_144 = arith.constant 0 : index
    %184 = tpu.strided_load %arg13[%c433, %c0_144] {strides = array<i32: 2, 1>} : memref<512x64xf32, #tpu.memory_space<vmem>>, vector<8x64xf32>
    %185 = arith.maximumf %183, %184 : vector<8x64xf32>
    %c104 = arith.constant 104 : index
    %c0_145 = arith.constant 0 : index
    %186 = vector.load %arg14[%c104, %c0_145] : memref<144x64xf32, #tpu.memory_space<vmem>>, vector<8x64xf32>
    tpu.vector_store %arg14[%c104, %c0_145], %185 {strides = array<i32>} : memref<144x64xf32, #tpu.memory_space<vmem>>, vector<8x64xf32>,
    %c448 = arith.constant 448 : index
    %c0_146 = arith.constant 0 : index
    %187 = tpu.strided_load %arg13[%c448, %c0_146] {strides = array<i32: 2, 1>} : memref<512x64xf32, #tpu.memory_space<vmem>>, vector<8x64xf32>
    %c449 = arith.constant 449 : index
    %c0_147 = arith.constant 0 : index
    %188 = tpu.strided_load %arg13[%c449, %c0_147] {strides = array<i32: 2, 1>} : memref<512x64xf32, #tpu.memory_space<vmem>>, vector<8x64xf32>
    %189 = arith.maximumf %187, %188 : vector<8x64xf32>
    %c464 = arith.constant 464 : index
    %c0_148 = arith.constant 0 : index
    %190 = tpu.strided_load %arg13[%c464, %c0_148] {strides = array<i32: 2, 1>} : memref<512x64xf32, #tpu.memory_space<vmem>>, vector<8x64xf32>
    %191 = arith.maximumf %189, %190 : vector<8x64xf32>
    %c465 = arith.constant 465 : index
    %c0_149 = arith.constant 0 : index
    %192 = tpu.strided_load %arg13[%c465, %c0_149] {strides = array<i32: 2, 1>} : memref<512x64xf32, #tpu.memory_space<vmem>>, vector<8x64xf32>
    %193 = arith.maximumf %191, %192 : vector<8x64xf32>
    %c112_150 = arith.constant 112 : index
    %c0_151 = arith.constant 0 : index
    %194 = vector.load %arg14[%c112_150, %c0_151] : memref<144x64xf32, #tpu.memory_space<vmem>>, vector<8x64xf32>
    tpu.vector_store %arg14[%c112_150, %c0_151], %193 {strides = array<i32>} : memref<144x64xf32, #tpu.memory_space<vmem>>, vector<8x64xf32>,
    %c480 = arith.constant 480 : index
    %c0_152 = arith.constant 0 : index
    %195 = tpu.strided_load %arg13[%c480, %c0_152] {strides = array<i32: 2, 1>} : memref<512x64xf32, #tpu.memory_space<vmem>>, vector<8x64xf32>
    %c481 = arith.constant 481 : index
    %c0_153 = arith.constant 0 : index
    %196 = tpu.strided_load %arg13[%c481, %c0_153] {strides = array<i32: 2, 1>} : memref<512x64xf32, #tpu.memory_space<vmem>>, vector<8x64xf32>
    %197 = arith.maximumf %195, %196 : vector<8x64xf32>
    %c496 = arith.constant 496 : index
    %c0_154 = arith.constant 0 : index
    %198 = tpu.strided_load %arg13[%c496, %c0_154] {strides = array<i32: 2, 1>} : memref<512x64xf32, #tpu.memory_space<vmem>>, vector<8x64xf32>
    %199 = arith.maximumf %197, %198 : vector<8x64xf32>
    %c497 = arith.constant 497 : index
    %c0_155 = arith.constant 0 : index
    %200 = tpu.strided_load %arg13[%c497, %c0_155] {strides = array<i32: 2, 1>} : memref<512x64xf32, #tpu.memory_space<vmem>>, vector<8x64xf32>
    %201 = arith.maximumf %199, %200 : vector<8x64xf32>
    %c120 = arith.constant 120 : index
    %c0_156 = arith.constant 0 : index
    %202 = vector.load %arg14[%c120, %c0_156] : memref<144x64xf32, #tpu.memory_space<vmem>>, vector<8x64xf32>
    tpu.vector_store %arg14[%c120, %c0_156], %201 {strides = array<i32>} : memref<144x64xf32, #tpu.memory_space<vmem>>, vector<8x64xf32>,
    %c0_157 = arith.constant 0 : index
    %c0_158 = arith.constant 0 : index
    %203 = vector.load %arg6[%c0_157, %c0_158] : memref<1x128xf32, #tpu.memory_space<vmem>>, vector<1x128xf32>
    %204 = vector.shape_cast %203 : vector<1x128xf32> to vector<1x128xf32>
    %205 = vector.broadcast %204 : vector<1x128xf32> to vector<128x128xf32>
    %c0_159 = arith.constant 0 : index
    %c0_160 = arith.constant 0 : index
    %206 = vector.load %arg5[%c0_159, %c0_160] : memref<256x128xf32, #tpu.memory_space<vmem>>, vector<64x128xf32>
    %c64_161 = arith.constant 64 : index
    %c0_162 = arith.constant 0 : index
    %207 = vector.load %arg5[%c64_161, %c0_162] : memref<256x128xf32, #tpu.memory_space<vmem>>, vector<64x128xf32>
    %c128_163 = arith.constant 128 : index
    %c0_164 = arith.constant 0 : index
    %208 = vector.load %arg5[%c128_163, %c0_164] : memref<256x128xf32, #tpu.memory_space<vmem>>, vector<64x128xf32>
    %c192_165 = arith.constant 192 : index
    %c0_166 = arith.constant 0 : index
    %209 = vector.load %arg5[%c192_165, %c0_166] : memref<256x128xf32, #tpu.memory_space<vmem>>, vector<64x128xf32>
    %cst_167 = arith.constant 0.000000e+00 : f32
    %210 = vector.broadcast %cst_167 : f32 to vector<128x128xf32>
    %c0_168 = arith.constant 0 : index
    %c0_169 = arith.constant 0 : index
    %211 = vector.load %arg14[%c0_168, %c0_169] : memref<144x64xf32, #tpu.memory_space<vmem>>, vector<128x64xf32>
    %cst_170 = arith.constant dense<0.000000e+00> : vector<128x128xf32>
    %212 = tpu.matmul %211, %206, %cst_170 {dimension_numbers = #tpu.dot_dimension_numbers<[1], [0], [0], [1], [0, 0, 1, 1], [], []>} : vector<128x64xf32>, vector<64x128xf32>, vector<128x128xf32> -> vector<128x128xf32>
    %213 = arith.addf %210, %212 : vector<128x128xf32>
    %c1_171 = arith.constant 1 : index
    %c0_172 = arith.constant 0 : index
    %214 = vector.load %arg14[%c1_171, %c0_172] : memref<144x64xf32, #tpu.memory_space<vmem>>, vector<128x64xf32>
    %cst_173 = arith.constant dense<0.000000e+00> : vector<128x128xf32>
    %215 = tpu.matmul %214, %207, %cst_173 {dimension_numbers = #tpu.dot_dimension_numbers<[1], [0], [0], [1], [0, 0, 1, 1], [], []>} : vector<128x64xf32>, vector<64x128xf32>, vector<128x128xf32> -> vector<128x128xf32>
    %216 = arith.addf %213, %215 : vector<128x128xf32>
    %c8_174 = arith.constant 8 : index
    %c0_175 = arith.constant 0 : index
    %217 = vector.load %arg14[%c8_174, %c0_175] : memref<144x64xf32, #tpu.memory_space<vmem>>, vector<128x64xf32>
    %cst_176 = arith.constant dense<0.000000e+00> : vector<128x128xf32>
    %218 = tpu.matmul %217, %208, %cst_176 {dimension_numbers = #tpu.dot_dimension_numbers<[1], [0], [0], [1], [0, 0, 1, 1], [], []>} : vector<128x64xf32>, vector<64x128xf32>, vector<128x128xf32> -> vector<128x128xf32>
    %219 = arith.addf %216, %218 : vector<128x128xf32>
    %c9 = arith.constant 9 : index
    %c0_177 = arith.constant 0 : index
    %220 = vector.load %arg14[%c9, %c0_177] : memref<144x64xf32, #tpu.memory_space<vmem>>, vector<128x64xf32>
    %cst_178 = arith.constant dense<0.000000e+00> : vector<128x128xf32>
    %221 = tpu.matmul %220, %209, %cst_178 {dimension_numbers = #tpu.dot_dimension_numbers<[1], [0], [0], [1], [0, 0, 1, 1], [], []>} : vector<128x64xf32>, vector<64x128xf32>, vector<128x128xf32> -> vector<128x128xf32>
    %222 = arith.addf %219, %221 : vector<128x128xf32>
    %223 = arith.addf %222, %205 : vector<128x128xf32>
    %cst_179 = arith.constant 0.000000e+00 : f32
    %224 = vector.broadcast %cst_179 : f32 to vector<128x128xf32>
    %225 = arith.cmpf oge, %223, %224 : vector<128x128xf32>
    %cst_180 = arith.constant 0.00999999977 : f32
    %226 = vector.broadcast %cst_180 : f32 to vector<128x128xf32>
    %227 = arith.mulf %226, %223 : vector<128x128xf32>
    %228 = arith.select %225, %223, %227 : vector<128x128xi1>, vector<128x128xf32>
    %c0_181 = arith.constant 0 : index
    %c0_182 = arith.constant 0 : index
    %229 = vector.load %arg15[%c0_181, %c0_182] : memref<144x128xf32, #tpu.memory_space<vmem>>, vector<128x128xf32>
    tpu.vector_store %arg15[%c0_181, %c0_182], %228 {strides = array<i32>} : memref<144x128xf32, #tpu.memory_space<vmem>>, vector<128x128xf32>,
    %c0_183 = arith.constant 0 : index
    %c0_184 = arith.constant 0 : index
    %230 = vector.load %arg8[%c0_183, %c0_184] : memref<1x128xf32, #tpu.memory_space<vmem>>, vector<1x128xf32>
    %231 = vector.shape_cast %230 : vector<1x128xf32> to vector<1x128xf32>
    %232 = vector.broadcast %231 : vector<1x128xf32> to vector<128x128xf32>
    %c0_185 = arith.constant 0 : index
    %c0_186 = arith.constant 0 : index
    %233 = vector.load %arg7[%c0_185, %c0_186] : memref<512x128xf32, #tpu.memory_space<vmem>>, vector<128x128xf32>
    %c128_187 = arith.constant 128 : index
    %c0_188 = arith.constant 0 : index
    %234 = vector.load %arg7[%c128_187, %c0_188] : memref<512x128xf32, #tpu.memory_space<vmem>>, vector<128x128xf32>
    %c256_189 = arith.constant 256 : index
    %c0_190 = arith.constant 0 : index
    %235 = vector.load %arg7[%c256_189, %c0_190] : memref<512x128xf32, #tpu.memory_space<vmem>>, vector<128x128xf32>
    %c384_191 = arith.constant 384 : index
    %c0_192 = arith.constant 0 : index
    %236 = vector.load %arg7[%c384_191, %c0_192] : memref<512x128xf32, #tpu.memory_space<vmem>>, vector<128x128xf32>
    %cst_193 = arith.constant 0.000000e+00 : f32
    %237 = vector.broadcast %cst_193 : f32 to vector<128x128xf32>
    %c0_194 = arith.constant 0 : index
    %c0_195 = arith.constant 0 : index
    %238 = vector.load %arg15[%c0_194, %c0_195] : memref<144x128xf32, #tpu.memory_space<vmem>>, vector<128x128xf32>
    %cst_196 = arith.constant dense<0.000000e+00> : vector<128x128xf32>
    %239 = tpu.matmul %238, %233, %cst_196 {dimension_numbers = #tpu.dot_dimension_numbers<[1], [0], [0], [1], [0, 0, 1, 1], [], []>} : vector<128x128xf32>, vector<128x128xf32>, vector<128x128xf32> -> vector<128x128xf32>
    %240 = arith.addf %237, %239 : vector<128x128xf32>
    %c1_197 = arith.constant 1 : index
    %c0_198 = arith.constant 0 : index
    %241 = vector.load %arg15[%c1_197, %c0_198] : memref<144x128xf32, #tpu.memory_space<vmem>>, vector<128x128xf32>
    %cst_199 = arith.constant dense<0.000000e+00> : vector<128x128xf32>
    %242 = tpu.matmul %241, %234, %cst_199 {dimension_numbers = #tpu.dot_dimension_numbers<[1], [0], [0], [1], [0, 0, 1, 1], [], []>} : vector<128x128xf32>, vector<128x128xf32>, vector<128x128xf32> -> vector<128x128xf32>
    %243 = arith.addf %240, %242 : vector<128x128xf32>
    %c8_200 = arith.constant 8 : index
    %c0_201 = arith.constant 0 : index
    %244 = vector.load %arg15[%c8_200, %c0_201] : memref<144x128xf32, #tpu.memory_space<vmem>>, vector<128x128xf32>
    %cst_202 = arith.constant dense<0.000000e+00> : vector<128x128xf32>
    %245 = tpu.matmul %244, %235, %cst_202 {dimension_numbers = #tpu.dot_dimension_numbers<[1], [0], [0], [1], [0, 0, 1, 1], [], []>} : vector<128x128xf32>, vector<128x128xf32>, vector<128x128xf32> -> vector<128x128xf32>
    %246 = arith.addf %243, %245 : vector<128x128xf32>
    %c9_203 = arith.constant 9 : index
    %c0_204 = arith.constant 0 : index
    %247 = vector.load %arg15[%c9_203, %c0_204] : memref<144x128xf32, #tpu.memory_space<vmem>>, vector<128x128xf32>
    %cst_205 = arith.constant dense<0.000000e+00> : vector<128x128xf32>
    %248 = tpu.matmul %247, %236, %cst_205 {dimension_numbers = #tpu.dot_dimension_numbers<[1], [0], [0], [1], [0, 0, 1, 1], [], []>} : vector<128x128xf32>, vector<128x128xf32>, vector<128x128xf32> -> vector<128x128xf32>
    %249 = arith.addf %246, %248 : vector<128x128xf32>
    %250 = arith.addf %249, %232 : vector<128x128xf32>
    %cst_206 = arith.constant 0.000000e+00 : f32
    %251 = vector.broadcast %cst_206 : f32 to vector<128x128xf32>
    %252 = arith.cmpf oge, %250, %251 : vector<128x128xf32>
    %cst_207 = arith.constant 0.00999999977 : f32
    %253 = vector.broadcast %cst_207 : f32 to vector<128x128xf32>
    %254 = arith.mulf %253, %250 : vector<128x128xf32>
    %255 = arith.select %252, %250, %254 : vector<128x128xi1>, vector<128x128xf32>
    %c0_208 = arith.constant 0 : index
    %c0_209 = arith.constant 0 : index
    %256 = vector.load %arg16[%c0_208, %c0_209] : memref<128x128xf32, #tpu.memory_space<vmem>>, vector<128x128xf32>
    tpu.vector_store %arg16[%c0_208, %c0_209], %255 {strides = array<i32>} : memref<128x128xf32, #tpu.memory_space<vmem>>, vector<128x128xf32>,
    %c0_210 = arith.constant 0 : index
    %c0_211 = arith.constant 0 : index
    %257 = vector.load %arg10[%c0_210, %c0_211] : memref<1x2xf32, #tpu.memory_space<vmem>>, vector<1x2xf32>
    %c0_212 = arith.constant 0 : index
    %c0_213 = arith.constant 0 : index
    %258 = vector.load %arg9[%c0_212, %c0_213] : memref<128x128xf32, #tpu.memory_space<vmem>>, vector<64x128xf32>
    %c64_214 = arith.constant 64 : index
    %c0_215 = arith.constant 0 : index
    %259 = vector.load %arg9[%c64_214, %c0_215] : memref<128x128xf32, #tpu.memory_space<vmem>>, vector<64x128xf32>
    %c0_216 = arith.constant 0 : index
    %c0_217 = arith.constant 0 : index
    %260 = vector.load %arg16[%c0_216, %c0_217] : memref<128x128xf32, #tpu.memory_space<vmem>>, vector<64x128xf32>
    %261 = arith.mulf %260, %258 : vector<64x128xf32>
    %cst_218 = arith.constant dense<0.000000e+00> : vector<64xf32>
    %262 = vector.multi_reduction <add>, %261, %cst_218 [1] : vector<64x128xf32> to vector<64xf32>
    %263 = vector.shape_cast %262 : vector<64xf32> to vector<64x1xf32>
    %cst_219 = arith.constant dense<0.000000e+00> : vector<1xf32>
    %264 = vector.multi_reduction <add>, %263, %cst_219 [0] : vector<64x1xf32> to vector<1xf32>
    %265 = vector.shape_cast %264 : vector<1xf32> to vector<1x1xf32>
    %266 = vector.extract_strided_slice %257 {offsets = [0, 0], sizes = [1, 1], strides = [1, 1]} : vector<1x2xf32> to vector<1x1xf32>
    %267 = arith.addf %265, %266 : vector<1x1xf32>
    %c0_220 = arith.constant 0 : index
    %c0_221 = arith.constant 0 : index
    %268 = vector.load %arg11[%c0_220, %c0_221] : memref<2x2xf32, #tpu.memory_space<vmem>>, vector<1x1xf32>
    tpu.vector_store %arg11[%c0_220, %c0_221], %267 {strides = array<i32>} : memref<2x2xf32, #tpu.memory_space<vmem>>, vector<1x1xf32>,
    %269 = arith.mulf %260, %259 : vector<64x128xf32>
    %cst_222 = arith.constant dense<0.000000e+00> : vector<64xf32>
    %270 = vector.multi_reduction <add>, %269, %cst_222 [1] : vector<64x128xf32> to vector<64xf32>
    %271 = vector.shape_cast %270 : vector<64xf32> to vector<64x1xf32>
    %cst_223 = arith.constant dense<0.000000e+00> : vector<1xf32>
    %272 = vector.multi_reduction <add>, %271, %cst_223 [0] : vector<64x1xf32> to vector<1xf32>
    %273 = vector.shape_cast %272 : vector<1xf32> to vector<1x1xf32>
    %274 = vector.extract_strided_slice %257 {offsets = [0, 1], sizes = [1, 1], strides = [1, 1]} : vector<1x2xf32> to vector<1x1xf32>
    %275 = arith.addf %273, %274 : vector<1x1xf32>
    %c0_224 = arith.constant 0 : index
    %c1_225 = arith.constant 1 : index
    %276 = vector.load %arg11[%c0_224, %c1_225] : memref<2x2xf32, #tpu.memory_space<vmem>>, vector<1x1xf32>
    tpu.vector_store %arg11[%c0_224, %c1_225], %275 {strides = array<i32>} : memref<2x2xf32, #tpu.memory_space<vmem>>, vector<1x1xf32>,
    %c64_226 = arith.constant 64 : index
    %c0_227 = arith.constant 0 : index
    %277 = vector.load %arg16[%c64_226, %c0_227] : memref<128x128xf32, #tpu.memory_space<vmem>>, vector<64x128xf32>
    %278 = arith.mulf %277, %258 : vector<64x128xf32>
    %cst_228 = arith.constant dense<0.000000e+00> : vector<64xf32>
    %279 = vector.multi_reduction <add>, %278, %cst_228 [1] : vector<64x128xf32> to vector<64xf32>
    %280 = vector.shape_cast %279 : vector<64xf32> to vector<64x1xf32>
    %cst_229 = arith.constant dense<0.000000e+00> : vector<1xf32>
    %281 = vector.multi_reduction <add>, %280, %cst_229 [0] : vector<64x1xf32> to vector<1xf32>
    %282 = vector.shape_cast %281 : vector<1xf32> to vector<1x1xf32>
    %283 = vector.extract_strided_slice %257 {offsets = [0, 0], sizes = [1, 1], strides = [1, 1]} : vector<1x2xf32> to vector<1x1xf32>
    %284 = arith.addf %282, %283 : vector<1x1xf32>
    %c1_230 = arith.constant 1 : index
    %c0_231 = arith.constant 0 : index
    %285 = vector.load %arg11[%c1_230, %c0_231] : memref<2x2xf32, #tpu.memory_space<vmem>>, vector<1x1xf32>
    tpu.vector_store %arg11[%c1_230, %c0_231], %284 {strides = array<i32>} : memref<2x2xf32, #tpu.memory_space<vmem>>, vector<1x1xf32>,
    %286 = arith.mulf %277, %259 : vector<64x128xf32>
    %cst_232 = arith.constant dense<0.000000e+00> : vector<64xf32>
    %287 = vector.multi_reduction <add>, %286, %cst_232 [1] : vector<64x128xf32> to vector<64xf32>
    %288 = vector.shape_cast %287 : vector<64xf32> to vector<64x1xf32>
    %cst_233 = arith.constant dense<0.000000e+00> : vector<1xf32>
    %289 = vector.multi_reduction <add>, %288, %cst_233 [0] : vector<64x1xf32> to vector<1xf32>
    %290 = vector.shape_cast %289 : vector<1xf32> to vector<1x1xf32>
    %291 = vector.extract_strided_slice %257 {offsets = [0, 1], sizes = [1, 1], strides = [1, 1]} : vector<1x2xf32> to vector<1x1xf32>
    %292 = arith.addf %290, %291 : vector<1x1xf32>
    %c1_234 = arith.constant 1 : index
    %c1_235 = arith.constant 1 : index
    %293 = vector.load %arg11[%c1_234, %c1_235] : memref<2x2xf32, #tpu.memory_space<vmem>>, vector<1x1xf32>
    tpu.vector_store %arg11[%c1_234, %c1_235], %292 {strides = array<i32>} : memref<2x2xf32, #tpu.memory_space<vmem>>, vector<1x1xf32>,
    return
  }
}

</mosaic_0001>

<bundles_post_ra>
// kernel: model2_forward.1
= control target key start
LH: loop header
LB: loop body
LE: loop exit
PB: predicated region body
PF: predicated region fallthrough
CT: control target
= control target key end

     0   :  { %vm86_vm0 = vcmask 64512   ;;  %s7617_s0 = inlined_call_operand.vmem [shape: f32[512,8], index: 0, kind: input, shape index: {}]   ;;  %s7618_s1 = inlined_call_operand.vmem [shape: f32[8,32], index: 1, kind: input, shape index: {}]   ;;  %s7619_s2 = inlined_call_operand.vmem [shape: f32[1,32], index: 2, kind: input, shape index: {}]   ;;  %s7620_s3 = inlined_call_operand.vmem [shape: f32[128,64], index: 3, kind: input, shape index: {}]   ;;  %s7621_s4 = inlined_call_operand.vmem [shape: f32[1,64], index: 4, kind: input, shape index: {}]   ;;  %s7622_s5 = inlined_call_operand.vmem [shape: f32[256,128], index: 5, kind: input, shape index: {}]   ;;  %s7623_s6 = inlined_call_operand.vmem [shape: f32[1,128], index: 6, kind: input, shape index: {}]   ;;  %s7624_s7 = inlined_call_operand.vmem [shape: f32[512,128], index: 7, kind: input, shape index: {}]   ;;  %s7625_s8 = inlined_call_operand.vmem [shape: f32[1,128], index: 8, kind: input, shape index: {}]   ;;  %s7626_s9 = inlined_call_operand.vmem [shape: f32[128,128], index: 9, kind: input, shape index: {}]   ;;  %s7627_s10 = inlined_call_operand.vmem [shape: f32[1,2], index: 10, kind: input, shape index: {}]   ;;  %s7628_s11 = inlined_call_operand.hbm [shape: f32[2,2], index: 11, kind: output, shape index: {}]  }
   0x1   :  { %v53_v0 = vld [vmem:[%s7618_s1] sm:$0xff]  ;;  %v5250_v3 = vld [vmem:[%s7620_s3 + $0x58] sm:$0xff] }
   0x2   :  { %v54_v1 = vld [vmem:[%s7617_s0] sm:$0xff]  ;;  %198 = vmatpush.msra.mxu0 %v53_v0  ;;  %567 = vmatpush.msra.mxu1 %v53_v0  ;;  %v5255_v4 = vld [vmem:[%s7620_s3 + $0x78] sm:$0xff] }
   0x3   :  { %v424_v2 = vld [vmem:[%s7617_s0 + $0x100] sm:$0xff]  ;;  %4755 = vmatmul.msk.f32.vlgmr.msra.gmra.mxu0 %vm86_vm0, %v54_v1 }
   0x4   :  { %4787 = vmatmul.msk.f32.vlgmr.msra.gmra.mxu1 %vm86_vm0, %v424_v2  ;;  %1435 = vmatpush.msrb.mxu0 %v5250_v3 }
   0x5   :  { %1708 = vmatpush.msrb.mxu1 %v5255_v4 }
   0x6   :  { %16 = vsyncpa [#allocation8], 0  ;;  %v55_v5 = vld [vmem:[%s7617_s0 + $0x8] sm:$0xff]  ;;  %v56_v7 = vld [vmem:[%s7617_s0 + $0x10] sm:$0xff]  ;;  %vm39_vm1 = vcmask 261120   ;;  %s4746_s28 = sshll.u32 %s7628_s11, 4  ;;  %s4747_s28 = int_to_ptr.hbm [resolvable:$true] %s4746_s28 }
   0x7   :  { %v425_v6 = vld [vmem:[%s7617_s0 + $0x108] sm:$0xff]  ;;  %v426_v8 = vld [vmem:[%s7617_s0 + $0x110] sm:$0xff]  ;;  %v57_v9 = vld [vmem:[%s7617_s0 + $0x18] sm:$0xff] }
   0x8   :  { %v427_v10 = vld [vmem:[%s7617_s0 + $0x118] sm:$0xff]  ;;  %v58_v11 = vld [vmem:[%s7617_s0 + $0x20] sm:$0xff]  ;;  %v5296_v13 = vld [vmem:[%s7620_s3 + $0x50] sm:$0xff] }
   0x9   :  { %v428_v12 = vld [vmem:[%s7617_s0 + $0x120] sm:$0xff]  ;;  %v5301_v14 = vld [vmem:[%s7620_s3 + $0x70] sm:$0xff]  ;;  %1436 = vmatpush.msrb.mxu0 %v5296_v13  ;;  %v59_v15 = vld [vmem:[%s7617_s0 + $0x28] sm:$0xff] }
   0xa   :  { %1709 = vmatpush.msrb.mxu1 %v5301_v14  ;;  %v429_v16 = vld [vmem:[%s7617_s0 + $0x128] sm:$0xff]  ;;  %v60_v17 = vld [vmem:[%s7617_s0 + $0x30] sm:$0xff]  ;;  %v61_v19 = vld [vmem:[%s7617_s0 + $0x38] sm:$0xff] }
   0xb   :  { %4756 = vmatmul.msk.f32.gmra.mxu0 %vm86_vm0, %v55_v5  ;;  %v430_v18 = vld [vmem:[%s7617_s0 + $0x130] sm:$0xff]  ;;  %v431_v20 = vld [vmem:[%s7617_s0 + $0x138] sm:$0xff]  ;;  %v62_v21 = vld [vmem:[%s7617_s0 + $0x40] sm:$0xff] }
   0xc   :  { %4788 = vmatmul.msk.f32.gmra.mxu1 %vm86_vm0, %v425_v6  ;;  %v432_v22 = vld [vmem:[%s7617_s0 + $0x140] sm:$0xff]  ;;  %v63_v23 = vld [vmem:[%s7617_s0 + $0x48] sm:$0xff]  ;;  %v64_v25 = vld [vmem:[%s7617_s0 + $0x50] sm:$0xff] }
   0xd   :  { %v433_v24 = vld [vmem:[%s7617_s0 + $0x148] sm:$0xff]  ;;  %v434_v26 = vld [vmem:[%s7617_s0 + $0x150] sm:$0xff]  ;;  %v65_v27 = vld [vmem:[%s7617_s0 + $0x58] sm:$0xff] }
   0xe   :  { %v435_v28 = vld [vmem:[%s7617_s0 + $0x158] sm:$0xff]  ;;  %v66_v29 = vld [vmem:[%s7617_s0 + $0x60] sm:$0xff]  ;;  %v5372_v31 = vld [vmem:[%s7620_s3 + $0x48] sm:$0xff] }
   0xf   :  { %v436_v30 = vld [vmem:[%s7617_s0 + $0x160] sm:$0xff]  ;;  %v5377_v32 = vld [vmem:[%s7620_s3 + $0x68] sm:$0xff]  ;;  %v800_v33 = vld [vmem:[%s7620_s3 + $0x18] sm:$0xff]  ;;  %1437 = vmatpush.msrb.mxu0 %v5372_v31 }
  0x10   :  { %v67_v34 = vld [vmem:[%s7617_s0 + $0x68] sm:$0xff]  ;;  %1710 = vmatpush.msrb.mxu1 %v5377_v32  ;;  %1194 = vmatpush.msra.mxu3 %v800_v33  ;;  %v799_v36 = vld [vmem:[%s7620_s3 + $0x10] sm:$0xff]  ;;  %v797_v38 = vld [vmem:[%s7620_s3] sm:$0xff] }
  0x11   :  { %v437_v35 = vld [vmem:[%s7617_s0 + $0x168] sm:$0xff]  ;;  %v804_v39 = vld [vmem:[%s7620_s3 + $0x38] sm:$0xff]  ;;  %v68_v40 = vld [vmem:[%s7617_s0 + $0x70] sm:$0xff] }
  0x12   :  { %v798_v37 = vld [vmem:[%s7620_s3 + $0x8] sm:$0xff]  ;;  %1195 = vmatpush.msra.mxu3 %v799_v36  ;;  %v438_v41 = vld [vmem:[%s7617_s0 + $0x170] sm:$0xff]  ;;  %985 = vmatpush.msra.mxu2 %v804_v39  ;;  %v801_v44 = vld [vmem:[%s7620_s3 + $0x20] sm:$0xff] }
  0x13   :  { %4757 = vmatmul.msk.f32.gmra.mxu0 %vm86_vm0, %v56_v7  ;;  %v803_v42 = vld [vmem:[%s7620_s3 + $0x30] sm:$0xff]  ;;  %v802_v43 = vld [vmem:[%s7620_s3 + $0x28] sm:$0xff]  ;;  %v69_v45 = vld [vmem:[%s7617_s0 + $0x78] sm:$0xff] }
  0x14   :  { %4789 = vmatmul.msk.f32.gmra.mxu1 %vm86_vm0, %v426_v8  ;;  %1196 = vmatpush.msra.mxu3 %v798_v37  ;;  %v439_v46 = vld [vmem:[%s7617_s0 + $0x178] sm:$0xff]  ;;  %v5432_v47 = vld [vmem:[%s7619_s2] ss:$0 sm:$0xff]  ;;  %v71_v60 = vld [vmem:[%s7617_s0 + $0x88] sm:$0xff] }
  0x15   :  { %986 = vmatpush.msra.mxu2 %v803_v42  ;;  %v70_v50 = vld [vmem:[%s7617_s0 + $0x80] sm:$0xff]  ;;  %v441_v61 = vld [vmem:[%s7617_s0 + $0x188] sm:$0xff] }
  0x16   :  { %1197 = vmatpush.msra.mxu3 %v797_v38  ;;  %v440_v51 = vld [vmem:[%s7617_s0 + $0x180] sm:$0xff] }
  0x17   :  { %987 = vmatpush.msra.mxu2 %v802_v43 }
  0x18   :  { %2382 = vmatpush.msrb.mxu3 %v800_v33 }
  0x19   :  { %988 = vmatpush.msra.mxu2 %v801_v44 }
  0x1a   :  { %2383 = vmatpush.msrb.mxu3 %v799_v36 }
  0x1b   :  { %4758 = vmatmul.msk.f32.gmra.mxu0 %vm86_vm0, %v57_v9  ;;  %2173 = vmatpush.msrb.mxu2 %v804_v39  ;;  %v72_v9 = vld [vmem:[%s7617_s0 + $0x90] sm:$0xff] }
  0x1c   :  { %4790 = vmatmul.msk.f32.gmra.mxu1 %vm86_vm0, %v427_v10  ;;  %2384 = vmatpush.msrb.mxu3 %v798_v37  ;;  %v442_v10 = vld [vmem:[%s7617_s0 + $0x190] sm:$0xff]  ;;  %v74_v37 = vld [vmem:[%s7617_s0 + $0xa0] sm:$0xff] }
  0x1d   :  { %2174 = vmatpush.msrb.mxu2 %v803_v42 }
  0x1e   :  { %2385 = vmatpush.msrb.mxu3 %v797_v38  ;;  %v444_v38 = vld [vmem:[%s7617_s0 + $0x1a0] sm:$0xff] }
  0x1f   :  { %2175 = vmatpush.msrb.mxu2 %v802_v43 }
  0x21   :  { %2176 = vmatpush.msrb.mxu2 %v801_v44 }
  0x23   :  { %4759 = vmatmul.msk.f32.gmra.mxu0 %vm86_vm0, %v58_v11 }
  0x24   :  { %4791 = vmatmul.msk.f32.gmra.mxu1 %vm86_vm0, %v428_v12 }
  0x2b   :  { %4760 = vmatmul.msk.f32.gmra.mxu0 %vm86_vm0, %v59_v15 }
  0x2c   :  { %4792 = vmatmul.msk.f32.gmra.mxu1 %vm86_vm0, %v429_v16 }
  0x33   :  { %4761 = vmatmul.msk.f32.gmra.mxu0 %vm86_vm0, %v60_v17 }
  0x34   :  { %4793 = vmatmul.msk.f32.gmra.mxu1 %vm86_vm0, %v430_v18 }
  0x3b   :  { %4762 = vmatmul.msk.f32.gmra.mxu0 %vm86_vm0, %v61_v19 }
  0x3c   :  { %4794 = vmatmul.msk.f32.gmra.mxu1 %vm86_vm0, %v431_v20 }
  0x43   :  { %4763 = vmatmul.msk.f32.gmra.mxu0 %vm86_vm0, %v62_v21 }
  0x44   :  { %4795 = vmatmul.msk.f32.gmra.mxu1 %vm86_vm0, %v432_v22 }
  0x4b   :  { %4764 = vmatmul.msk.f32.gmra.mxu0 %vm86_vm0, %v63_v23  ;;  %v73_v23 = vld [vmem:[%s7617_s0 + $0x98] sm:$0xff] }
  0x4c   :  { %4796 = vmatmul.msk.f32.gmra.mxu1 %vm86_vm0, %v433_v24  ;;  %v443_v24 = vld [vmem:[%s7617_s0 + $0x198] sm:$0xff] }
  0x53   :  { %4765 = vmatmul.msk.f32.gmra.mxu0 %vm86_vm0, %v64_v25 }
  0x54   :  { %4797 = vmatmul.msk.f32.gmra.mxu1 %vm86_vm0, %v434_v26 }
  0x5b   :  { %4766 = vmatmul.msk.f32.gmra.mxu0 %vm86_vm0, %v65_v27 }
  0x5c   :  { %4798 = vmatmul.msk.f32.gmra.mxu1 %vm86_vm0, %v435_v28 }
  0x63   :  { %4767 = vmatmul.msk.f32.gmra.mxu0 %vm86_vm0, %v66_v29 }
  0x64   :  { %4799 = vmatmul.msk.f32.gmra.mxu1 %vm86_vm0, %v436_v30 }
  0x6b   :  { %4768 = vmatmul.msk.f32.gmra.mxu0 %vm86_vm0, %v67_v34 }
  0x6c   :  { %4800 = vmatmul.msk.f32.gmra.mxu1 %vm86_vm0, %v437_v35 }
  0x73   :  { %4769 = vmatmul.msk.f32.gmra.mxu0 %vm86_vm0, %v68_v40 }
  0x74   :  { %4801 = vmatmul.msk.f32.gmra.mxu1 %vm86_vm0, %v438_v41 }
  0x7b   :  { %4770 = vmatmul.msk.f32.gmra.mxu0 %vm86_vm0, %v69_v45 }
  0x7c   :  { %4802 = vmatmul.msk.f32.gmra.mxu1 %vm86_vm0, %v439_v46 }
  0x80   :  { %v200_v48 = vpop.f32.mrf.mxu0 }
  0x81   :  { %v569_v49 = vpop.f32.mrf.mxu1  ;;  %v201_v52 = vadd.f32 %v5432_v47, %v200_v48  ;;  %v805_v48 = vld [vmem:[%s7620_s3 + $0x40] sm:$0xff] }
  0x82   :  { %v570_v53 = vadd.f32 %v5432_v47, %v569_v49  ;;  %v809_v49 = vld [vmem:[%s7620_s3 + $0x60] sm:$0xff]  ;;  %1438 = vmatpush.msrb.mxu0 %v805_v48 }
  0x83   :  { %vm296_vm2 = vcmp.ge.f32.partialorder %v201_v52, 0.0  ;;  %v328_v54 = vmul.f32 0.01, %v201_v52  ;;  %4771 = vmatmul.msk.f32.gmra.mxu0 %vm86_vm0, %v70_v50  ;;  %1711 = vmatpush.msrb.mxu1 %v809_v49 }
  0x84   :  { %vm665_vm3 = vcmp.ge.f32.partialorder %v570_v53, 0.0  ;;  %v697_v55 = vmul.f32 0.01, %v570_v53  ;;  %4803 = vmatmul.msk.f32.gmra.mxu1 %vm86_vm0, %v440_v51  ;;  %2623 = vmatpush.msra.mxu0 %v5250_v3 }
  0x85   :  { %v360_v56 = vsel %vm296_vm2, %v201_v52, %v328_v54  ;;  %v75_v52 = vld [vmem:[%s7617_s0 + $0xa8] sm:$0xff]  ;;  %2896 = vmatpush.msra.mxu1 %v5255_v4 }
  0x86   :  { %v729_v57 = vsel %vm665_vm3, %v570_v53, %v697_v55  ;;  %392 = vst.msk [vmem:[#allocation2] sm:$0xff] %vm39_vm1, %v360_v56  ;;  %v445_v53 = vld [vmem:[%s7617_s0 + $0x1a8] sm:$0xff]  ;;  %2624 = vmatpush.msra.mxu0 %v5296_v13  ;;  %v76_v13 = vld [vmem:[%s7617_s0 + $0xb0] sm:$0xff] }
  0x87   :  { %761 = vst.msk [vmem:[#allocation2 + $0x100] sm:$0xff] %vm39_vm1, %v729_v57  ;;  %2897 = vmatpush.msra.mxu1 %v5301_v14  ;;  %v446_v14 = vld [vmem:[%s7617_s0 + $0x1b0] sm:$0xff] }
  0x88   :  { %v203_v58 = vpop.f32.mrf.mxu0  ;;  %2625 = vmatpush.msra.mxu0 %v5372_v31 }
  0x89   :  { %v572_v59 = vpop.f32.mrf.mxu1  ;;  %v204_v62 = vadd.f32 %v5432_v47, %v203_v58  ;;  %2898 = vmatpush.msra.mxu1 %v5377_v32 }
  0x8a   :  { %v573_v63 = vadd.f32 %v5432_v47, %v572_v59  ;;  %2626 = vmatpush.msra.mxu0 %v805_v48 }
  0x8b   :  { %vm297_vm4 = vcmp.ge.f32.partialorder %v204_v62, 0.0  ;;  %v329_v0 = vmul.f32 0.01, %v204_v62  ;;  %4772 = vmatmul.msk.f32.gmra.mxu0 %vm86_vm0, %v71_v60  ;;  %2899 = vmatpush.msra.mxu1 %v809_v49 }
  0x8c   :  { %vm666_vm5 = vcmp.ge.f32.partialorder %v573_v63, 0.0  ;;  %v698_v1 = vmul.f32 0.01, %v573_v63  ;;  %4804 = vmatmul.msk.f32.gmra.mxu1 %vm86_vm0, %v441_v61 }
  0x8d   :  { %v361_v2 = vsel %vm297_vm4, %v204_v62, %v329_v0  ;;  %v813_v6 = vld [vmem:[#allocation2] sm:$0xff] }
  0x8e   :  { %v730_v5 = vsel %vm666_vm5, %v573_v63, %v698_v1  ;;  %393 = vst.msk [vmem:[#allocation2 + $0x8] sm:$0xff] %vm39_vm1, %v361_v2  ;;  %4851 = vmatmul.msk.f32.vlgmr.msra.gmra.mxu3 %vm39_vm1, %v813_v6 }
  0x8f   :  { %762 = vst.msk [vmem:[#allocation2 + $0x108] sm:$0xff] %vm39_vm1, %v730_v5 }
  0x90   :  { %v206_v7 = vpop.f32.mrf.mxu0 }
  0x91   :  { %v575_v8 = vpop.f32.mrf.mxu1  ;;  %v207_v11 = vadd.f32 %v5432_v47, %v206_v7 }
  0x92   :  { %v576_v12 = vadd.f32 %v5432_v47, %v575_v8  ;;  %v77_v8 = vld [vmem:[%s7617_s0 + $0xb8] sm:$0xff] }
  0x93   :  { %vm298_vm6 = vcmp.ge.f32.partialorder %v207_v11, 0.0  ;;  %v330_v15 = vmul.f32 0.01, %v207_v11  ;;  %4773 = vmatmul.msk.f32.gmra.mxu0 %vm86_vm0, %v72_v9  ;;  %v447_v9 = vld [vmem:[%s7617_s0 + $0x1b8] sm:$0xff] }
  0x94   :  { %vm667_vm7 = vcmp.ge.f32.partialorder %v576_v12, 0.0  ;;  %v699_v16 = vmul.f32 0.01, %v576_v12  ;;  %4805 = vmatmul.msk.f32.gmra.mxu1 %vm86_vm0, %v442_v10 }
  0x95   :  { %v362_v17 = vsel %vm298_vm6, %v207_v11, %v330_v15  ;;  %v845_v19 = vld [vmem:[#allocation2 + $0x1] sm:$0xff] }
  0x96   :  { %v731_v18 = vsel %vm667_vm7, %v576_v12, %v699_v16  ;;  %v814_v20 = vld [vmem:[#allocation2 + $0x8] sm:$0xff]  ;;  %394 = vst.msk [vmem:[#allocation2 + $0x10] sm:$0xff] %vm39_vm1, %v362_v17  ;;  %4819 = vmatmul.msk.f32.vlgmr.msra.gmra.mxu2 %vm39_vm1, %v845_v19 }
  0x97   :  { %4852 = vmatmul.msk.f32.gmra.mxu3 %vm39_vm1, %v814_v20  ;;  %763 = vst.msk [vmem:[#allocation2 + $0x110] sm:$0xff] %vm39_vm1, %v731_v18 }
  0x98   :  { %v209_v21 = vpop.f32.mrf.mxu0 }
  0x99   :  { %v578_v22 = vpop.f32.mrf.mxu1  ;;  %v210_v25 = vadd.f32 %v5432_v47, %v209_v21 }
  0x9a   :  { %v579_v26 = vadd.f32 %v5432_v47, %v578_v22  ;;  %v78_v22 = vld [vmem:[%s7617_s0 + $0xc0] sm:$0xff] }
  0x9b   :  { %vm299_vm8 = vcmp.ge.f32.partialorder %v210_v25, 0.0  ;;  %v331_v27 = vmul.f32 0.01, %v210_v25  ;;  %4774 = vmatmul.msk.f32.gmra.mxu0 %vm86_vm0, %v73_v23  ;;  %v448_v23 = vld [vmem:[%s7617_s0 + $0x1c0] sm:$0xff] }
  0x9c   :  { %vm668_vm9 = vcmp.ge.f32.partialorder %v579_v26, 0.0  ;;  %v700_v28 = vmul.f32 0.01, %v579_v26  ;;  %4806 = vmatmul.msk.f32.gmra.mxu1 %vm86_vm0, %v443_v24 }
  0x9d   :  { %v363_v29 = vsel %vm299_vm8, %v210_v25, %v331_v27  ;;  %v846_v33 = vld [vmem:[#allocation2 + $0x9] sm:$0xff] }
  0x9e   :  { %v732_v30 = vsel %vm668_vm9, %v579_v26, %v700_v28  ;;  %v5483_v34 = vld [vmem:[#allocation2 + $0x10] sm:$0xff]  ;;  %395 = vst.msk [vmem:[#allocation2 + $0x18] sm:$0xff] %vm39_vm1, %v363_v29  ;;  %4820 = vmatmul.msk.f32.gmra.mxu2 %vm39_vm1, %v846_v33 }
  0x9f   :  { %4853 = vmatmul.msk.f32.gmra.mxu3 %vm39_vm1, %v5483_v34  ;;  %764 = vst.msk [vmem:[#allocation2 + $0x118] sm:$0xff] %vm39_vm1, %v732_v30 }
  0xa0   :  { %v212_v35 = vpop.f32.mrf.mxu0 }
  0xa1   :  { %v581_v36 = vpop.f32.mrf.mxu1  ;;  %v213_v39 = vadd.f32 %v5432_v47, %v212_v35 }
  0xa2   :  { %v582_v40 = vadd.f32 %v5432_v47, %v581_v36 }
  0xa3   :  { %vm300_vm10 = vcmp.ge.f32.partialorder %v213_v39, 0.0  ;;  %v332_v41 = vmul.f32 0.01, %v213_v39  ;;  %4775 = vmatmul.msk.f32.gmra.mxu0 %vm86_vm0, %v74_v37  ;;  %v79_v37 = vld [vmem:[%s7617_s0 + $0xc8] sm:$0xff] }
  0xa4   :  { %vm669_vm11 = vcmp.ge.f32.partialorder %v582_v40, 0.0  ;;  %v701_v42 = vmul.f32 0.01, %v582_v40  ;;  %4807 = vmatmul.msk.f32.gmra.mxu1 %vm86_vm0, %v444_v38  ;;  %v449_v38 = vld [vmem:[%s7617_s0 + $0x1c8] sm:$0xff] }
  0xa5   :  { %v364_v43 = vsel %vm300_vm10, %v213_v39, %v332_v41  ;;  %v5500_v45 = vld [vmem:[#allocation2 + $0x11] sm:$0xff] }
  0xa6   :  { %v733_v44 = vsel %vm669_vm11, %v582_v40, %v701_v42  ;;  %v5502_v46 = vld [vmem:[#allocation2 + $0x18] sm:$0xff]  ;;  %396 = vst.msk [vmem:[#allocation2 + $0x20] sm:$0xff] %vm39_vm1, %v364_v43  ;;  %4821 = vmatmul.msk.f32.gmra.mxu2 %vm39_vm1, %v5500_v45 }
  0xa7   :  { %4854 = vmatmul.msk.f32.gmra.mxu3 %vm39_vm1, %v5502_v46  ;;  %765 = vst.msk [vmem:[#allocation2 + $0x120] sm:$0xff] %vm39_vm1, %v733_v44 }
  0xa8   :  { %v215_v50 = vpop.f32.mrf.mxu0 }
  0xa9   :  { %v584_v51 = vpop.f32.mrf.mxu1  ;;  %v216_v54 = vadd.f32 %v5432_v47, %v215_v50 }
  0xaa   :  { %v585_v55 = vadd.f32 %v5432_v47, %v584_v51 }
  0xab   :  { %vm301_vm12 = vcmp.ge.f32.partialorder %v216_v54, 0.0  ;;  %v333_v56 = vmul.f32 0.01, %v216_v54  ;;  %4776 = vmatmul.msk.f32.gmra.mxu0 %vm86_vm0, %v75_v52  ;;  %v80_v52 = vld [vmem:[%s7617_s0 + $0xd0] sm:$0xff] }
  0xac   :  { %vm670_vm13 = vcmp.ge.f32.partialorder %v585_v55, 0.0  ;;  %v702_v57 = vmul.f32 0.01, %v585_v55  ;;  %4808 = vmatmul.msk.f32.gmra.mxu1 %vm86_vm0, %v445_v53  ;;  %v450_v53 = vld [vmem:[%s7617_s0 + $0x1d0] sm:$0xff] }
  0xad   :  { %v365_v58 = vsel %vm301_vm12, %v216_v54, %v333_v56  ;;  %v5530_v60 = vld [vmem:[#allocation2 + $0x19] sm:$0xff] }
  0xae   :  { %v734_v59 = vsel %vm670_vm13, %v585_v55, %v702_v57  ;;  %v5532_v61 = vld [vmem:[#allocation2 + $0x20] sm:$0xff]  ;;  %397 = vst.msk [vmem:[#allocation2 + $0x28] sm:$0xff] %vm39_vm1, %v365_v58  ;;  %4822 = vmatmul.msk.f32.gmra.mxu2 %vm39_vm1, %v5530_v60 }
  0xaf   :  { %4855 = vmatmul.msk.f32.gmra.mxu3 %vm39_vm1, %v5532_v61  ;;  %766 = vst.msk [vmem:[#allocation2 + $0x128] sm:$0xff] %vm39_vm1, %v734_v59 }
  0xb0   :  { %v218_v3 = vpop.f32.mrf.mxu0 }
  0xb1   :  { %v587_v4 = vpop.f32.mrf.mxu1  ;;  %v219_v62 = vadd.f32 %v5432_v47, %v218_v3 }
  0xb2   :  { %v588_v63 = vadd.f32 %v5432_v47, %v587_v4 }
  0xb3   :  { %vm302_vm14 = vcmp.ge.f32.partialorder %v219_v62, 0.0  ;;  %v334_v31 = vmul.f32 0.01, %v219_v62  ;;  %4777 = vmatmul.msk.f32.gmra.mxu0 %vm86_vm0, %v76_v13 }
  0xb4   :  { %vm671_vm15 = vcmp.ge.f32.partialorder %v588_v63, 0.0  ;;  %v703_v32 = vmul.f32 0.01, %v588_v63  ;;  %4809 = vmatmul.msk.f32.gmra.mxu1 %vm86_vm0, %v446_v14 }
  0xb5   :  { %v366_v0 = vsel %vm302_vm14, %v219_v62, %v334_v31  ;;  %v5552_v2 = vld [vmem:[#allocation2 + $0x21] sm:$0xff]  ;;  %v81_v62 = vld [vmem:[%s7617_s0 + $0xd8] sm:$0xff] }
  0xb6   :  { %v735_v1 = vsel %vm671_vm15, %v588_v63, %v703_v32  ;;  %v5554_v5 = vld [vmem:[#allocation2 + $0x28] sm:$0xff]  ;;  %398 = vst.msk [vmem:[#allocation2 + $0x30] sm:$0xff] %vm39_vm1, %v366_v0  ;;  %4823 = vmatmul.msk.f32.gmra.mxu2 %vm39_vm1, %v5552_v2  ;;  %v451_v63 = vld [vmem:[%s7617_s0 + $0x1d8] sm:$0xff] }
  0xb7   :  { %4856 = vmatmul.msk.f32.gmra.mxu3 %vm39_vm1, %v5554_v5  ;;  %767 = vst.msk [vmem:[#allocation2 + $0x130] sm:$0xff] %vm39_vm1, %v735_v1 }
  0xb8   :  { %v221_v6 = vpop.f32.mrf.mxu0 }
  0xb9   :  { %v590_v7 = vpop.f32.mrf.mxu1  ;;  %v222_v10 = vadd.f32 %v5432_v47, %v221_v6 }
  0xba   :  { %v591_v11 = vadd.f32 %v5432_v47, %v590_v7 }
  0xbb   :  { %vm303_vm2 = vcmp.ge.f32.partialorder %v222_v10, 0.0  ;;  %v335_v12 = vmul.f32 0.01, %v222_v10  ;;  %4778 = vmatmul.msk.f32.gmra.mxu0 %vm86_vm0, %v77_v8 }
  0xbc   :  { %vm672_vm3 = vcmp.ge.f32.partialorder %v591_v11, 0.0  ;;  %v704_v15 = vmul.f32 0.01, %v591_v11  ;;  %4810 = vmatmul.msk.f32.gmra.mxu1 %vm86_vm0, %v447_v9 }
  0xbd   :  { %v367_v16 = vsel %vm303_vm2, %v222_v10, %v335_v12  ;;  %v5572_v18 = vld [vmem:[#allocation2 + $0x29] sm:$0xff]  ;;  %v82_v12 = vld [vmem:[%s7617_s0 + $0xe0] sm:$0xff] }
  0xbe   :  { %v736_v17 = vsel %vm672_vm3, %v591_v11, %v704_v15  ;;  %v5574_v19 = vld [vmem:[#allocation2 + $0x30] sm:$0xff]  ;;  %399 = vst.msk [vmem:[#allocation2 + $0x38] sm:$0xff] %vm39_vm1, %v367_v16  ;;  %4824 = vmatmul.msk.f32.gmra.mxu2 %vm39_vm1, %v5572_v18  ;;  %v452_v15 = vld [vmem:[%s7617_s0 + $0x1e0] sm:$0xff] }
  0xbf   :  { %4857 = vmatmul.msk.f32.gmra.mxu3 %vm39_vm1, %v5574_v19  ;;  %768 = vst.msk [vmem:[#allocation2 + $0x138] sm:$0xff] %vm39_vm1, %v736_v17 }
  0xc0   :  { %v224_v20 = vpop.f32.mrf.mxu0 }
  0xc1   :  { %v593_v21 = vpop.f32.mrf.mxu1  ;;  %v225_v24 = vadd.f32 %v5432_v47, %v224_v20 }
  0xc2   :  { %v594_v25 = vadd.f32 %v5432_v47, %v593_v21 }
  0xc3   :  { %vm304_vm4 = vcmp.ge.f32.partialorder %v225_v24, 0.0  ;;  %v336_v26 = vmul.f32 0.01, %v225_v24  ;;  %4779 = vmatmul.msk.f32.gmra.mxu0 %vm86_vm0, %v78_v22 }
  0xc4   :  { %vm673_vm5 = vcmp.ge.f32.partialorder %v594_v25, 0.0  ;;  %v705_v27 = vmul.f32 0.01, %v594_v25  ;;  %4811 = vmatmul.msk.f32.gmra.mxu1 %vm86_vm0, %v448_v23 }
  0xc5   :  { %v368_v28 = vsel %vm304_vm4, %v225_v24, %v336_v26  ;;  %v5592_v30 = vld [vmem:[#allocation2 + $0x31] sm:$0xff] }
  0xc6   :  { %v737_v29 = vsel %vm673_vm5, %v594_v25, %v705_v27  ;;  %v5594_v33 = vld [vmem:[#allocation2 + $0x38] sm:$0xff]  ;;  %400 = vst.msk [vmem:[#allocation2 + $0x40] sm:$0xff] %vm39_vm1, %v368_v28  ;;  %4825 = vmatmul.msk.f32.gmra.mxu2 %vm39_vm1, %v5592_v30  ;;  %v83_v28 = vld [vmem:[%s7617_s0 + $0xe8] sm:$0xff] }
  0xc7   :  { %4858 = vmatmul.msk.f32.gmra.mxu3 %vm39_vm1, %v5594_v33  ;;  %769 = vst.msk [vmem:[#allocation2 + $0x140] sm:$0xff] %vm39_vm1, %v737_v29  ;;  %v453_v29 = vld [vmem:[%s7617_s0 + $0x1e8] sm:$0xff] }
  0xc8   :  { %v227_v35 = vpop.f32.mrf.mxu0 }
  0xc9   :  { %v596_v36 = vpop.f32.mrf.mxu1  ;;  %v228_v39 = vadd.f32 %v5432_v47, %v227_v35 }
  0xca   :  { %v597_v40 = vadd.f32 %v5432_v47, %v596_v36 }
  0xcb   :  { %vm305_vm6 = vcmp.ge.f32.partialorder %v228_v39, 0.0  ;;  %v337_v41 = vmul.f32 0.01, %v228_v39  ;;  %4780 = vmatmul.msk.f32.gmra.mxu0 %vm86_vm0, %v79_v37 }
  0xcc   :  { %vm674_vm7 = vcmp.ge.f32.partialorder %v597_v40, 0.0  ;;  %v706_v42 = vmul.f32 0.01, %v597_v40  ;;  %4812 = vmatmul.msk.f32.gmra.mxu1 %vm86_vm0, %v449_v38 }
  0xcd   :  { %v369_v43 = vsel %vm305_vm6, %v228_v39, %v337_v41  ;;  %v5612_v48 = vld [vmem:[#allocation2 + $0x39] sm:$0xff] }
  0xce   :  { %v738_v44 = vsel %vm674_vm7, %v597_v40, %v706_v42  ;;  %v5614_v49 = vld [vmem:[#allocation2 + $0x40] sm:$0xff]  ;;  %401 = vst.msk [vmem:[#allocation2 + $0x48] sm:$0xff] %vm39_vm1, %v369_v43  ;;  %4826 = vmatmul.msk.f32.gmra.mxu2 %vm39_vm1, %v5612_v48 }
  0xcf   :  { %4859 = vmatmul.msk.f32.gmra.mxu3 %vm39_vm1, %v5614_v49  ;;  %770 = vst.msk [vmem:[#allocation2 + $0x148] sm:$0xff] %vm39_vm1, %v738_v44 }
  0xd0   :  { %v230_v50 = vpop.f32.mrf.mxu0 }
  0xd1   :  { %v599_v51 = vpop.f32.mrf.mxu1  ;;  %v231_v54 = vadd.f32 %v5432_v47, %v230_v50  ;;  %v84_v50 = vld [vmem:[%s7617_s0 + $0xf0] sm:$0xff] }
  0xd2   :  { %v600_v55 = vadd.f32 %v5432_v47, %v599_v51  ;;  %v454_v51 = vld [vmem:[%s7617_s0 + $0x1f0] sm:$0xff] }
  0xd3   :  { %vm306_vm8 = vcmp.ge.f32.partialorder %v231_v54, 0.0  ;;  %v338_v56 = vmul.f32 0.01, %v231_v54  ;;  %4781 = vmatmul.msk.f32.gmra.mxu0 %vm86_vm0, %v80_v52 }
  0xd4   :  { %vm675_vm9 = vcmp.ge.f32.partialorder %v600_v55, 0.0  ;;  %v707_v57 = vmul.f32 0.01, %v600_v55  ;;  %4813 = vmatmul.msk.f32.gmra.mxu1 %vm86_vm0, %v450_v53 }
  0xd5   :  { %v370_v58 = vsel %vm306_vm8, %v231_v54, %v338_v56  ;;  %v5632_v3 = vld [vmem:[#allocation2 + $0x41] sm:$0xff] }
  0xd6   :  { %v739_v59 = vsel %vm675_vm9, %v600_v55, %v707_v57  ;;  %v5634_v4 = vld [vmem:[#allocation2 + $0x48] sm:$0xff]  ;;  %402 = vst.msk [vmem:[#allocation2 + $0x50] sm:$0xff] %vm39_vm1, %v370_v58  ;;  %4827 = vmatmul.msk.f32.gmra.mxu2 %vm39_vm1, %v5632_v3 }
  0xd7   :  { %4860 = vmatmul.msk.f32.gmra.mxu3 %vm39_vm1, %v5634_v4  ;;  %771 = vst.msk [vmem:[#allocation2 + $0x150] sm:$0xff] %vm39_vm1, %v739_v59 }
  0xd8   :  { %v233_v13 = vpop.f32.mrf.mxu0 }
  0xd9   :  { %v602_v14 = vpop.f32.mrf.mxu1  ;;  %v234_v31 = vadd.f32 %v5432_v47, %v233_v13 }
  0xda   :  { %v603_v32 = vadd.f32 %v5432_v47, %v602_v14 }
  0xdb   :  { %vm307_vm10 = vcmp.ge.f32.partialorder %v234_v31, 0.0  ;;  %v339_v0 = vmul.f32 0.01, %v234_v31  ;;  %4782 = vmatmul.msk.f32.gmra.mxu0 %vm86_vm0, %v81_v62  ;;  %v85_v62 = vld [vmem:[%s7617_s0 + $0xf8] sm:$0xff] }
  0xdc   :  { %vm676_vm11 = vcmp.ge.f32.partialorder %v603_v32, 0.0  ;;  %v708_v1 = vmul.f32 0.01, %v603_v32  ;;  %4814 = vmatmul.msk.f32.gmra.mxu1 %vm86_vm0, %v451_v63  ;;  %v455_v63 = vld [vmem:[%s7617_s0 + $0x1f8] sm:$0xff] }
  0xdd   :  { %v371_v6 = vsel %vm307_vm10, %v234_v31, %v339_v0  ;;  %v5652_v8 = vld [vmem:[#allocation2 + $0x49] sm:$0xff] }
  0xde   :  { %v740_v7 = vsel %vm676_vm11, %v603_v32, %v708_v1  ;;  %v5654_v9 = vld [vmem:[#allocation2 + $0x50] sm:$0xff]  ;;  %403 = vst.msk [vmem:[#allocation2 + $0x58] sm:$0xff] %vm39_vm1, %v371_v6  ;;  %4828 = vmatmul.msk.f32.gmra.mxu2 %vm39_vm1, %v5652_v8 }
  0xdf   :  { %4861 = vmatmul.msk.f32.gmra.mxu3 %vm39_vm1, %v5654_v9  ;;  %772 = vst.msk [vmem:[#allocation2 + $0x158] sm:$0xff] %vm39_vm1, %v740_v7 }
  0xe0   :  { %v236_v10 = vpop.f32.mrf.mxu0 }
  0xe1   :  { %v605_v11 = vpop.f32.mrf.mxu1  ;;  %v237_v16 = vadd.f32 %v5432_v47, %v236_v10 }
  0xe2   :  { %v606_v17 = vadd.f32 %v5432_v47, %v605_v11 }
  0xe3   :  { %vm308_vm12 = vcmp.ge.f32.partialorder %v237_v16, 0.0  ;;  %v340_v20 = vmul.f32 0.01, %v237_v16  ;;  %4783 = vmatmul.msk.f32.gmra.mxu0 %vm86_vm0, %v82_v12 }
  0xe4   :  { %vm677_vm13 = vcmp.ge.f32.partialorder %v606_v17, 0.0  ;;  %v709_v21 = vmul.f32 0.01, %v606_v17  ;;  %4815 = vmatmul.msk.f32.gmra.mxu1 %vm86_vm0, %v452_v15 }
  0xe5   :  { %v372_v22 = vsel %vm308_vm12, %v237_v16, %v340_v20  ;;  %v5672_v24 = vld [vmem:[#allocation2 + $0x51] sm:$0xff] }
  0xe6   :  { %v741_v23 = vsel %vm677_vm13, %v606_v17, %v709_v21  ;;  %v5674_v25 = vld [vmem:[#allocation2 + $0x58] sm:$0xff]  ;;  %404 = vst.msk [vmem:[#allocation2 + $0x60] sm:$0xff] %vm39_vm1, %v372_v22  ;;  %4829 = vmatmul.msk.f32.gmra.mxu2 %vm39_vm1, %v5672_v24 }
  0xe7   :  { %4862 = vmatmul.msk.f32.gmra.mxu3 %vm39_vm1, %v5674_v25  ;;  %773 = vst.msk [vmem:[#allocation2 + $0x160] sm:$0xff] %vm39_vm1, %v741_v23 }
  0xe8   :  { %v239_v26 = vpop.f32.mrf.mxu0 }
  0xe9   :  { %v608_v27 = vpop.f32.mrf.mxu1  ;;  %v240_v35 = vadd.f32 %v5432_v47, %v239_v26 }
  0xea   :  { %v609_v36 = vadd.f32 %v5432_v47, %v608_v27 }
  0xeb   :  { %vm309_vm14 = vcmp.ge.f32.partialorder %v240_v35, 0.0  ;;  %v341_v37 = vmul.f32 0.01, %v240_v35  ;;  %4784 = vmatmul.msk.f32.gmra.mxu0 %vm86_vm0, %v83_v28 }
  0xec   :  { %vm678_vm15 = vcmp.ge.f32.partialorder %v609_v36, 0.0  ;;  %v710_v38 = vmul.f32 0.01, %v609_v36  ;;  %4816 = vmatmul.msk.f32.gmra.mxu1 %vm86_vm0, %v453_v29 }
  0xed   :  { %v373_v39 = vsel %vm309_vm14, %v240_v35, %v341_v37  ;;  %v5692_v41 = vld [vmem:[#allocation2 + $0x59] sm:$0xff] }
  0xee   :  { %v742_v40 = vsel %vm678_vm15, %v609_v36, %v710_v38  ;;  %v5694_v42 = vld [vmem:[#allocation2 + $0x60] sm:$0xff]  ;;  %405 = vst.msk [vmem:[#allocation2 + $0x68] sm:$0xff] %vm39_vm1, %v373_v39  ;;  %4830 = vmatmul.msk.f32.gmra.mxu2 %vm39_vm1, %v5692_v41 }
  0xef   :  { %4863 = vmatmul.msk.f32.gmra.mxu3 %vm39_vm1, %v5694_v42  ;;  %774 = vst.msk [vmem:[#allocation2 + $0x168] sm:$0xff] %vm39_vm1, %v742_v40 }
  0xf0   :  { %v242_v43 = vpop.f32.mrf.mxu0 }
  0xf1   :  { %v611_v44 = vpop.f32.mrf.mxu1  ;;  %v243_v52 = vadd.f32 %v5432_v47, %v242_v43 }
  0xf2   :  { %v612_v53 = vadd.f32 %v5432_v47, %v611_v44 }
  0xf3   :  { %vm310_vm2 = vcmp.ge.f32.partialorder %v243_v52, 0.0  ;;  %v342_v54 = vmul.f32 0.01, %v243_v52  ;;  %4785 = vmatmul.msk.f32.gmra.mxu0 %vm86_vm0, %v84_v50 }
  0xf4   :  { %vm679_vm3 = vcmp.ge.f32.partialorder %v612_v53, 0.0  ;;  %v711_v55 = vmul.f32 0.01, %v612_v53  ;;  %4817 = vmatmul.msk.f32.gmra.mxu1 %vm86_vm0, %v454_v51 }
  0xf5   :  { %v374_v56 = vsel %vm310_vm2, %v243_v52, %v342_v54  ;;  %v5712_v58 = vld [vmem:[#allocation2 + $0x61] sm:$0xff] }
  0xf6   :  { %v743_v57 = vsel %vm679_vm3, %v612_v53, %v711_v55  ;;  %v5714_v59 = vld [vmem:[#allocation2 + $0x68] sm:$0xff]  ;;  %406 = vst.msk [vmem:[#allocation2 + $0x70] sm:$0xff] %vm39_vm1, %v374_v56  ;;  %4831 = vmatmul.msk.f32.gmra.mxu2 %vm39_vm1, %v5712_v58 }
  0xf7   :  { %4864 = vmatmul.msk.f32.gmra.mxu3 %vm39_vm1, %v5714_v59  ;;  %775 = vst.msk [vmem:[#allocation2 + $0x170] sm:$0xff] %vm39_vm1, %v743_v57 }
  0xf8   :  { %v245_v13 = vpop.f32.mrf.mxu0 }
  0xf9   :  { %v614_v14 = vpop.f32.mrf.mxu1  ;;  %v246_v31 = vadd.f32 %v5432_v47, %v245_v13 }
  0xfa   :  { %v615_v32 = vadd.f32 %v5432_v47, %v614_v14 }
  0xfb   :  { %vm311_vm4 = vcmp.ge.f32.partialorder %v246_v31, 0.0  ;;  %v343_v0 = vmul.f32 0.01, %v246_v31  ;;  %4786 = vmatmul.msk.f32.gmra.mxu0 %vm86_vm0, %v85_v62 }
  0xfc   :  { %vm680_vm5 = vcmp.ge.f32.partialorder %v615_v32, 0.0  ;;  %v712_v1 = vmul.f32 0.01, %v615_v32  ;;  %4818 = vmatmul.msk.f32.gmra.mxu1 %vm86_vm0, %v455_v63 }
  0xfd   :  { %v375_v6 = vsel %vm311_vm4, %v246_v31, %v343_v0  ;;  %v5732_v10 = vld [vmem:[#allocation2 + $0x69] sm:$0xff] }
  0xfe   :  { %v744_v7 = vsel %vm680_vm5, %v615_v32, %v712_v1  ;;  %v5734_v11 = vld [vmem:[#allocation2 + $0x70] sm:$0xff]  ;;  %407 = vst.msk [vmem:[#allocation2 + $0x78] sm:$0xff] %vm39_vm1, %v375_v6  ;;  %4832 = vmatmul.msk.f32.gmra.mxu2 %vm39_vm1, %v5732_v10 }
  0xff   :  { %4865 = vmatmul.msk.f32.gmra.mxu3 %vm39_vm1, %v5734_v11  ;;  %776 = vst.msk [vmem:[#allocation2 + $0x178] sm:$0xff] %vm39_vm1, %v744_v7 }
 0x100   :  { %v248_v12 = vpop.f32.mrf.mxu0 }
 0x101   :  { %v617_v15 = vpop.f32.mrf.mxu1  ;;  %v249_v16 = vadd.f32 %v5432_v47, %v248_v12 }
 0x102   :  { %v618_v17 = vadd.f32 %v5432_v47, %v617_v15 }
 0x103   :  { %vm312_vm0 = vcmp.ge.f32.partialorder %v249_v16, 0.0  ;;  %v344_v20 = vmul.f32 0.01, %v249_v16  ;;  %4883 = vmatmul.msk.f32.vlgmr.msrb.gmra.mxu0 %vm39_vm1, %v5483_v34 }
 0x104   :  { %vm681_vm6 = vcmp.ge.f32.partialorder %v618_v17, 0.0  ;;  %v713_v21 = vmul.f32 0.01, %v618_v17  ;;  %4915 = vmatmul.msk.f32.vlgmr.msrb.gmra.mxu1 %vm39_vm1, %v5500_v45 }
 0x105   :  { %v376_v22 = vsel %vm312_vm0, %v249_v16, %v344_v20  ;;  %v5748_v26 = vld [vmem:[#allocation2 + $0x71] sm:$0xff] }
 0x106   :  { %v745_v23 = vsel %vm681_vm6, %v618_v17, %v713_v21  ;;  %v5750_v27 = vld [vmem:[#allocation2 + $0x78] sm:$0xff]  ;;  %408 = vst.msk [vmem:[#allocation2 + $0x80] sm:$0xff] %vm39_vm1, %v376_v22  ;;  %4833 = vmatmul.msk.f32.gmra.mxu2 %vm39_vm1, %v5748_v26 }
 0x107   :  { %4866 = vmatmul.msk.f32.gmra.mxu3 %vm39_vm1, %v5750_v27  ;;  %777 = vst.msk [vmem:[#allocation2 + $0x180] sm:$0xff] %vm39_vm1, %v745_v23 }
 0x108   :  { %v251_v34 = vpop.f32.mrf.mxu0 }
 0x109   :  { %v620_v28 = vpop.f32.mrf.mxu1  ;;  %v252_v45 = vadd.f32 %v5432_v47, %v251_v34 }
 0x10a   :  { %v621_v29 = vadd.f32 %v5432_v47, %v620_v28 }
 0x10b   :  { %vm313_vm7 = vcmp.ge.f32.partialorder %v252_v45, 0.0  ;;  %v345_v35 = vmul.f32 0.01, %v252_v45  ;;  %4884 = vmatmul.msk.f32.gmra.mxu0 %vm39_vm1, %v5502_v46 }
 0x10c   :  { %vm682_vm8 = vcmp.ge.f32.partialorder %v621_v29, 0.0  ;;  %v714_v36 = vmul.f32 0.01, %v621_v29  ;;  %4916 = vmatmul.msk.f32.gmra.mxu1 %vm39_vm1, %v5530_v60 }
 0x10d   :  { %v377_v37 = vsel %vm313_vm7, %v252_v45, %v345_v35  ;;  %v5764_v39 = vld [vmem:[#allocation2 + $0x79] sm:$0xff] }
 0x10e   :  { %v746_v38 = vsel %vm682_vm8, %v621_v29, %v714_v36  ;;  %v5766_v40 = vld [vmem:[#allocation2 + $0x80] sm:$0xff]  ;;  %409 = vst.msk [vmem:[#allocation2 + $0x88] sm:$0xff] %vm39_vm1, %v377_v37  ;;  %4834 = vmatmul.msk.f32.gmra.mxu2 %vm39_vm1, %v5764_v39 }
 0x10f   :  { %4867 = vmatmul.msk.f32.gmra.mxu3 %vm39_vm1, %v5766_v40  ;;  %778 = vst.msk [vmem:[#allocation2 + $0x188] sm:$0xff] %vm39_vm1, %v746_v38 }
 0x110   :  { %v254_v46 = vpop.f32.mrf.mxu0 }
 0x111   :  { %v623_v43 = vpop.f32.mrf.mxu1  ;;  %v255_v60 = vadd.f32 %v5432_v47, %v254_v46  ;;  %v5776_v50 = vpop.f32.mrf.mxu3 }
 0x112   :  { %v624_v44 = vadd.f32 %v5432_v47, %v623_v43 }
 0x113   :  { %vm314_vm9 = vcmp.ge.f32.partialorder %v255_v60, 0.0  ;;  %v346_v51 = vmul.f32 0.01, %v255_v60  ;;  %4885 = vmatmul.msk.f32.gmra.mxu0 %vm39_vm1, %v5532_v61 }
 0x114   :  { %vm683_vm10 = vcmp.ge.f32.partialorder %v624_v44, 0.0  ;;  %v715_v52 = vmul.f32 0.01, %v624_v44  ;;  %4917 = vmatmul.msk.f32.gmra.mxu1 %vm39_vm1, %v5552_v2 }
 0x115   :  { %v378_v53 = vsel %vm314_vm9, %v255_v60, %v346_v51  ;;  %v5782_v55 = vld [vmem:[#allocation2 + $0x81] sm:$0xff] }
 0x116   :  { %v747_v54 = vsel %vm683_vm10, %v624_v44, %v715_v52  ;;  %v5784_v56 = vld [vmem:[#allocation2 + $0x88] sm:$0xff]  ;;  %410 = vst.msk [vmem:[#allocation2 + $0x90] sm:$0xff] %vm39_vm1, %v378_v53  ;;  %4835 = vmatmul.msk.f32.gmra.mxu2 %vm39_vm1, %v5782_v55 }
 0x117   :  { %4868 = vmatmul.msk.f32.gmra.mxu3 %vm39_vm1, %v5784_v56  ;;  %779 = vst.msk [vmem:[#allocation2 + $0x190] sm:$0xff] %vm39_vm1, %v747_v54 }
 0x118   :  { %v257_v61 = vpop.f32.mrf.mxu0 }
 0x119   :  { %v626_v57 = vpop.f32.mrf.mxu1  ;;  %v258_v2 = vadd.f32 %v5432_v47, %v257_v61  ;;  %v5794_v14 = vpop.f32.mrf.mxu2 }
 0x11a   :  { %v627_v13 = vadd.f32 %v5432_v47, %v626_v57  ;;  %v5796_v62 = vpop.f32.mrf.mxu3 }
 0x11b   :  { %vm315_vm11 = vcmp.ge.f32.partialorder %v258_v2, 0.0  ;;  %v347_v63 = vmul.f32 0.01, %v258_v2  ;;  %4886 = vmatmul.msk.f32.gmra.mxu0 %vm39_vm1, %v5554_v5 }
 0x11c   :  { %vm684_vm12 = vcmp.ge.f32.partialorder %v627_v13, 0.0  ;;  %v716_v31 = vmul.f32 0.01, %v627_v13  ;;  %4918 = vmatmul.msk.f32.gmra.mxu1 %vm39_vm1, %v5572_v18 }
 0x11d   :  { %v379_v32 = vsel %vm315_vm11, %v258_v2, %v347_v63  ;;  %v5802_v1 = vld [vmem:[#allocation2 + $0x89] sm:$0xff] }
 0x11e   :  { %v748_v0 = vsel %vm684_vm12, %v627_v13, %v716_v31  ;;  %v5804_v6 = vld [vmem:[#allocation2 + $0x90] sm:$0xff]  ;;  %411 = vst.msk [vmem:[#allocation2 + $0x98] sm:$0xff] %vm39_vm1, %v379_v32  ;;  %4836 = vmatmul.msk.f32.gmra.mxu2 %vm39_vm1, %v5802_v1 }
 0x11f   :  { %4869 = vmatmul.msk.f32.gmra.mxu3 %vm39_vm1, %v5804_v6  ;;  %780 = vst.msk [vmem:[#allocation2 + $0x198] sm:$0xff] %vm39_vm1, %v748_v0 }
 0x120   :  { %v260_v5 = vpop.f32.mrf.mxu0 }
 0x121   :  { %v629_v7 = vpop.f32.mrf.mxu1  ;;  %v261_v18 = vadd.f32 %v5432_v47, %v260_v5  ;;  %v5814_v15 = vpop.f32.mrf.mxu2 }
 0x122   :  { %v630_v12 = vadd.f32 %v5432_v47, %v629_v7  ;;  %v5816_v16 = vpop.f32.mrf.mxu3 }
 0x123   :  { %vm316_vm13 = vcmp.ge.f32.partialorder %v261_v18, 0.0  ;;  %v348_v17 = vmul.f32 0.01, %v261_v18  ;;  %4887 = vmatmul.msk.f32.gmra.mxu0 %vm39_vm1, %v5574_v19 }
 0x124   :  { %vm685_vm14 = vcmp.ge.f32.partialorder %v630_v12, 0.0  ;;  %v717_v20 = vmul.f32 0.01, %v630_v12  ;;  %4919 = vmatmul.msk.f32.gmra.mxu1 %vm39_vm1, %v5592_v30 }
 0x125   :  { %v380_v21 = vsel %vm316_vm13, %v261_v18, %v348_v17  ;;  %v5822_v23 = vld [vmem:[#allocation2 + $0x91] sm:$0xff] }
 0x126   :  { %v749_v22 = vsel %vm685_vm14, %v630_v12, %v717_v20  ;;  %v5824_v34 = vld [vmem:[#allocation2 + $0x98] sm:$0xff]  ;;  %412 = vst.msk [vmem:[#allocation2 + $0xa0] sm:$0xff] %vm39_vm1, %v380_v21  ;;  %4837 = vmatmul.msk.f32.gmra.mxu2 %vm39_vm1, %v5822_v23 }
 0x127   :  { %4870 = vmatmul.msk.f32.gmra.mxu3 %vm39_vm1, %v5824_v34  ;;  %781 = vst.msk [vmem:[#allocation2 + $0x1a0] sm:$0xff] %vm39_vm1, %v749_v22 }
 0x128   :  { %v263_v19 = vpop.f32.mrf.mxu0 }
 0x129   :  { %v632_v28 = vpop.f32.mrf.mxu1  ;;  %v264_v30 = vadd.f32 %v5432_v47, %v263_v19  ;;  %v5834_v29 = vpop.f32.mrf.mxu2 }
 0x12a   :  { %v633_v45 = vadd.f32 %v5432_v47, %v632_v28  ;;  %v5836_v35 = vpop.f32.mrf.mxu3 }
 0x12b   :  { %vm317_vm15 = vcmp.ge.f32.partialorder %v264_v30, 0.0  ;;  %v349_v36 = vmul.f32 0.01, %v264_v30  ;;  %4888 = vmatmul.msk.f32.gmra.mxu0 %vm39_vm1, %v5594_v33 }
 0x12c   :  { %vm686_vm2 = vcmp.ge.f32.partialorder %v633_v45, 0.0  ;;  %v718_v37 = vmul.f32 0.01, %v633_v45  ;;  %4920 = vmatmul.msk.f32.gmra.mxu1 %vm39_vm1, %v5612_v48 }
 0x12d   :  { %v381_v38 = vsel %vm317_vm15, %v264_v30, %v349_v36  ;;  %v5842_v43 = vld [vmem:[#allocation2 + $0x99] sm:$0xff] }
 0x12e   :  { %v750_v46 = vsel %vm686_vm2, %v633_v45, %v718_v37  ;;  %v5844_v60 = vld [vmem:[#allocation2 + $0xa0] sm:$0xff]  ;;  %413 = vst.msk [vmem:[#allocation2 + $0xa8] sm:$0xff] %vm39_vm1, %v381_v38  ;;  %4838 = vmatmul.msk.f32.gmra.mxu2 %vm39_vm1, %v5842_v43  ;;  %vm44_vm2 = vcmask 523264  }
 0x12f   :  { %4871 = vmatmul.msk.f32.gmra.mxu3 %vm39_vm1, %v5844_v60  ;;  %782 = vst.msk [vmem:[#allocation2 + $0x1a8] sm:$0xff] %vm39_vm1, %v750_v46 }
 0x130   :  { %v266_v33 = vpop.f32.mrf.mxu0 }
 0x131   :  { %v635_v44 = vpop.f32.mrf.mxu1  ;;  %v267_v48 = vadd.f32 %v5432_v47, %v266_v33  ;;  %v5854_v52 = vpop.f32.mrf.mxu2 }
 0x132   :  { %v636_v51 = vadd.f32 %v5432_v47, %v635_v44  ;;  %v5856_v53 = vpop.f32.mrf.mxu3 }
 0x133   :  { %vm318_vm3 = vcmp.ge.f32.partialorder %v267_v48, 0.0  ;;  %v350_v54 = vmul.f32 0.01, %v267_v48  ;;  %4889 = vmatmul.msk.f32.gmra.mxu0 %vm39_vm1, %v5614_v49 }
 0x134   :  { %vm687_vm4 = vcmp.ge.f32.partialorder %v636_v51, 0.0  ;;  %v719_v61 = vmul.f32 0.01, %v636_v51  ;;  %4921 = vmatmul.msk.f32.gmra.mxu1 %vm39_vm1, %v5632_v3 }
 0x135   :  { %v382_v57 = vsel %vm318_vm3, %v267_v48, %v350_v54  ;;  %v5862_v13 = vld [vmem:[#allocation2 + $0xa1] sm:$0xff] }
 0x136   :  { %v751_v2 = vsel %vm687_vm4, %v636_v51, %v719_v61  ;;  %v5864_v63 = vld [vmem:[#allocation2 + $0xa8] sm:$0xff]  ;;  %414 = vst.msk [vmem:[#allocation2 + $0xb0] sm:$0xff] %vm39_vm1, %v382_v57  ;;  %4839 = vmatmul.msk.f32.gmra.mxu2 %vm39_vm1, %v5862_v13 }
 0x137   :  { %4872 = vmatmul.msk.f32.gmra.mxu3 %vm39_vm1, %v5864_v63  ;;  %783 = vst.msk [vmem:[#allocation2 + $0x1b0] sm:$0xff] %vm39_vm1, %v751_v2 }
 0x138   :  { %v269_v49 = vpop.f32.mrf.mxu0 }
 0x139   :  { %v638_v31 = vpop.f32.mrf.mxu1  ;;  %v270_v3 = vadd.f32 %v5432_v47, %v269_v49  ;;  %v5874_v0 = vpop.f32.mrf.mxu2 }
 0x13a   :  { %v639_v32 = vadd.f32 %v5432_v47, %v638_v31  ;;  %v5876_v5 = vpop.f32.mrf.mxu3 }
 0x13b   :  { %vm319_vm5 = vcmp.ge.f32.partialorder %v270_v3, 0.0  ;;  %v351_v7 = vmul.f32 0.01, %v270_v3  ;;  %4890 = vmatmul.msk.f32.gmra.mxu0 %vm39_vm1, %v5634_v4 }
 0x13c   :  { %vm688_vm0 = vcmp.ge.f32.partialorder %v639_v32, 0.0  ;;  %v720_v18 = vmul.f32 0.01, %v639_v32  ;;  %4922 = vmatmul.msk.f32.gmra.mxu1 %vm39_vm1, %v5652_v8 }
 0x13d   :  { %v383_v12 = vsel %vm319_vm5, %v270_v3, %v351_v7  ;;  %v5882_v20 = vld [vmem:[#allocation2 + $0xa9] sm:$0xff] }
 0x13e   :  { %v752_v17 = vsel %vm688_vm0, %v639_v32, %v720_v18  ;;  %v5884_v21 = vld [vmem:[#allocation2 + $0xb0] sm:$0xff]  ;;  %415 = vst.msk [vmem:[#allocation2 + $0xb8] sm:$0xff] %vm39_vm1, %v383_v12  ;;  %4840 = vmatmul.msk.f32.gmra.mxu2 %vm39_vm1, %v5882_v20 }
 0x13f   :  { %4873 = vmatmul.msk.f32.gmra.mxu3 %vm39_vm1, %v5884_v21  ;;  %784 = vst.msk [vmem:[#allocation2 + $0x1b8] sm:$0xff] %vm39_vm1, %v752_v17 }
 0x140   :  { %v272_v4 = vpop.f32.mrf.mxu0 }
 0x141   :  { %v641_v22 = vpop.f32.mrf.mxu1  ;;  %v273_v8 = vadd.f32 %v5432_v47, %v272_v4  ;;  %v5894_v28 = vpop.f32.mrf.mxu2 }
 0x142   :  { %v642_v19 = vadd.f32 %v5432_v47, %v641_v22  ;;  %v5896_v30 = vpop.f32.mrf.mxu3 }
 0x143   :  { %vm320_vm6 = vcmp.ge.f32.partialorder %v273_v8, 0.0  ;;  %v352_v45 = vmul.f32 0.01, %v273_v8  ;;  %4891 = vmatmul.msk.f32.gmra.mxu0 %vm39_vm1, %v5654_v9 }
 0x144   :  { %vm689_vm7 = vcmp.ge.f32.partialorder %v642_v19, 0.0  ;;  %v721_v36 = vmul.f32 0.01, %v642_v19  ;;  %4923 = vmatmul.msk.f32.gmra.mxu1 %vm39_vm1, %v5672_v24 }
 0x145   :  { %v384_v37 = vsel %vm320_vm6, %v273_v8, %v352_v45  ;;  %v5902_v46 = vld [vmem:[#allocation2 + $0xb1] sm:$0xff] }
 0x146   :  { %v753_v38 = vsel %vm689_vm7, %v642_v19, %v721_v36  ;;  %v5904_v33 = vld [vmem:[#allocation2 + $0xb8] sm:$0xff]  ;;  %416 = vst.msk [vmem:[#allocation2 + $0xc0] sm:$0xff] %vm39_vm1, %v384_v37  ;;  %4841 = vmatmul.msk.f32.gmra.mxu2 %vm39_vm1, %v5902_v46 }
 0x147   :  { %4874 = vmatmul.msk.f32.gmra.mxu3 %vm39_vm1, %v5904_v33  ;;  %785 = vst.msk [vmem:[#allocation2 + $0x1c0] sm:$0xff] %vm39_vm1, %v753_v38 }
 0x148   :  { %v275_v9 = vpop.f32.mrf.mxu0 }
 0x149   :  { %v644_v44 = vpop.f32.mrf.mxu1  ;;  %v276_v24 = vadd.f32 %v5432_v47, %v275_v9  ;;  %v5914_v51 = vpop.f32.mrf.mxu2 }
 0x14a   :  { %v645_v48 = vadd.f32 %v5432_v47, %v644_v44  ;;  %v5916_v54 = vpop.f32.mrf.mxu3 }
 0x14b   :  { %vm321_vm8 = vcmp.ge.f32.partialorder %v276_v24, 0.0  ;;  %v353_v61 = vmul.f32 0.01, %v276_v24  ;;  %4892 = vmatmul.msk.f32.gmra.mxu0 %vm39_vm1, %v5674_v25 }
 0x14c   :  { %vm690_vm9 = vcmp.ge.f32.partialorder %v645_v48, 0.0  ;;  %v722_v57 = vmul.f32 0.01, %v645_v48  ;;  %4924 = vmatmul.msk.f32.gmra.mxu1 %vm39_vm1, %v5692_v41  ;;  %v5935_v41 = vld [vmem:[%s7619_s2] ss:$0 sm:$0xff] }
 0x14d   :  { %v385_v2 = vsel %vm321_vm8, %v276_v24, %v353_v61  ;;  %v5922_v31 = vld [vmem:[#allocation2 + $0xb9] sm:$0xff] }
 0x14e   :  { %v754_v49 = vsel %vm690_vm9, %v645_v48, %v722_v57  ;;  %v5924_v3 = vld [vmem:[#allocation2 + $0xc0] sm:$0xff]  ;;  %417 = vst.msk [vmem:[#allocation2 + $0xc8] sm:$0xff] %vm39_vm1, %v385_v2  ;;  %4842 = vmatmul.msk.f32.gmra.mxu2 %vm39_vm1, %v5922_v31 }
 0x14f   :  { %4875 = vmatmul.msk.f32.gmra.mxu3 %vm39_vm1, %v5924_v3  ;;  %786 = vst.msk [vmem:[#allocation2 + $0x1c8] sm:$0xff] %vm39_vm1, %v754_v49 }
 0x150   :  { %v278_v47 = vpop.f32.mrf.mxu0 }
 0x151   :  { %v647_v25 = vpop.f32.mrf.mxu1  ;;  %v279_v32 = vadd.f32 %v5935_v41, %v278_v47  ;;  %v5939_v18 = vpop.f32.mrf.mxu2  ;;  %v5176_v47 = vmov 0.0  }
 0x152   :  { %v648_v7 = vadd.f32 %v5935_v41, %v647_v25  ;;  %v5941_v12 = vpop.f32.mrf.mxu3  ;;  %40 = vst.msk [vmem:[#allocation2 + $0x200] sm:$0xff] %vm39_vm1, %v5176_v47 }
 0x153   :  { %vm322_vm10 = vcmp.ge.f32.partialorder %v279_v32, 0.0  ;;  %v354_v17 = vmul.f32 0.01, %v279_v32  ;;  %4893 = vmatmul.msk.f32.gmra.mxu0 %vm39_vm1, %v5694_v42  ;;  %41 = vst.msk [vmem:[#allocation2 + $0x208] sm:$0xff] %vm39_vm1, %v5176_v47 }
 0x154   :  { %vm691_vm11 = vcmp.ge.f32.partialorder %v648_v7, 0.0  ;;  %v723_v4 = vmul.f32 0.01, %v648_v7  ;;  %4925 = vmatmul.msk.f32.gmra.mxu1 %vm39_vm1, %v5712_v58  ;;  %42 = vst.msk [vmem:[#allocation2 + $0x210] sm:$0xff] %vm39_vm1, %v5176_v47 }
 0x155   :  { %v386_v22 = vsel %vm322_vm10, %v279_v32, %v354_v17  ;;  %v5947_v19 = vld [vmem:[#allocation2 + $0xc1] sm:$0xff]  ;;  %45 = vst.msk [vmem:[#allocation4 + $0x80] sm:$0xff] %vm44_vm2, %v5176_v47 }
 0x156   :  { %v755_v8 = vsel %vm691_vm11, %v648_v7, %v723_v4  ;;  %v5949_v45 = vld [vmem:[#allocation2 + $0xc8] sm:$0xff]  ;;  %418 = vst.msk [vmem:[#allocation2 + $0xd0] sm:$0xff] %vm39_vm1, %v386_v22  ;;  %4843 = vmatmul.msk.f32.gmra.mxu2 %vm39_vm1, %v5947_v19 }
 0x157   :  { %4876 = vmatmul.msk.f32.gmra.mxu3 %vm39_vm1, %v5949_v45  ;;  %787 = vst.msk [vmem:[#allocation2 + $0x1d0] sm:$0xff] %vm39_vm1, %v755_v8 }
 0x158   :  { %v281_v42 = vpop.f32.mrf.mxu0  ;;  %46 = vst.msk [vmem:[#allocation4 + $0x88] sm:$0xff] %vm44_vm2, %v5176_v47 }
 0x159   :  { %v650_v36 = vpop.f32.mrf.mxu1  ;;  %v282_v58 = vadd.f32 %v5935_v41, %v281_v42  ;;  %v5959_v38 = vpop.f32.mrf.mxu2  ;;  %47 = vst [vmem:[#allocation5 + $0x80] sm:$0xff] %v5176_v47 }
 0x15a   :  { %v651_v37 = vadd.f32 %v5935_v41, %v650_v36  ;;  %v5961_v9 = vpop.f32.mrf.mxu3  ;;  %48 = vst [vmem:[#allocation5 + $0x88] sm:$0xff] %v5176_v47 }
 0x15b   :  { %vm323_vm12 = vcmp.ge.f32.partialorder %v282_v58, 0.0  ;;  %v355_v44 = vmul.f32 0.01, %v282_v58  ;;  %4894 = vmatmul.msk.f32.gmra.mxu0 %vm39_vm1, %v5714_v59 }
 0x15c   :  { %vm692_vm13 = vcmp.ge.f32.partialorder %v651_v37, 0.0  ;;  %v724_v24 = vmul.f32 0.01, %v651_v37  ;;  %4926 = vmatmul.msk.f32.gmra.mxu1 %vm39_vm1, %v5732_v10 }
 0x15d   :  { %v387_v48 = vsel %vm323_vm12, %v282_v58, %v355_v44  ;;  %v5967_v57 = vld [vmem:[#allocation2 + $0xc9] sm:$0xff] }
 0x15e   :  { %v756_v61 = vsel %vm692_vm13, %v651_v37, %v724_v24  ;;  %v5969_v2 = vld [vmem:[#allocation2 + $0xd0] sm:$0xff]  ;;  %419 = vst.msk [vmem:[#allocation2 + $0xd8] sm:$0xff] %vm39_vm1, %v387_v48  ;;  %4844 = vmatmul.msk.f32.gmra.mxu2 %vm39_vm1, %v5967_v57 }
 0x15f   :  { %4877 = vmatmul.msk.f32.gmra.mxu3 %vm39_vm1, %v5969_v2  ;;  %788 = vst.msk [vmem:[#allocation2 + $0x1d8] sm:$0xff] %vm39_vm1, %v756_v61 }
 0x160   :  { %v284_v59 = vpop.f32.mrf.mxu0 }
 0x161   :  { %v653_v49 = vpop.f32.mrf.mxu1  ;;  %v285_v10 = vadd.f32 %v5935_v41, %v284_v59  ;;  %v5980_v32 = vpop.f32.mrf.mxu2 }
 0x162   :  { %v654_v25 = vadd.f32 %v5935_v41, %v653_v49  ;;  %v5982_v7 = vpop.f32.mrf.mxu3 }
 0x163   :  { %vm324_vm14 = vcmp.ge.f32.partialorder %v285_v10, 0.0  ;;  %v356_v17 = vmul.f32 0.01, %v285_v10  ;;  %4895 = vmatmul.msk.f32.gmra.mxu0 %vm39_vm1, %v5734_v11 }
 0x164   :  { %vm693_vm15 = vcmp.ge.f32.partialorder %v654_v25, 0.0  ;;  %v725_v4 = vmul.f32 0.01, %v654_v25  ;;  %4927 = vmatmul.msk.f32.gmra.mxu1 %vm39_vm1, %v5748_v26 }
 0x165   :  { %v388_v22 = vsel %vm324_vm14, %v285_v10, %v356_v17  ;;  %v5990_v42 = vld [vmem:[#allocation2 + $0xd1] sm:$0xff] }
 0x166   :  { %v757_v8 = vsel %vm693_vm15, %v654_v25, %v725_v4  ;;  %v5992_v36 = vld [vmem:[#allocation2 + $0xd8] sm:$0xff]  ;;  %420 = vst.msk [vmem:[#allocation2 + $0xe0] sm:$0xff] %vm39_vm1, %v388_v22  ;;  %4845 = vmatmul.msk.f32.gmra.mxu2 %vm39_vm1, %v5990_v42 }
 0x167   :  { %4878 = vmatmul.msk.f32.gmra.mxu3 %vm39_vm1, %v5992_v36  ;;  %789 = vst.msk [vmem:[#allocation2 + $0x1e0] sm:$0xff] %vm39_vm1, %v757_v8 }
 0x168   :  { %v287_v11 = vpop.f32.mrf.mxu0 }
 0x169   :  { %v656_v26 = vpop.f32.mrf.mxu1  ;;  %v288_v58 = vadd.f32 %v5935_v41, %v287_v11  ;;  %v6004_v44 = vpop.f32.mrf.mxu2 }
 0x16a   :  { %v657_v37 = vadd.f32 %v5935_v41, %v656_v26  ;;  %v6006_v24 = vpop.f32.mrf.mxu3 }
 0x16b   :  { %vm325_vm3 = vcmp.ge.f32.partialorder %v288_v58, 0.0  ;;  %v357_v48 = vmul.f32 0.01, %v288_v58  ;;  %4896 = vmatmul.msk.f32.gmra.mxu0 %vm39_vm1, %v5750_v27 }
 0x16c   :  { %vm694_vm4 = vcmp.ge.f32.partialorder %v657_v37, 0.0  ;;  %v726_v61 = vmul.f32 0.01, %v657_v37  ;;  %4928 = vmatmul.msk.f32.gmra.mxu1 %vm39_vm1, %v5764_v39 }
 0x16d   :  { %v389_v59 = vsel %vm325_vm3, %v288_v58, %v357_v48  ;;  %v6012_v10 = vld [vmem:[#allocation2 + $0xd9] sm:$0xff] }
 0x16e   :  { %v758_v49 = vsel %vm694_vm4, %v657_v37, %v726_v61  ;;  %v6014_v25 = vld [vmem:[#allocation2 + $0xe0] sm:$0xff]  ;;  %421 = vst.msk [vmem:[#allocation2 + $0xe8] sm:$0xff] %vm39_vm1, %v389_v59  ;;  %4846 = vmatmul.msk.f32.gmra.mxu2 %vm39_vm1, %v6012_v10 }
 0x16f   :  { %4879 = vmatmul.msk.f32.gmra.mxu3 %vm39_vm1, %v6014_v25  ;;  %790 = vst.msk [vmem:[#allocation2 + $0x1e8] sm:$0xff] %vm39_vm1, %v758_v49 }
 0x170   :  { %v290_v27 = vpop.f32.mrf.mxu0 }
 0x171   :  { %v659_v47 = vpop.f32.mrf.mxu1  ;;  %v291_v39 = vadd.f32 %v5935_v41, %v290_v27  ;;  %v6024_v4 = vpop.f32.mrf.mxu2 }
 0x172   :  { %v660_v17 = vadd.f32 %v5935_v41, %v659_v47  ;;  %v6026_v22 = vpop.f32.mrf.mxu3 }
 0x173   :  { %vm326_vm5 = vcmp.ge.f32.partialorder %v291_v39, 0.0  ;;  %v358_v8 = vmul.f32 0.01, %v291_v39  ;;  %4897 = vmatmul.msk.f32.gmra.mxu0 %vm39_vm1, %v5766_v40 }
 0x174   :  { %vm695_vm0 = vcmp.ge.f32.partialorder %v660_v17, 0.0  ;;  %v727_v11 = vmul.f32 0.01, %v660_v17  ;;  %4929 = vmatmul.msk.f32.gmra.mxu1 %vm39_vm1, %v5782_v55 }
 0x175   :  { %v390_v26 = vsel %vm326_vm5, %v291_v39, %v358_v8  ;;  %v6032_v37 = vld [vmem:[#allocation2 + $0xe1] sm:$0xff] }
 0x176   :  { %v759_v58 = vsel %vm695_vm0, %v660_v17, %v727_v11  ;;  %v6034_v48 = vld [vmem:[#allocation2 + $0xe8] sm:$0xff]  ;;  %422 = vst.msk [vmem:[#allocation2 + $0xf0] sm:$0xff] %vm39_vm1, %v390_v26  ;;  %4847 = vmatmul.msk.f32.gmra.mxu2 %vm39_vm1, %v6032_v37 }
 0x177   :  { %4880 = vmatmul.msk.f32.gmra.mxu3 %vm39_vm1, %v6034_v48  ;;  %791 = vst.msk [vmem:[#allocation2 + $0x1f0] sm:$0xff] %vm39_vm1, %v759_v58 }
 0x178   :  { %v293_v40 = vpop.f32.mrf.mxu0 }
 0x179   :  { %v662_v61 = vpop.f32.mrf.mxu1  ;;  %v294_v55 = vadd.f32 %v5935_v41, %v293_v40  ;;  %v6044_v49 = vpop.f32.mrf.mxu2  ;;  %v6067_v40 = vld [vmem:[%s7621_s4] ss:$0 sm:$0xff] }
 0x17a   :  { %v663_v59 = vadd.f32 %v5935_v41, %v662_v61  ;;  %v6046_v27 = vpop.f32.mrf.mxu3 }
 0x17b   :  { %vm327_vm6 = vcmp.ge.f32.partialorder %v294_v55, 0.0  ;;  %v359_v47 = vmul.f32 0.01, %v294_v55  ;;  %4898 = vmatmul.msk.f32.gmra.mxu0 %vm39_vm1, %v5784_v56  ;;  %v1200_v56 = vadd.f32 %v5776_v50, %v5794_v14 }
 0x17c   :  { %vm696_vm7 = vcmp.ge.f32.partialorder %v663_v59, 0.0  ;;  %v728_v39 = vmul.f32 0.01, %v663_v59  ;;  %4930 = vmatmul.msk.f32.gmra.mxu1 %vm39_vm1, %v5802_v1 }
 0x17d   :  { %v391_v17 = vsel %vm327_vm6, %v294_v55, %v359_v47  ;;  %v6052_v11 = vld [vmem:[#allocation2 + $0xe9] sm:$0xff] }
 0x17e   :  { %v760_v8 = vsel %vm696_vm7, %v663_v59, %v728_v39  ;;  %v6054_v26 = vld [vmem:[#allocation2 + $0xf0] sm:$0xff]  ;;  %423 = vst.msk [vmem:[#allocation2 + $0xf8] sm:$0xff] %vm39_vm1, %v391_v17  ;;  %4848 = vmatmul.msk.f32.gmra.mxu2 %vm39_vm1, %v6052_v11  ;;  %v1203_v39 = vadd.f32 %v5796_v62, %v5814_v15 }
 0x17f   :  { %4881 = vmatmul.msk.f32.gmra.mxu3 %vm39_vm1, %v6054_v26  ;;  %792 = vst.msk [vmem:[#allocation2 + $0x1f8] sm:$0xff] %vm39_vm1, %v760_v8 }
 0x180   :  { %v1440_v1 = vpop.f32.mrf.mxu0 }
 0x181   :  { %v1713_v41 = vpop.f32.mrf.mxu1  ;;  %v1536_v58 = vadd.f32 %v1440_v1, %v1200_v56  ;;  %v6069_v61 = vpop.f32.mrf.mxu2 }
 0x182   :  { %v6071_v55 = vpop.f32.mrf.mxu3 }
 0x183   :  { %v1809_v59 = vadd.f32 %v1713_v41, %v1536_v58  ;;  %4899 = vmatmul.msk.f32.gmra.mxu0 %vm39_vm1, %v5804_v6 }
 0x184   :  { %4931 = vmatmul.msk.f32.gmra.mxu1 %vm39_vm1, %v5822_v23 }
 0x185   :  { %v1841_v50 = vadd.f32 %v6067_v40, %v1809_v59  ;;  %v6078_v14 = vld [vmem:[#allocation2 + $0xf1] sm:$0xff]  ;;  %v6098_v15 = vld [vmem:[#allocation2 + $0xf9] sm:$0xff] }
 0x186   :  { %v6080_v47 = vld [vmem:[#allocation2 + $0xf8] sm:$0xff]  ;;  %4849 = vmatmul.msk.f32.gmra.mxu2 %vm39_vm1, %v6078_v14  ;;  %v6100_v59 = vld [vmem:[#allocation2 + $0x100] sm:$0xff] }
 0x187   :  { %4882 = vmatmul.msk.f32.gmra.mxu3 %vm39_vm1, %v6080_v47  ;;  %vm1873_vm8 = vcmp.ge.f32.partialorder %v1841_v50, 0.0  ;;  %v1905_v6 = vmul.f32 0.01, %v1841_v50 }
 0x188   :  { %v1443_v17 = vpop.f32.mrf.mxu0 }
 0x189   :  { %v1716_v8 = vpop.f32.mrf.mxu1  ;;  %v1937_v23 = vsel %vm1873_vm8, %v1841_v50, %v1905_v6  ;;  %v1537_v56 = vadd.f32 %v1443_v17, %v1203_v39  ;;  %v6088_v1 = vpop.f32.mrf.mxu2  ;;  %v1206_v50 = vadd.f32 %v5816_v16, %v5834_v29  ;;  %v6118_v29 = vld [vmem:[#allocation2 + $0x101] sm:$0xff] }
 0x18a   :  { %v6090_v41 = vpop.f32.mrf.mxu3  ;;  %1969 = vst.msk [vmem:[#allocation3] sm:$0xff] %vm44_vm2, %v1937_v23 }
 0x18b   :  { %v1810_v58 = vadd.f32 %v1716_v8, %v1537_v56  ;;  %4900 = vmatmul.msk.f32.gmra.mxu0 %vm39_vm1, %v5824_v34 }
 0x18c   :  { %4932 = vmatmul.msk.f32.gmra.mxu1 %vm39_vm1, %v5842_v43 }
 0x18d   :  { %v1842_v62 = vadd.f32 %v6067_v40, %v1810_v58  ;;  %v6120_v58 = vld [vmem:[#allocation2 + $0x108] sm:$0xff] }
 0x18e   :  { %4850 = vmatmul.msk.f32.gmra.mxu2 %vm39_vm1, %v6098_v15 }
 0x18f   :  { %4979 = vmatmul.msk.f32.vlgmr.msrb.gmra.mxu3 %vm39_vm1, %v6100_v59  ;;  %vm1874_vm9 = vcmp.ge.f32.partialorder %v1842_v62, 0.0  ;;  %v1906_v34 = vmul.f32 0.01, %v1842_v62 }
 0x190   :  { %v1446_v39 = vpop.f32.mrf.mxu0 }
 0x191   :  { %v1719_v6 = vpop.f32.mrf.mxu1  ;;  %v1938_v43 = vsel %vm1874_vm9, %v1842_v62, %v1906_v34  ;;  %v1538_v17 = vadd.f32 %v1446_v39, %v1206_v50  ;;  %v6108_v8 = vpop.f32.mrf.mxu2  ;;  %v1209_v62 = vadd.f32 %v5836_v35, %v5854_v52  ;;  %v6138_v52 = vld [vmem:[#allocation2 + $0x109] sm:$0xff] }
 0x192   :  { %v6110_v23 = vpop.f32.mrf.mxu3  ;;  %1970 = vst.msk [vmem:[#allocation3 + $0x8] sm:$0xff] %vm44_vm2, %v1938_v43 }
 0x193   :  { %v1811_v56 = vadd.f32 %v1719_v6, %v1538_v17  ;;  %4901 = vmatmul.msk.f32.gmra.mxu0 %vm39_vm1, %v5844_v60 }
 0x194   :  { %4933 = vmatmul.msk.f32.gmra.mxu1 %vm39_vm1, %v5862_v13 }
 0x195   :  { %v1843_v16 = vadd.f32 %v6067_v40, %v1811_v56  ;;  %v6140_v56 = vld [vmem:[#allocation2 + $0x110] sm:$0xff] }
 0x196   :  { %4947 = vmatmul.msk.f32.vlgmr.msrb.gmra.mxu2 %vm39_vm1, %v6118_v29 }
 0x197   :  { %4980 = vmatmul.msk.f32.gmra.mxu3 %vm39_vm1, %v6120_v58  ;;  %vm1875_vm10 = vcmp.ge.f32.partialorder %v1843_v16, 0.0  ;;  %v1907_v60 = vmul.f32 0.01, %v1843_v16 }
 0x198   :  { %v1449_v50 = vpop.f32.mrf.mxu0 }
 0x199   :  { %v1722_v34 = vpop.f32.mrf.mxu1  ;;  %v1939_v13 = vsel %vm1875_vm10, %v1843_v16, %v1907_v60  ;;  %v1539_v39 = vadd.f32 %v1449_v50, %v1209_v62  ;;  %v6128_v6 = vpop.f32.mrf.mxu2  ;;  %v1212_v16 = vadd.f32 %v5856_v53, %v5874_v0  ;;  %v6157_v53 = vld [vmem:[#allocation2 + $0x111] sm:$0xff]  ;;  %v3189_v0 = vld [vmem:[#allocation3] ss:$2 sm:$0xff] }
 0x19a   :  { %v6130_v43 = vpop.f32.mrf.mxu3  ;;  %1971 = vst.msk [vmem:[#allocation3 + $0x10] sm:$0xff] %vm44_vm2, %v1939_v13 }
 0x19b   :  { %7631 = vst [vmem:[#allocation10_spill] sm:$0xff] %v6130_v43  ;;  %v1812_v17 = vadd.f32 %v1722_v34, %v1539_v39  ;;  %4902 = vmatmul.msk.f32.gmra.mxu0 %vm39_vm1, %v5864_v63 }
 0x19c   :  { %4934 = vmatmul.msk.f32.gmra.mxu1 %vm39_vm1, %v5882_v20  ;;  %7634 = vst [vmem:[#allocation13_spill] sm:$0xff] %v6157_v53 }
 0x19d   :  { %v1844_v35 = vadd.f32 %v6067_v40, %v1812_v17  ;;  %v3191_v17 = vld [vmem:[#allocation3 + $0x1] ss:$2 sm:$0xff] }
 0x19e   :  { %4948 = vmatmul.msk.f32.gmra.mxu2 %vm39_vm1, %v6138_v52 }
 0x19f   :  { %4981 = vmatmul.msk.f32.gmra.mxu3 %vm39_vm1, %v6140_v56  ;;  %vm1876_vm11 = vcmp.ge.f32.partialorder %v1844_v35, 0.0  ;;  %v1908_v63 = vmul.f32 0.01, %v1844_v35 }
 0x1a0   :  { %v1452_v62 = vpop.f32.mrf.mxu0 }
 0x1a1   :  { %v1725_v60 = vpop.f32.mrf.mxu1  ;;  %v1940_v20 = vsel %vm1876_vm11, %v1844_v35, %v1908_v63  ;;  %v1540_v50 = vadd.f32 %v1452_v62, %v1212_v16  ;;  %v6148_v34 = vpop.f32.mrf.mxu2  ;;  %v6160_v16 = vld [vmem:[#allocation2 + $0x118] sm:$0xff] }
 0x1a2   :  { %7632 = vst [vmem:[#allocation11_spill] sm:$0xff] %v6148_v34  ;;  %v6150_v13 = vpop.f32.mrf.mxu3 }
 0x1a3   :  { %7633 = vst [vmem:[#allocation12_spill] sm:$0xff] %v6150_v13  ;;  %v1813_v39 = vadd.f32 %v1725_v60, %v1540_v50  ;;  %4903 = vmatmul.msk.f32.gmra.mxu0 %vm39_vm1, %v5884_v21  ;;  %v1215_v21 = vadd.f32 %v5876_v5, %v5894_v28 }
 0x1a4   :  { %1972 = vst.msk [vmem:[#allocation3 + $0x18] sm:$0xff] %vm44_vm2, %v1940_v20  ;;  %4935 = vmatmul.msk.f32.gmra.mxu1 %vm39_vm1, %v5902_v46  ;;  %v3192_v46 = vmax.f32 %v3189_v0, %v3191_v17  ;;  %v6178_v0 = vld [vmem:[#allocation2 + $0x119] sm:$0xff] }
 0x1a5   :  { %v1845_v35 = vadd.f32 %v6067_v40, %v1813_v39  ;;  %7635 = vst [vmem:[#allocation14_spill] sm:$0xff] %v6160_v16  ;;  %v6180_v17 = vld [vmem:[#allocation2 + $0x120] sm:$0xff] }
 0x1a6   :  { %4949 = vmatmul.msk.f32.gmra.mxu2 %vm39_vm1, %v6157_v53 }
 0x1a7   :  { %4982 = vmatmul.msk.f32.gmra.mxu3 %vm39_vm1, %v6160_v16  ;;  %vm1877_vm12 = vcmp.ge.f32.partialorder %v1845_v35, 0.0  ;;  %v1909_v63 = vmul.f32 0.01, %v1845_v35 }
 0x1a8   :  { %v1455_v62 = vpop.f32.mrf.mxu0 }
 0x1a9   :  { %v1728_v60 = vpop.f32.mrf.mxu1  ;;  %v1941_v50 = vsel %vm1877_vm12, %v1845_v35, %v1909_v63  ;;  %v1541_v13 = vadd.f32 %v1455_v62, %v1215_v21  ;;  %v6168_v39 = vpop.f32.mrf.mxu2  ;;  %v1221_v62 = vadd.f32 %v5916_v54, %v5939_v18  ;;  %v6219_v18 = vld [vmem:[#allocation2 + $0x129] sm:$0xff] }
 0x1aa   :  { %v6170_v43 = vpop.f32.mrf.mxu3  ;;  %1973 = vst.msk [vmem:[#allocation3 + $0x20] sm:$0xff] %vm44_vm2, %v1941_v50 }
 0x1ab   :  { %v3194_v20 = vld [vmem:[#allocation3 + $0x10] ss:$2 sm:$0xff]  ;;  %v3197_v53 = vld [vmem:[#allocation3 + $0x11] ss:$2 sm:$0xff]  ;;  %v1814_v16 = vadd.f32 %v1728_v60, %v1541_v13  ;;  %4904 = vmatmul.msk.f32.gmra.mxu0 %vm39_vm1, %v5904_v33  ;;  %v1218_v33 = vadd.f32 %v5896_v30, %v5914_v51  ;;  %v6199_v51 = vld [vmem:[#allocation2 + $0x121] sm:$0xff] }
 0x1ac   :  { %v3195_v34 = vmax.f32 %v3192_v46, %v3194_v20  ;;  %4936 = vmatmul.msk.f32.gmra.mxu1 %vm39_vm1, %v5922_v31  ;;  %v6201_v46 = vld [vmem:[#allocation2 + $0x128] sm:$0xff] }
 0x1ad   :  { %v1846_v28 = vadd.f32 %v6067_v40, %v1814_v16 }
 0x1ae   :  { %v3198_v5 = vmax.f32 %v3195_v34, %v3197_v53  ;;  %4950 = vmatmul.msk.f32.gmra.mxu2 %vm39_vm1, %v6178_v0 }
 0x1af   :  { %4983 = vmatmul.msk.f32.gmra.mxu3 %vm39_vm1, %v6180_v17  ;;  %vm1878_vm13 = vcmp.ge.f32.partialorder %v1846_v28, 0.0  ;;  %v1910_v31 = vmul.f32 0.01, %v1846_v28 }
 0x1b0   :  { %3199 = vst.msk [vmem:[#allocation4] sm:$0xff] %vm44_vm2, %v3198_v5  ;;  %v1458_v34 = vpop.f32.mrf.mxu0 }
 0x1b1   :  { %v1731_v13 = vpop.f32.mrf.mxu1  ;;  %v1942_v53 = vsel %vm1878_vm13, %v1846_v28, %v1910_v31  ;;  %v1542_v35 = vadd.f32 %v1458_v34, %v1218_v33  ;;  %v6190_v21 = vpop.f32.mrf.mxu2  ;;  %v6221_v31 = vld [vmem:[#allocation2 + $0x130] sm:$0xff] }
 0x1b2   :  { %1974 = vst.msk [vmem:[#allocation3 + $0x28] sm:$0xff] %vm44_vm2, %v1942_v53  ;;  %v6192_v63 = vpop.f32.mrf.mxu3 }
 0x1b3   :  { %v1815_v16 = vadd.f32 %v1731_v13, %v1542_v35  ;;  %4905 = vmatmul.msk.f32.gmra.mxu0 %vm39_vm1, %v5924_v3 }
 0x1b4   :  { %4937 = vmatmul.msk.f32.gmra.mxu1 %vm39_vm1, %v5947_v19 }
 0x1b5   :  { %v1847_v30 = vadd.f32 %v6067_v40, %v1815_v16 }
 0x1b6   :  { %4951 = vmatmul.msk.f32.gmra.mxu2 %vm39_vm1, %v6199_v51 }
 0x1b7   :  { %4984 = vmatmul.msk.f32.gmra.mxu3 %vm39_vm1, %v6201_v46  ;;  %vm1879_vm14 = vcmp.ge.f32.partialorder %v1847_v30, 0.0  ;;  %v1911_v3 = vmul.f32 0.01, %v1847_v30 }
 0x1b8   :  { %v1461_v60 = vpop.f32.mrf.mxu0 }
 0x1b9   :  { %v1734_v20 = vpop.f32.mrf.mxu1  ;;  %v1943_v19 = vsel %vm1879_vm14, %v1847_v30, %v1911_v3  ;;  %v1543_v50 = vadd.f32 %v1461_v60, %v1221_v62  ;;  %v6215_v33 = vpop.f32.mrf.mxu2  ;;  %v6234_v30 = vld [vmem:[#allocation2 + $0x131] sm:$0xff]  ;;  %v3201_v62 = vld [vmem:[#allocation3 + $0x20] ss:$2 sm:$0xff]  ;;  %v3203_v3 = vld [vmem:[#allocation3 + $0x21] ss:$2 sm:$0xff] }
 0x1ba   :  { %1975 = vst.msk [vmem:[#allocation3 + $0x30] sm:$0xff] %vm44_vm2, %v1943_v19  ;;  %v6217_v54 = vpop.f32.mrf.mxu3  ;;  %v3204_v19 = vmax.f32 %v3201_v62, %v3203_v3 }
 0x1bb   :  { %v1816_v5 = vadd.f32 %v1734_v20, %v1543_v50  ;;  %4906 = vmatmul.msk.f32.gmra.mxu0 %vm39_vm1, %v5949_v45  ;;  %v1224_v45 = vadd.f32 %v5941_v12, %v5959_v38  ;;  %v6237_v38 = vld [vmem:[#allocation2 + $0x138] sm:$0xff] }
 0x1bc   :  { %4938 = vmatmul.msk.f32.gmra.mxu1 %vm39_vm1, %v5967_v57 }
 0x1bd   :  { %v1848_v28 = vadd.f32 %v6067_v40, %v1816_v5 }
 0x1be   :  { %4952 = vmatmul.msk.f32.gmra.mxu2 %vm39_vm1, %v6219_v18 }
 0x1bf   :  { %4985 = vmatmul.msk.f32.gmra.mxu3 %vm39_vm1, %v6221_v31  ;;  %vm1880_vm15 = vcmp.ge.f32.partialorder %v1848_v28, 0.0  ;;  %v1912_v57 = vmul.f32 0.01, %v1848_v28 }
 0x1c0   :  { %v1464_v34 = vpop.f32.mrf.mxu0 }
 0x1c1   :  { %v1737_v13 = vpop.f32.mrf.mxu1  ;;  %v1944_v53 = vsel %vm1880_vm15, %v1848_v28, %v1912_v57  ;;  %v1544_v35 = vadd.f32 %v1464_v34, %v1224_v45 }
 0x1c2   :  { %1976 = vst.msk [vmem:[#allocation3 + $0x38] sm:$0xff] %vm44_vm2, %v1944_v53  ;;  %v6247_v20 = vpop.f32.mrf.mxu3 }
 0x1c3   :  { %v1817_v16 = vadd.f32 %v1737_v13, %v1544_v35  ;;  %4907 = vmatmul.msk.f32.gmra.mxu0 %vm39_vm1, %v5969_v2  ;;  %v1227_v2 = vadd.f32 %v5961_v9, %v5980_v32  ;;  %v6255_v35 = vld [vmem:[#allocation2 + $0x139] sm:$0xff] }
 0x1c4   :  { %4939 = vmatmul.msk.f32.gmra.mxu1 %vm39_vm1, %v5990_v42  ;;  %v6245_v42 = vpop.f32.mrf.mxu2 }
 0x1c5   :  { %v1849_v12 = vadd.f32 %v6067_v40, %v1817_v16  ;;  %v6257_v16 = vld [vmem:[#allocation2 + $0x140] sm:$0xff] }
 0x1c6   :  { %4953 = vmatmul.msk.f32.gmra.mxu2 %vm39_vm1, %v6234_v30 }
 0x1c7   :  { %4986 = vmatmul.msk.f32.gmra.mxu3 %vm39_vm1, %v6237_v38  ;;  %vm1881_vm3 = vcmp.ge.f32.partialorder %v1849_v12, 0.0  ;;  %v1913_v60 = vmul.f32 0.01, %v1849_v12 }
 0x1c8   :  { %v1467_v50 = vpop.f32.mrf.mxu0 }
 0x1c9   :  { %v1740_v5 = vpop.f32.mrf.mxu1  ;;  %v3206_v28 = vld [vmem:[#allocation3 + $0x30] ss:$2 sm:$0xff]  ;;  %v1945_v45 = vsel %vm1881_vm3, %v1849_v12, %v1913_v60  ;;  %v1545_v57 = vadd.f32 %v1467_v50, %v1227_v2  ;;  %v3209_v13 = vld [vmem:[#allocation3 + $0x31] ss:$2 sm:$0xff] }
 0x1ca   :  { %v3207_v34 = vmax.f32 %v3204_v19, %v3206_v28  ;;  %1977 = vst.msk [vmem:[#allocation3 + $0x40] sm:$0xff] %vm44_vm2, %v1945_v45  ;;  %v6268_v60 = vpop.f32.mrf.mxu3  ;;  %v1233_v28 = vadd.f32 %v6006_v24, %v6024_v4  ;;  %v6296_v4 = vld [vmem:[#allocation2 + $0x149] sm:$0xff] }
 0x1cb   :  { %v1818_v53 = vadd.f32 %v1740_v5, %v1545_v57  ;;  %4908 = vmatmul.msk.f32.gmra.mxu0 %vm39_vm1, %v5992_v36  ;;  %v1230_v36 = vadd.f32 %v5982_v7, %v6004_v44  ;;  %v6276_v44 = vld [vmem:[#allocation2 + $0x141] sm:$0xff] }
 0x1cc   :  { %4940 = vmatmul.msk.f32.gmra.mxu1 %vm39_vm1, %v6012_v10  ;;  %v3210_v9 = vmax.f32 %v3207_v34, %v3209_v13  ;;  %v6266_v2 = vpop.f32.mrf.mxu2  ;;  %v6278_v5 = vld [vmem:[#allocation2 + $0x148] sm:$0xff] }
 0x1cd   :  { %v1850_v32 = vadd.f32 %v6067_v40, %v1818_v53 }
 0x1ce   :  { %3211 = vst.msk [vmem:[#allocation4 + $0x8] sm:$0xff] %vm44_vm2, %v3210_v9  ;;  %4954 = vmatmul.msk.f32.gmra.mxu2 %vm39_vm1, %v6255_v35 }
 0x1cf   :  { %4987 = vmatmul.msk.f32.gmra.mxu3 %vm39_vm1, %v6257_v16  ;;  %vm1882_vm4 = vcmp.ge.f32.partialorder %v1850_v32, 0.0  ;;  %v1914_v10 = vmul.f32 0.01, %v1850_v32 }
 0x1d0   :  { %v1470_v62 = vpop.f32.mrf.mxu0 }
 0x1d1   :  { %v1743_v3 = vpop.f32.mrf.mxu1  ;;  %v1946_v12 = vsel %vm1882_vm4, %v1850_v32, %v1914_v10  ;;  %v1546_v19 = vadd.f32 %v1470_v62, %v1230_v36  ;;  %v6298_v32 = vld [vmem:[#allocation2 + $0x150] sm:$0xff]  ;;  %v1236_v36 = vadd.f32 %v6026_v22, %v6044_v49 }
 0x1d2   :  { %1978 = vst.msk [vmem:[#allocation3 + $0x48] sm:$0xff] %vm44_vm2, %v1946_v12  ;;  %v6289_v53 = vpop.f32.mrf.mxu3 }
 0x1d3   :  { %v1819_v50 = vadd.f32 %v1743_v3, %v1546_v19  ;;  %4909 = vmatmul.msk.f32.gmra.mxu0 %vm39_vm1, %v6014_v25  ;;  %v6311_v19 = vld [vmem:[#allocation2 + $0x151] sm:$0xff] }
 0x1d4   :  { %4941 = vmatmul.msk.f32.gmra.mxu1 %vm39_vm1, %v6032_v37  ;;  %v6287_v13 = vpop.f32.mrf.mxu2 }
 0x1d5   :  { %v1851_v7 = vadd.f32 %v6067_v40, %v1819_v50 }
 0x1d6   :  { %4955 = vmatmul.msk.f32.gmra.mxu2 %vm39_vm1, %v6276_v44 }
 0x1d7   :  { %4988 = vmatmul.msk.f32.gmra.mxu3 %vm39_vm1, %v6278_v5  ;;  %vm1883_vm5 = vcmp.ge.f32.partialorder %v1851_v7, 0.0  ;;  %v1915_v25 = vmul.f32 0.01, %v1851_v7 }
 0x1d8   :  { %v1473_v45 = vpop.f32.mrf.mxu0 }
 0x1d9   :  { %v1746_v57 = vpop.f32.mrf.mxu1  ;;  %v1947_v37 = vsel %vm1883_vm5, %v1851_v7, %v1915_v25  ;;  %v1547_v34 = vadd.f32 %v1473_v45, %v1233_v28  ;;  %v3213_v50 = vld [vmem:[#allocation3 + $0x40] ss:$2 sm:$0xff]  ;;  %v3215_v7 = vld [vmem:[#allocation3 + $0x41] ss:$2 sm:$0xff]  ;;  %v6318_v25 = vld [vmem:[#allocation2 + $0x158] sm:$0xff] }
 0x1da   :  { %1979 = vst.msk [vmem:[#allocation3 + $0x50] sm:$0xff] %vm44_vm2, %v1947_v37  ;;  %v6315_v49 = vpop.f32.mrf.mxu3  ;;  %v3216_v37 = vmax.f32 %v3213_v50, %v3215_v7 }
 0x1db   :  { %v1820_v9 = vadd.f32 %v1746_v57, %v1547_v34  ;;  %4910 = vmatmul.msk.f32.gmra.mxu0 %vm39_vm1, %v6034_v48 }
 0x1dc   :  { %4942 = vmatmul.msk.f32.gmra.mxu1 %vm39_vm1, %v6052_v11  ;;  %v6313_v22 = vpop.f32.mrf.mxu2 }
 0x1dd   :  { %v1852_v24 = vadd.f32 %v6067_v40, %v1820_v9 }
 0x1de   :  { %4956 = vmatmul.msk.f32.gmra.mxu2 %vm39_vm1, %v6296_v4 }
 0x1df   :  { %4989 = vmatmul.msk.f32.gmra.mxu3 %vm39_vm1, %v6298_v32  ;;  %vm1884_vm0 = vcmp.ge.f32.partialorder %v1852_v24, 0.0  ;;  %v1916_v48 = vmul.f32 0.01, %v1852_v24 }
 0x1e0   :  { %v1476_v10 = vpop.f32.mrf.mxu0 }
 0x1e1   :  { %v1749_v62 = vpop.f32.mrf.mxu1  ;;  %v1948_v11 = vsel %vm1884_vm0, %v1852_v24, %v1916_v48  ;;  %v1548_v3 = vadd.f32 %v1476_v10, %v1236_v36 }
 0x1e2   :  { %1980 = vst.msk [vmem:[#allocation3 + $0x58] sm:$0xff] %vm44_vm2, %v1948_v11  ;;  %v6334_v11 = vld [vmem:[#allocation2 + $0x160] sm:$0xff] }
 0x1e3   :  { %v1821_v12 = vadd.f32 %v1749_v62, %v1548_v3  ;;  %4911 = vmatmul.msk.f32.gmra.mxu0 %vm39_vm1, %v6054_v26  ;;  %v1239_v26 = vadd.f32 %v6046_v27, %v6069_v61  ;;  %v6332_v62 = vld [vmem:[#allocation2 + $0x159] sm:$0xff]  ;;  %v6345_v3 = vpop.f32.mrf.mxu3 }
 0x1e4   :  { %4943 = vmatmul.msk.f32.gmra.mxu1 %vm39_vm1, %v6078_v14 }
 0x1e5   :  { %v1853_v28 = vadd.f32 %v6067_v40, %v1821_v12 }
 0x1e6   :  { %4957 = vmatmul.msk.f32.gmra.mxu2 %vm39_vm1, %v6311_v19 }
 0x1e7   :  { %4990 = vmatmul.msk.f32.gmra.mxu3 %vm39_vm1, %v6318_v25  ;;  %vm1885_vm6 = vcmp.ge.f32.partialorder %v1853_v28, 0.0  ;;  %v1917_v14 = vmul.f32 0.01, %v1853_v28 }
 0x1e8   :  { %v1479_v45 = vpop.f32.mrf.mxu0 }
 0x1e9   :  { %v1752_v57 = vpop.f32.mrf.mxu1  ;;  %v1949_v34 = vsel %vm1885_vm6, %v1853_v28, %v1917_v14  ;;  %v1549_v9 = vadd.f32 %v1479_v45, %v1239_v26  ;;  %v3218_v24 = vld [vmem:[#allocation3 + $0x50] ss:$2 sm:$0xff]  ;;  %v3221_v10 = vld [vmem:[#allocation3 + $0x51] ss:$2 sm:$0xff]  ;;  %v6355_v45 = vld [vmem:[#allocation2 + $0x168] sm:$0xff] }
 0x1ea   :  { %1981 = vst.msk [vmem:[#allocation3 + $0x60] sm:$0xff] %vm44_vm2, %v1949_v34  ;;  %v3219_v36 = vmax.f32 %v3216_v37, %v3218_v24 }
 0x1eb   :  { %v1822_v48 = vadd.f32 %v1752_v57, %v1549_v9  ;;  %4912 = vmatmul.msk.f32.gmra.mxu0 %vm39_vm1, %v6080_v47  ;;  %v1242_v47 = vadd.f32 %v6071_v55, %v6088_v1  ;;  %v6353_v1 = vld [vmem:[#allocation2 + $0x161] sm:$0xff]  ;;  %v1245_v57 = vadd.f32 %v6090_v41, %v6108_v8  ;;  %v6365_v9 = vpop.f32.mrf.mxu3  ;;  %v6373_v8 = vld [vmem:[#allocation2 + $0x169] sm:$0xff] }
 0x1ec   :  { %4944 = vmatmul.msk.f32.gmra.mxu1 %vm39_vm1, %v6098_v15  ;;  %v3222_v27 = vmax.f32 %v3219_v36, %v3221_v10  ;;  %v6343_v15 = vpop.f32.mrf.mxu2  ;;  %v6375_v10 = vld [vmem:[#allocation2 + $0x170] sm:$0xff] }
 0x1ed   :  { %v1854_v61 = vadd.f32 %v6067_v40, %v1822_v48 }
 0x1ee   :  { %4958 = vmatmul.msk.f32.gmra.mxu2 %vm39_vm1, %v6332_v62  ;;  %3223 = vst.msk [vmem:[#allocation4 + $0x10] sm:$0xff] %vm44_vm2, %v3222_v27  ;;  %v1248_v27 = vadd.f32 %v6110_v23, %v6128_v6  ;;  %v6392_v23 = vld [vmem:[#allocation2 + $0x171] sm:$0xff] }
 0x1ef   :  { %4991 = vmatmul.msk.f32.gmra.mxu3 %vm39_vm1, %v6334_v11  ;;  %vm1886_vm7 = vcmp.ge.f32.partialorder %v1854_v61, 0.0  ;;  %v1918_v12 = vmul.f32 0.01, %v1854_v61 }
 0x1f0   :  { %v1482_v50 = vpop.f32.mrf.mxu0 }
 0x1f1   :  { %v1755_v7 = vpop.f32.mrf.mxu1  ;;  %v1950_v28 = vsel %vm1886_vm7, %v1854_v61, %v1918_v12  ;;  %v1550_v26 = vadd.f32 %v1482_v50, %v1242_v47 }
 0x1f2   :  { %1982 = vst.msk [vmem:[#allocation3 + $0x68] sm:$0xff] %vm44_vm2, %v1950_v28 }
 0x1f3   :  { %v1823_v14 = vadd.f32 %v1755_v7, %v1550_v26  ;;  %4913 = vmatmul.msk.f32.gmra.mxu0 %vm39_vm1, %v6100_v59  ;;  %v6386_v7 = vpop.f32.mrf.mxu3  ;;  %v7636_v26 = vld [vmem:[#allocation13_spill] sm:$0xff] }
 0x1f4   :  { %4945 = vmatmul.msk.f32.gmra.mxu1 %vm39_vm1, %v6118_v29  ;;  %v6363_v29 = vpop.f32.mrf.mxu2 }
 0x1f5   :  { %v1855_v55 = vadd.f32 %v6067_v40, %v1823_v14 }
 0x1f6   :  { %4959 = vmatmul.msk.f32.gmra.mxu2 %vm39_vm1, %v6353_v1 }
 0x1f7   :  { %4992 = vmatmul.msk.f32.gmra.mxu3 %vm39_vm1, %v6355_v45  ;;  %vm1887_vm8 = vcmp.ge.f32.partialorder %v1855_v55, 0.0  ;;  %v1919_v59 = vmul.f32 0.01, %v1855_v55 }
 0x1f8   :  { %v1485_v37 = vpop.f32.mrf.mxu0 }
 0x1f9   :  { %v1758_v34 = vpop.f32.mrf.mxu1  ;;  %v1951_v24 = vsel %vm1887_vm8, %v1855_v55, %v1919_v59  ;;  %v1551_v36 = vadd.f32 %v1485_v37, %v1245_v57  ;;  %v3225_v6 = vld [vmem:[#allocation3 + $0x60] ss:$2 sm:$0xff]  ;;  %v3227_v14 = vld [vmem:[#allocation3 + $0x61] ss:$2 sm:$0xff]  ;;  %v6395_v57 = vld [vmem:[#allocation2 + $0x178] sm:$0xff] }
 0x1fa   :  { %1983 = vst.msk [vmem:[#allocation3 + $0x70] sm:$0xff] %vm44_vm2, %v1951_v24  ;;  %v7637_v59 = vld [vmem:[#allocation11_spill] sm:$0xff]  ;;  %v7638_v37 = vld [vmem:[#allocation10_spill] sm:$0xff] }
 0x1fb   :  { %v1824_v48 = vadd.f32 %v1758_v34, %v1551_v36  ;;  %4914 = vmatmul.msk.f32.gmra.mxu0 %vm39_vm1, %v6120_v58 }
 0x1fc   :  { %4946 = vmatmul.msk.f32.gmra.mxu1 %vm39_vm1, %v6138_v52  ;;  %v6384_v50 = vpop.f32.mrf.mxu2 }
 0x1fd   :  { %v1856_v41 = vadd.f32 %v6067_v40, %v1824_v48  ;;  %v3228_v48 = vmax.f32 %v3225_v6, %v3227_v14  ;;  %v6413_v14 = vpop.f32.mrf.mxu3 }
 0x1fe   :  { %4960 = vmatmul.msk.f32.gmra.mxu2 %vm39_vm1, %v6373_v8 }
 0x1ff   :  { %4993 = vmatmul.msk.f32.gmra.mxu3 %vm39_vm1, %v6375_v10  ;;  %vm1888_vm9 = vcmp.ge.f32.partialorder %v1856_v41, 0.0  ;;  %v1920_v58 = vmul.f32 0.01, %v1856_v41 }
 0x200   :  { %v1488_v61 = vpop.f32.mrf.mxu0 }
 0x201   :  { %v1761_v47 = vpop.f32.mrf.mxu1  ;;  %v1952_v52 = vsel %vm1888_vm9, %v1856_v41, %v1920_v58  ;;  %v1552_v12 = vadd.f32 %v1488_v61, %v1248_v27  ;;  %v3399_v61 = vld [vmem:[%s7622_s5 + $0x78] sm:$0xff] }
 0x202   :  { %1984 = vst.msk [vmem:[#allocation3 + $0x78] sm:$0xff] %vm44_vm2, %v1952_v52  ;;  %3504 = vmatpush.msra.mxu2 %v3399_v61  ;;  %v6433_v61 = vld [vmem:[#allocation2 + $0x181] sm:$0xff] }
 0x203   :  { %v1825_v28 = vadd.f32 %v1761_v47, %v1552_v12  ;;  %5011 = vmatmul.msk.f32.vlgmr.msra.gmra.mxu0 %vm39_vm1, %v6140_v56  ;;  %v1251_v56 = vadd.f32 %v7638_v37, %v7637_v59  ;;  %v7639_v12 = vld [vmem:[#allocation14_spill] sm:$0xff]  ;;  %v6416_v59 = vld [vmem:[#allocation2 + $0x179] sm:$0xff] }
 0x204   :  { %5043 = vmatmul.msk.f32.vlgmr.msra.gmra.mxu1 %vm39_vm1, %v7636_v26  ;;  %v6411_v6 = vpop.f32.mrf.mxu2  ;;  %v6418_v37 = vld [vmem:[#allocation2 + $0x180] sm:$0xff] }
 0x205   :  { %v1857_v55 = vadd.f32 %v6067_v40, %v1825_v28 }
 0x206   :  { %4961 = vmatmul.msk.f32.gmra.mxu2 %vm39_vm1, %v6392_v23 }
 0x207   :  { %4994 = vmatmul.msk.f32.gmra.mxu3 %vm39_vm1, %v6395_v57  ;;  %vm1889_vm10 = vcmp.ge.f32.partialorder %v1857_v55, 0.0  ;;  %v1921_v34 = vmul.f32 0.01, %v1857_v55 }
 0x208   :  { %v1491_v24 = vpop.f32.mrf.mxu0 }
 0x209   :  { %v1764_v36 = vpop.f32.mrf.mxu1  ;;  %v1953_v41 = vsel %vm1889_vm10, %v1857_v55, %v1921_v34  ;;  %v1553_v27 = vadd.f32 %v1491_v24, %v1251_v56  ;;  %v3230_v58 = vld [vmem:[#allocation3 + $0x70] ss:$2 sm:$0xff]  ;;  %v3233_v28 = vld [vmem:[#allocation3 + $0x71] ss:$2 sm:$0xff] }
 0x20a   :  { %1985 = vst.msk [vmem:[#allocation3 + $0x80] sm:$0xff] %vm44_vm2, %v1953_v41  ;;  %v3231_v47 = vmax.f32 %v3228_v48, %v3230_v58 }
 0x20b   :  { %v1826_v52 = vadd.f32 %v1764_v36, %v1553_v27  ;;  %5012 = vmatmul.msk.f32.gmra.mxu0 %vm39_vm1, %v7639_v12 }
 0x20c   :  { %5044 = vmatmul.msk.f32.gmra.mxu1 %vm39_vm1, %v6178_v0  ;;  %v3234_v26 = vmax.f32 %v3231_v47, %v3233_v28  ;;  %v7640_v0 = vld [vmem:[#allocation12_spill] sm:$0xff]  ;;  %v1257_v47 = vadd.f32 %v6170_v43, %v6190_v21  ;;  %v6456_v21 = vld [vmem:[#allocation2 + $0x189] sm:$0xff] }
 0x20d   :  { %v1858_v55 = vadd.f32 %v6067_v40, %v1826_v52  ;;  %v1254_v56 = vadd.f32 %v7640_v0, %v6168_v39  ;;  %v6435_v39 = vld [vmem:[#allocation2 + $0x188] sm:$0xff]  ;;  %v6443_v52 = vpop.f32.mrf.mxu2  ;;  %v3391_v0 = vld [vmem:[%s7622_s5 + $0x38] sm:$0xff] }
 0x20e   :  { %4962 = vmatmul.msk.f32.gmra.mxu2 %vm39_vm1, %v6416_v59  ;;  %3235 = vst.msk [vmem:[#allocation4 + $0x18] sm:$0xff] %vm44_vm2, %v3234_v26  ;;  %3617 = vmatpush.msra.mxu3 %v3391_v0 }
 0x20f   :  { %4995 = vmatmul.msk.f32.gmra.mxu3 %vm39_vm1, %v6418_v37  ;;  %vm1890_vm11 = vcmp.ge.f32.partialorder %v1858_v55, 0.0  ;;  %v1922_v34 = vmul.f32 0.01, %v1858_v55 }
 0x210   :  { %v1494_v24 = vpop.f32.mrf.mxu0 }
 0x211   :  { %v1767_v36 = vpop.f32.mrf.mxu1  ;;  %v1954_v48 = vsel %vm1890_vm11, %v1858_v55, %v1922_v34  ;;  %v1554_v41 = vadd.f32 %v1494_v24, %v1254_v56  ;;  %v6458_v34 = vld [vmem:[#allocation2 + $0x190] sm:$0xff]  ;;  %v1260_v24 = vadd.f32 %v6192_v63, %v6215_v33 }
 0x212   :  { %1986 = vst.msk [vmem:[#allocation3 + $0x88] sm:$0xff] %vm44_vm2, %v1954_v48  ;;  %v6475_v63 = vld [vmem:[#allocation2 + $0x191] sm:$0xff] }
 0x213   :  { %v1827_v27 = vadd.f32 %v1767_v36, %v1554_v41  ;;  %5013 = vmatmul.msk.f32.gmra.mxu0 %vm39_vm1, %v6180_v17  ;;  %v6445_v17 = vpop.f32.mrf.mxu3 }
 0x214   :  { %5045 = vmatmul.msk.f32.gmra.mxu1 %vm39_vm1, %v6199_v51 }
 0x215   :  { %v1859_v58 = vadd.f32 %v6067_v40, %v1827_v27 }
 0x216   :  { %4963 = vmatmul.msk.f32.gmra.mxu2 %vm39_vm1, %v6433_v61 }
 0x217   :  { %4996 = vmatmul.msk.f32.gmra.mxu3 %vm39_vm1, %v6435_v39  ;;  %vm1891_vm12 = vcmp.ge.f32.partialorder %v1859_v58, 0.0  ;;  %v1923_v51 = vmul.f32 0.01, %v1859_v58 }
 0x218   :  { %v1497_v12 = vpop.f32.mrf.mxu0 }
 0x219   :  { %v1770_v28 = vpop.f32.mrf.mxu1  ;;  %v1955_v26 = vsel %vm1891_vm12, %v1859_v58, %v1923_v51  ;;  %v1555_v55 = vadd.f32 %v1497_v12, %v1257_v47  ;;  %v3237_v33 = vld [vmem:[#allocation3 + $0x80] ss:$2 sm:$0xff]  ;;  %v3239_v51 = vld [vmem:[#allocation3 + $0x81] ss:$2 sm:$0xff] }
 0x21a   :  { %1987 = vst.msk [vmem:[#allocation3 + $0x90] sm:$0xff] %vm44_vm2, %v1955_v26  ;;  %v3240_v0 = vmax.f32 %v3237_v33, %v3239_v51  ;;  %v6499_v33 = vld [vmem:[#allocation2 + $0x199] sm:$0xff] }
 0x21b   :  { %v1828_v56 = vadd.f32 %v1770_v28, %v1555_v55  ;;  %5014 = vmatmul.msk.f32.gmra.mxu0 %vm39_vm1, %v6201_v46  ;;  %v6468_v41 = vpop.f32.mrf.mxu3  ;;  %v6478_v28 = vld [vmem:[#allocation2 + $0x198] sm:$0xff]  ;;  %v6501_v51 = vld [vmem:[#allocation2 + $0x1a0] sm:$0xff] }
 0x21c   :  { %5046 = vmatmul.msk.f32.gmra.mxu1 %vm39_vm1, %v6219_v18  ;;  %v6466_v18 = vpop.f32.mrf.mxu2 }
 0x21d   :  { %v1860_v43 = vadd.f32 %v6067_v40, %v1828_v56 }
 0x21e   :  { %4964 = vmatmul.msk.f32.gmra.mxu2 %vm39_vm1, %v6456_v21 }
 0x21f   :  { %4997 = vmatmul.msk.f32.gmra.mxu3 %vm39_vm1, %v6458_v34  ;;  %vm1892_vm13 = vcmp.ge.f32.partialorder %v1860_v43, 0.0  ;;  %v1924_v46 = vmul.f32 0.01, %v1860_v43 }
 0x220   :  { %v1500_v36 = vpop.f32.mrf.mxu0 }
 0x221   :  { %v1773_v48 = vpop.f32.mrf.mxu1  ;;  %v1956_v27 = vsel %vm1892_vm13, %v1860_v43, %v1924_v46  ;;  %v1556_v58 = vadd.f32 %v1500_v36, %v1260_v24  ;;  %v3398_v46 = vld [vmem:[%s7622_s5 + $0x70] sm:$0xff] }
 0x222   :  { %1988 = vst.msk [vmem:[#allocation3 + $0x98] sm:$0xff] %vm44_vm2, %v1956_v27  ;;  %3505 = vmatpush.msra.mxu2 %v3398_v46 }
 0x223   :  { %v1829_v47 = vadd.f32 %v1773_v48, %v1556_v58  ;;  %5015 = vmatmul.msk.f32.gmra.mxu0 %vm39_vm1, %v6221_v31  ;;  %v1263_v31 = vadd.f32 %v6217_v54, %v6245_v42  ;;  %v6492_v27 = vpop.f32.mrf.mxu3 }
 0x224   :  { %5047 = vmatmul.msk.f32.gmra.mxu1 %vm39_vm1, %v6234_v30  ;;  %v6490_v48 = vpop.f32.mrf.mxu2 }
 0x225   :  { %v1861_v12 = vadd.f32 %v6067_v40, %v1829_v47 }
 0x226   :  { %4965 = vmatmul.msk.f32.gmra.mxu2 %vm39_vm1, %v6475_v63 }
 0x227   :  { %4998 = vmatmul.msk.f32.gmra.mxu3 %vm39_vm1, %v6478_v28  ;;  %vm1893_vm14 = vcmp.ge.f32.partialorder %v1861_v12, 0.0  ;;  %v1925_v26 = vmul.f32 0.01, %v1861_v12 }
 0x228   :  { %v1503_v30 = vpop.f32.mrf.mxu0 }
 0x229   :  { %v1776_v55 = vpop.f32.mrf.mxu1  ;;  %v1957_v56 = vsel %vm1893_vm14, %v1861_v12, %v1925_v26  ;;  %v1557_v43 = vadd.f32 %v1503_v30, %v1263_v31  ;;  %v3242_v24 = vld [vmem:[#allocation3 + $0x90] ss:$2 sm:$0xff]  ;;  %v3245_v42 = vld [vmem:[#allocation3 + $0x91] ss:$2 sm:$0xff] }
 0x22a   :  { %1989 = vst.msk [vmem:[#allocation3 + $0xa0] sm:$0xff] %vm44_vm2, %v1957_v56  ;;  %v3243_v36 = vmax.f32 %v3240_v0, %v3242_v24 }
 0x22b   :  { %v1830_v54 = vadd.f32 %v1776_v55, %v1557_v43  ;;  %5016 = vmatmul.msk.f32.gmra.mxu0 %vm39_vm1, %v6237_v38  ;;  %v1266_v38 = vadd.f32 %v6247_v20, %v6266_v2  ;;  %v6517_v56 = vpop.f32.mrf.mxu3  ;;  %v6520_v2 = vld [vmem:[#allocation2 + $0x1a1] sm:$0xff] }
 0x22c   :  { %5048 = vmatmul.msk.f32.gmra.mxu1 %vm39_vm1, %v6255_v35  ;;  %v3246_v58 = vmax.f32 %v3243_v36, %v3245_v42  ;;  %v6515_v0 = vpop.f32.mrf.mxu2  ;;  %v6522_v43 = vld [vmem:[#allocation2 + $0x1a8] sm:$0xff]  ;;  %v3390_v42 = vld [vmem:[%s7622_s5 + $0x30] sm:$0xff] }
 0x22d   :  { %v1862_v47 = vadd.f32 %v6067_v40, %v1830_v54  ;;  %3618 = vmatpush.msra.mxu3 %v3390_v42 }
 0x22e   :  { %4966 = vmatmul.msk.f32.gmra.mxu2 %vm39_vm1, %v6499_v33  ;;  %3247 = vst.msk [vmem:[#allocation4 + $0x20] sm:$0xff] %vm44_vm2, %v3246_v58 }
 0x22f   :  { %4999 = vmatmul.msk.f32.gmra.mxu3 %vm39_vm1, %v6501_v51  ;;  %vm1894_vm15 = vcmp.ge.f32.partialorder %v1862_v47, 0.0  ;;  %v1926_v35 = vmul.f32 0.01, %v1862_v47 }
 0x230   :  { %v1506_v12 = vpop.f32.mrf.mxu0 }
 0x231   :  { %v1779_v31 = vpop.f32.mrf.mxu1  ;;  %v1958_v26 = vsel %vm1894_vm15, %v1862_v47, %v1926_v35  ;;  %v1558_v30 = vadd.f32 %v1506_v12, %v1266_v38  ;;  %v6541_v47 = vld [vmem:[#allocation2 + $0x1b0] sm:$0xff]  ;;  %v1272_v38 = vadd.f32 %v6289_v53, %v6313_v22 }
 0x232   :  { %1990 = vst.msk [vmem:[#allocation3 + $0xa8] sm:$0xff] %vm44_vm2, %v1958_v26  ;;  %v6558_v53 = vld [vmem:[#allocation2 + $0x1b1] sm:$0xff] }
 0x233   :  { %v1831_v55 = vadd.f32 %v1779_v31, %v1558_v30  ;;  %5017 = vmatmul.msk.f32.gmra.mxu0 %vm39_vm1, %v6257_v16  ;;  %v1269_v16 = vadd.f32 %v6268_v60, %v6287_v13  ;;  %v6539_v13 = vld [vmem:[#allocation2 + $0x1a9] sm:$0xff] }
 0x234   :  { %5049 = vmatmul.msk.f32.gmra.mxu1 %vm39_vm1, %v6276_v44  ;;  %v6549_v35 = vpop.f32.mrf.mxu2 }
 0x235   :  { %v1863_v20 = vadd.f32 %v6067_v40, %v1831_v55 }
 0x236   :  { %4967 = vmatmul.msk.f32.gmra.mxu2 %vm39_vm1, %v6520_v2 }
 0x237   :  { %5000 = vmatmul.msk.f32.gmra.mxu3 %vm39_vm1, %v6522_v43  ;;  %vm1895_vm3 = vcmp.ge.f32.partialorder %v1863_v20, 0.0  ;;  %v1927_v44 = vmul.f32 0.01, %v1863_v20 }
 0x238   :  { %v1509_v24 = vpop.f32.mrf.mxu0 }
 0x239   :  { %v1782_v46 = vpop.f32.mrf.mxu1  ;;  %v1959_v36 = vsel %vm1895_vm3, %v1863_v20, %v1927_v44  ;;  %v1559_v54 = vadd.f32 %v1509_v24, %v1269_v16  ;;  %v3249_v22 = vld [vmem:[#allocation3 + $0xa0] ss:$2 sm:$0xff]  ;;  %v3251_v20 = vld [vmem:[#allocation3 + $0xa1] ss:$2 sm:$0xff]  ;;  %v6561_v44 = vld [vmem:[#allocation2 + $0x1b8] sm:$0xff] }
 0x23a   :  { %1991 = vst.msk [vmem:[#allocation3 + $0xb0] sm:$0xff] %vm44_vm2, %v1959_v36  ;;  %v3252_v36 = vmax.f32 %v3249_v22, %v3251_v20 }
 0x23b   :  { %v1832_v58 = vadd.f32 %v1782_v46, %v1559_v54  ;;  %5018 = vmatmul.msk.f32.gmra.mxu0 %vm39_vm1, %v6278_v5  ;;  %v6551_v5 = vpop.f32.mrf.mxu3 }
 0x23c   :  { %5050 = vmatmul.msk.f32.gmra.mxu1 %vm39_vm1, %v6296_v4  ;;  %v6569_v54 = vpop.f32.mrf.mxu2 }
 0x23d   :  { %v1864_v60 = vadd.f32 %v6067_v40, %v1832_v58 }
 0x23e   :  { %4968 = vmatmul.msk.f32.gmra.mxu2 %vm39_vm1, %v6539_v13 }
 0x23f   :  { %5001 = vmatmul.msk.f32.gmra.mxu3 %vm39_vm1, %v6541_v47  ;;  %vm1896_vm4 = vcmp.ge.f32.partialorder %v1864_v60, 0.0  ;;  %v1928_v4 = vmul.f32 0.01, %v1864_v60 }
 0x240   :  { %v1512_v12 = vpop.f32.mrf.mxu0 }
 0x241   :  { %v1785_v31 = vpop.f32.mrf.mxu1  ;;  %v1960_v26 = vsel %vm1896_vm4, %v1864_v60, %v1928_v4  ;;  %v1560_v30 = vadd.f32 %v1512_v12, %v1272_v38  ;;  %v3397_v4 = vld [vmem:[%s7622_s5 + $0x68] sm:$0xff] }
 0x242   :  { %1992 = vst.msk [vmem:[#allocation3 + $0xb8] sm:$0xff] %vm44_vm2, %v1960_v26  ;;  %3506 = vmatpush.msra.mxu2 %v3397_v4 }
 0x243   :  { %v1833_v55 = vadd.f32 %v1785_v31, %v1560_v30  ;;  %5019 = vmatmul.msk.f32.gmra.mxu0 %vm39_vm1, %v6298_v32  ;;  %v1275_v32 = vadd.f32 %v6315_v49, %v6343_v15  ;;  %v6571_v42 = vpop.f32.mrf.mxu3  ;;  %v6582_v30 = vld [vmem:[#allocation2 + $0x1b9] sm:$0xff] }
 0x244   :  { %5051 = vmatmul.msk.f32.gmra.mxu1 %vm39_vm1, %v6311_v19 }
 0x245   :  { %v1865_v16 = vadd.f32 %v6067_v40, %v1833_v55  ;;  %v6584_v55 = vld [vmem:[#allocation2 + $0x1c0] sm:$0xff] }
 0x246   :  { %4969 = vmatmul.msk.f32.gmra.mxu2 %vm39_vm1, %v6558_v53 }
 0x247   :  { %5002 = vmatmul.msk.f32.gmra.mxu3 %vm39_vm1, %v6561_v44  ;;  %vm1897_vm5 = vcmp.ge.f32.partialorder %v1865_v16, 0.0  ;;  %v1929_v24 = vmul.f32 0.01, %v1865_v16 }
 0x248   :  { %v1515_v19 = vpop.f32.mrf.mxu0 }
 0x249   :  { %v1788_v46 = vpop.f32.mrf.mxu1  ;;  %v1961_v58 = vsel %vm1897_vm5, %v1865_v16, %v1929_v24  ;;  %v1561_v60 = vadd.f32 %v1515_v19, %v1275_v32  ;;  %v3254_v38 = vld [vmem:[#allocation3 + $0xb0] ss:$2 sm:$0xff]  ;;  %v3257_v15 = vld [vmem:[#allocation3 + $0xb1] ss:$2 sm:$0xff]  ;;  %v6594_v32 = vpop.f32.mrf.mxu2 }
 0x24a   :  { %1993 = vst.msk [vmem:[#allocation3 + $0xc0] sm:$0xff] %vm44_vm2, %v1961_v58  ;;  %v3255_v12 = vmax.f32 %v3252_v36, %v3254_v38  ;;  %v6610_v36 = vld [vmem:[#allocation2 + $0x1c8] sm:$0xff] }
 0x24b   :  { %v1834_v49 = vadd.f32 %v1788_v46, %v1561_v60  ;;  %5020 = vmatmul.msk.f32.gmra.mxu0 %vm39_vm1, %v6318_v25  ;;  %v1278_v25 = vadd.f32 %v6345_v3, %v6363_v29  ;;  %v6596_v24 = vpop.f32.mrf.mxu3  ;;  %v6605_v3 = vld [vmem:[%s7621_s4] ss:$0 sm:$0xff]  ;;  %v6608_v46 = vld [vmem:[#allocation2 + $0x1c1] sm:$0xff] }
 0x24c   :  { %5052 = vmatmul.msk.f32.gmra.mxu1 %vm39_vm1, %v6332_v62  ;;  %v3258_v31 = vmax.f32 %v3255_v12, %v3257_v15  ;;  %v3389_v12 = vld [vmem:[%s7622_s5 + $0x28] sm:$0xff] }
 0x24d   :  { %v1866_v26 = vadd.f32 %v6067_v40, %v1834_v49  ;;  %3619 = vmatpush.msra.mxu3 %v3389_v12 }
 0x24e   :  { %4970 = vmatmul.msk.f32.gmra.mxu2 %vm39_vm1, %v6582_v30  ;;  %3259 = vst.msk [vmem:[#allocation4 + $0x28] sm:$0xff] %vm44_vm2, %v3258_v31  ;;  %v6631_v31 = vld [vmem:[#allocation2 + $0x1c9] sm:$0xff] }
 0x24f   :  { %5003 = vmatmul.msk.f32.gmra.mxu3 %vm39_vm1, %v6584_v55  ;;  %vm1898_vm0 = vcmp.ge.f32.partialorder %v1866_v26, 0.0  ;;  %v1930_v62 = vmul.f32 0.01, %v1866_v26 }
 0x250   :  { %v1518_v22 = vpop.f32.mrf.mxu0 }
 0x251   :  { %v1791_v20 = vpop.f32.mrf.mxu1  ;;  %v1962_v40 = vsel %vm1898_vm0, %v1866_v26, %v1930_v62  ;;  %v1562_v16 = vadd.f32 %v1518_v22, %v1278_v25  ;;  %v6633_v26 = vld [vmem:[#allocation2 + $0x1d0] sm:$0xff] }
 0x252   :  { %1994 = vst.msk [vmem:[#allocation3 + $0xc8] sm:$0xff] %vm44_vm2, %v1962_v40 }
 0x253   :  { %v1835_v19 = vadd.f32 %v1791_v20, %v1562_v16  ;;  %5021 = vmatmul.msk.f32.gmra.mxu0 %vm39_vm1, %v6334_v11  ;;  %v1281_v11 = vadd.f32 %v6365_v9, %v6384_v50  ;;  %v6626_v9 = vpop.f32.mrf.mxu2  ;;  %v6628_v50 = vpop.f32.mrf.mxu3  ;;  %v6646_v16 = vld [vmem:[#allocation2 + $0x1d1] sm:$0xff] }
 0x254   :  { %5053 = vmatmul.msk.f32.gmra.mxu1 %vm39_vm1, %v6353_v1 }
 0x255   :  { %v1867_v29 = vadd.f32 %v6605_v3, %v1835_v19  ;;  %v6648_v19 = vld [vmem:[#allocation2 + $0x1d8] sm:$0xff] }
 0x256   :  { %4971 = vmatmul.msk.f32.gmra.mxu2 %vm39_vm1, %v6608_v46 }
 0x257   :  { %5004 = vmatmul.msk.f32.gmra.mxu3 %vm39_vm1, %v6610_v36  ;;  %vm1899_vm6 = vcmp.ge.f32.partialorder %v1867_v29, 0.0  ;;  %v1931_v1 = vmul.f32 0.01, %v1867_v29 }
 0x258   :  { %v1521_v58 = vpop.f32.mrf.mxu0 }
 0x259   :  { %v1794_v60 = vpop.f32.mrf.mxu1  ;;  %v1963_v38 = vsel %vm1899_vm6, %v1867_v29, %v1931_v1  ;;  %v1563_v4 = vadd.f32 %v1521_v58, %v1281_v11  ;;  %v3388_v11 = vld [vmem:[%s7622_s5 + $0x20] sm:$0xff] }
 0x25a   :  { %1995 = vst.msk [vmem:[#allocation3 + $0xd0] sm:$0xff] %vm44_vm2, %v1963_v38  ;;  %3620 = vmatpush.msra.mxu3 %v3388_v11  ;;  %v3395_v11 = vld [vmem:[%s7622_s5 + $0x58] sm:$0xff] }
 0x25b   :  { %v1836_v49 = vadd.f32 %v1794_v60, %v1563_v4  ;;  %5022 = vmatmul.msk.f32.gmra.mxu0 %vm39_vm1, %v6355_v45  ;;  %v1284_v45 = vadd.f32 %v6386_v7, %v6411_v6  ;;  %v3261_v7 = vld [vmem:[#allocation3 + $0xc0] ss:$2 sm:$0xff]  ;;  %v3263_v6 = vld [vmem:[#allocation3 + $0xc1] ss:$2 sm:$0xff]  ;;  %v6662_v1 = vpop.f32.mrf.mxu3  ;;  %v3387_v60 = vld [vmem:[%s7622_s5 + $0x18] sm:$0xff] }
 0x25c   :  { %5054 = vmatmul.msk.f32.gmra.mxu1 %vm39_vm1, %v6373_v8  ;;  %v3264_v12 = vmax.f32 %v3261_v7, %v3263_v6  ;;  %3621 = vmatpush.msra.mxu3 %v3387_v60  ;;  %v6682_v7 = vld [vmem:[#allocation2 + $0x1d9] sm:$0xff] }
 0x25d   :  { %v1868_v15 = vadd.f32 %v6605_v3, %v1836_v49  ;;  %v6684_v6 = vld [vmem:[#allocation2 + $0x1e0] sm:$0xff] }
 0x25e   :  { %4972 = vmatmul.msk.f32.gmra.mxu2 %vm39_vm1, %v6631_v31 }
 0x25f   :  { %5005 = vmatmul.msk.f32.gmra.mxu3 %vm39_vm1, %v6633_v26  ;;  %vm1900_vm7 = vcmp.ge.f32.partialorder %v1868_v15, 0.0  ;;  %v1932_v8 = vmul.f32 0.01, %v1868_v15 }
 0x260   :  { %v1524_v25 = vpop.f32.mrf.mxu0 }
 0x261   :  { %v1797_v62 = vpop.f32.mrf.mxu1  ;;  %v1964_v22 = vsel %vm1900_vm7, %v1868_v15, %v1932_v8  ;;  %v1564_v20 = vadd.f32 %v1524_v25, %v1284_v45  ;;  %v3396_v45 = vld [vmem:[%s7622_s5 + $0x60] sm:$0xff] }
 0x262   :  { %1996 = vst.msk [vmem:[#allocation3 + $0xd8] sm:$0xff] %vm44_vm2, %v1964_v22  ;;  %3507 = vmatpush.msra.mxu2 %v3396_v45  ;;  %v3385_v22 = vld [vmem:[%s7622_s5 + $0x8] sm:$0xff]  ;;  %v3392_v45 = vld [vmem:[%s7622_s5 + $0x40] sm:$0xff] }
 0x263   :  { %v1837_v40 = vadd.f32 %v1797_v62, %v1564_v20  ;;  %5023 = vmatmul.msk.f32.gmra.mxu0 %vm39_vm1, %v6375_v10  ;;  %v1287_v10 = vadd.f32 %v6413_v14, %v6443_v52  ;;  %v3386_v14 = vld [vmem:[%s7622_s5 + $0x10] sm:$0xff] }
 0x264   :  { %5055 = vmatmul.msk.f32.gmra.mxu1 %vm39_vm1, %v6392_v23  ;;  %v6660_v23 = vpop.f32.mrf.mxu2  ;;  %3622 = vmatpush.msra.mxu3 %v3386_v14  ;;  %v6715_v14 = vld [vmem:[#allocation2 + $0x1e1] sm:$0xff] }
 0x265   :  { %v1869_v29 = vadd.f32 %v6605_v3, %v1837_v40  ;;  %3508 = vmatpush.msra.mxu2 %v3395_v11 }
 0x266   :  { %4973 = vmatmul.msk.f32.gmra.mxu2 %vm39_vm1, %v6646_v16  ;;  %3623 = vmatpush.msra.mxu3 %v3385_v22 }
 0x267   :  { %5006 = vmatmul.msk.f32.gmra.mxu3 %vm39_vm1, %v6648_v19  ;;  %vm1901_vm8 = vcmp.ge.f32.partialorder %v1869_v29, 0.0  ;;  %v1933_v58 = vmul.f32 0.01, %v1869_v29 }
 0x268   :  { %v1527_v38 = vpop.f32.mrf.mxu0 }
 0x269   :  { %v1800_v4 = vpop.f32.mrf.mxu1  ;;  %v1965_v49 = vsel %vm1901_vm8, %v1869_v29, %v1933_v58  ;;  %v1565_v15 = vadd.f32 %v1527_v38, %v1287_v10  ;;  %v3266_v52 = vld [vmem:[#allocation3 + $0xd0] ss:$2 sm:$0xff]  ;;  %v3269_v62 = vld [vmem:[#allocation3 + $0xd1] ss:$2 sm:$0xff]  ;;  %v6701_v38 = vpop.f32.mrf.mxu3 }
 0x26a   :  { %1997 = vst.msk [vmem:[#allocation3 + $0xe0] sm:$0xff] %vm44_vm2, %v1965_v49  ;;  %v3267_v8 = vmax.f32 %v3264_v12, %v3266_v52  ;;  %v3393_v49 = vld [vmem:[%s7622_s5 + $0x48] sm:$0xff] }
 0x26b   :  { %v1838_v25 = vadd.f32 %v1800_v4, %v1565_v15  ;;  %5024 = vmatmul.msk.f32.gmra.mxu0 %vm39_vm1, %v6395_v57  ;;  %v3384_v57 = vld [vmem:[%s7622_s5] sm:$0xff]  ;;  %v6717_v52 = vld [vmem:[#allocation2 + $0x1e8] sm:$0xff] }
 0x26c   :  { %5056 = vmatmul.msk.f32.gmra.mxu1 %vm39_vm1, %v6416_v59  ;;  %v3270_v20 = vmax.f32 %v3267_v8, %v3269_v62  ;;  %v1290_v59 = vadd.f32 %v6445_v17, %v6466_v18  ;;  %v6699_v60 = vpop.f32.mrf.mxu2  ;;  %3624 = vmatpush.msra.mxu3 %v3384_v57  ;;  %v3394_v17 = vld [vmem:[%s7622_s5 + $0x50] sm:$0xff] }
 0x26d   :  { %v1870_v40 = vadd.f32 %v6605_v3, %v1838_v25  ;;  %3509 = vmatpush.msra.mxu2 %v3394_v17 }
 0x26e   :  { %4974 = vmatmul.msk.f32.gmra.mxu2 %vm39_vm1, %v6682_v7  ;;  %3271 = vst.msk [vmem:[#allocation4 + $0x30] sm:$0xff] %vm44_vm2, %v3270_v20 }
 0x26f   :  { %5007 = vmatmul.msk.f32.gmra.mxu3 %vm39_vm1, %v6684_v6  ;;  %vm1902_vm9 = vcmp.ge.f32.partialorder %v1870_v40, 0.0  ;;  %v1934_v29 = vmul.f32 0.01, %v1870_v40  ;;  %3510 = vmatpush.msra.mxu2 %v3393_v49 }
 0x270   :  { %v1530_v10 = vpop.f32.mrf.mxu0 }
 0x271   :  { %v1803_v58 = vpop.f32.mrf.mxu1  ;;  %v1966_v4 = vsel %vm1902_vm9, %v1870_v40, %v1934_v29  ;;  %v1566_v12 = vadd.f32 %v1530_v10, %v1290_v59  ;;  %3511 = vmatpush.msra.mxu2 %v3392_v45  ;;  %v6731_v40 = vpop.f32.mrf.mxu3  ;;  %v6740_v59 = vld [vmem:[#allocation2 + $0x1f0] sm:$0xff]  ;;  %v2388_v29 = vadd.f32 %v6492_v27, %v6515_v0 }
 0x272   :  { %1998 = vst.msk [vmem:[#allocation3 + $0xe8] sm:$0xff] %vm44_vm2, %v1966_v4 }
 0x273   :  { %v1839_v18 = vadd.f32 %v1803_v58, %v1566_v12  ;;  %5025 = vmatmul.msk.f32.gmra.mxu0 %vm39_vm1, %v6418_v37  ;;  %v1293_v37 = vadd.f32 %v6468_v41, %v6490_v48  ;;  %v6738_v48 = vld [vmem:[#allocation2 + $0x1e9] sm:$0xff]  ;;  %v6753_v12 = vld [vmem:[#allocation2 + $0x1f1] sm:$0xff] }
 0x274   :  { %5057 = vmatmul.msk.f32.gmra.mxu1 %vm39_vm1, %v6433_v61  ;;  %v6729_v20 = vpop.f32.mrf.mxu2 }
 0x275   :  { %v1871_v15 = vadd.f32 %v6605_v3, %v1839_v18 }
 0x276   :  { %4975 = vmatmul.msk.f32.gmra.mxu2 %vm39_vm1, %v6715_v14 }
 0x277   :  { %5008 = vmatmul.msk.f32.gmra.mxu3 %vm39_vm1, %v6717_v52  ;;  %vm1903_vm10 = vcmp.ge.f32.partialorder %v1871_v15, 0.0  ;;  %v1935_v61 = vmul.f32 0.01, %v1871_v15 }
 0x278   :  { %v1533_v8 = vpop.f32.mrf.mxu0 }
 0x279   :  { %v1806_v25 = vpop.f32.mrf.mxu1  ;;  %v1967_v62 = vsel %vm1903_vm10, %v1871_v15, %v1935_v61  ;;  %v1567_v22 = vadd.f32 %v1533_v8, %v1293_v37  ;;  %v6757_v27 = vpop.f32.mrf.mxu3  ;;  %v3273_v0 = vld [vmem:[#allocation3 + $0xe0] ss:$2 sm:$0xff]  ;;  %v3275_v18 = vld [vmem:[#allocation3 + $0xe1] ss:$2 sm:$0xff]  ;;  %v6760_v15 = vld [vmem:[#allocation2 + $0x1f8] sm:$0xff] }
 0x27a   :  { %1999 = vst.msk [vmem:[#allocation3 + $0xf0] sm:$0xff] %vm44_vm2, %v1967_v62  ;;  %v3276_v61 = vmax.f32 %v3273_v0, %v3275_v18 }
 0x27b   :  { %v1840_v57 = vadd.f32 %v1806_v25, %v1567_v22  ;;  %5026 = vmatmul.msk.f32.gmra.mxu0 %vm39_vm1, %v6435_v39 }
 0x27c   :  { %5058 = vmatmul.msk.f32.gmra.mxu1 %vm39_vm1, %v6456_v21  ;;  %v6755_v17 = vpop.f32.mrf.mxu2 }
 0x27d   :  { %v1872_v41 = vadd.f32 %v6605_v3, %v1840_v57 }
 0x27e   :  { %4976 = vmatmul.msk.f32.gmra.mxu2 %vm39_vm1, %v6738_v48 }
 0x27f   :  { %5009 = vmatmul.msk.f32.gmra.mxu3 %vm39_vm1, %v6740_v59  ;;  %vm1904_vm11 = vcmp.ge.f32.partialorder %v1872_v41, 0.0  ;;  %v1936_v39 = vmul.f32 0.01, %v1872_v41 }
 0x280   :  { %v2628_v11 = vpop.f32.mrf.mxu0 }
 0x281   :  { %v2901_v10 = vpop.f32.mrf.mxu1  ;;  %v1968_v21 = vsel %vm1904_vm11, %v1872_v41, %v1936_v39  ;;  %v2724_v58 = vadd.f32 %v2628_v11, %v2388_v29  ;;  %v6774_v29 = vld [vmem:[#allocation2 + $0x1f9] sm:$0xff] }
 0x282   :  { %2000 = vst.msk [vmem:[#allocation3 + $0xf8] sm:$0xff] %vm44_vm2, %v1968_v21  ;;  %v3416_v39 = vld [vmem:[#allocation4] sm:$0xff] }
 0x283   :  { %v2997_v4 = vadd.f32 %v2901_v10, %v2724_v58  ;;  %5027 = vmatmul.msk.f32.gmra.mxu0 %vm39_vm1, %v6458_v34  ;;  %v2391_v34 = vadd.f32 %v6517_v56, %v6549_v35 }
 0x284   :  { %5059 = vmatmul.msk.f32.gmra.mxu1 %vm39_vm1, %v6475_v63  ;;  %v6782_v11 = vpop.f32.mrf.mxu2 }
 0x285   :  { %v3029_v49 = vadd.f32 %v6605_v3, %v2997_v4 }
 0x286   :  { %4977 = vmatmul.msk.f32.gmra.mxu2 %vm39_vm1, %v6753_v12 }
 0x287   :  { %5010 = vmatmul.msk.f32.gmra.mxu3 %vm39_vm1, %v6760_v15  ;;  %vm3061_vm12 = vcmp.ge.f32.partialorder %v3029_v49, 0.0  ;;  %v3093_v63 = vmul.f32 0.01, %v3029_v49 }
 0x288   :  { %v2631_v45 = vpop.f32.mrf.mxu0 }
 0x289   :  { %v2904_v37 = vpop.f32.mrf.mxu1  ;;  %v3125_v8 = vsel %vm3061_vm12, %v3029_v49, %v3093_v63  ;;  %v2725_v25 = vadd.f32 %v2631_v45, %v2391_v34  ;;  %v3278_v62 = vld [vmem:[#allocation3 + $0xf0] ss:$2 sm:$0xff]  ;;  %v3281_v41 = vld [vmem:[#allocation3 + $0xf1] ss:$2 sm:$0xff]  ;;  %v3417_v49 = vld [vmem:[#allocation4 + $0x8] sm:$0xff]  ;;  %v2397_v34 = vadd.f32 %v6571_v42, %v6594_v32 }
 0x28a   :  { %3157 = vst.msk [vmem:[#allocation3 + $0x100] sm:$0xff] %vm44_vm2, %v3125_v8  ;;  %v3279_v22 = vmax.f32 %v3276_v61, %v3278_v62  ;;  %v3433_v32 = vld [vmem:[#allocation4 + $0x9] sm:$0xff] }
 0x28b   :  { %v2998_v57 = vadd.f32 %v2904_v37, %v2725_v25  ;;  %5028 = vmatmul.msk.f32.gmra.mxu0 %vm39_vm1, %v6478_v28  ;;  %v2394_v28 = vadd.f32 %v6551_v5, %v6569_v54  ;;  %v3432_v54 = vld [vmem:[#allocation4 + $0x1] sm:$0xff]  ;;  %v3418_v62 = vld [vmem:[#allocation4 + $0x10] sm:$0xff] }
 0x28c   :  { %5060 = vmatmul.msk.f32.gmra.mxu1 %vm39_vm1, %v6499_v33  ;;  %v3282_v56 = vmax.f32 %v3279_v22, %v3281_v41  ;;  %v6784_v33 = vpop.f32.mrf.mxu3  ;;  %v6796_v61 = vpop.f32.mrf.mxu2  ;;  %v2400_v22 = vadd.f32 %v6596_v24, %v6626_v9  ;;  %v3434_v24 = vld [vmem:[#allocation4 + $0x11] sm:$0xff] }
 0x28d   :  { %v3030_v35 = vadd.f32 %v6605_v3, %v2998_v57 }
 0x28e   :  { %4978 = vmatmul.msk.f32.gmra.mxu2 %vm39_vm1, %v6774_v29  ;;  %3283 = vst.msk [vmem:[#allocation4 + $0x38] sm:$0xff] %vm44_vm2, %v3282_v56 }
 0x28f   :  { %5091 = vmatmul.msk.f32.vlgmr.msra.gmra.mxu3 %vm44_vm2, %v3416_v39  ;;  %vm3062_vm13 = vcmp.ge.f32.partialorder %v3030_v35, 0.0  ;;  %v3094_v10 = vmul.f32 0.01, %v3030_v35 }
 0x290   :  { %v2634_v21 = vpop.f32.mrf.mxu0 }
 0x291   :  { %v2907_v58 = vpop.f32.mrf.mxu1  ;;  %v3126_v4 = vsel %vm3062_vm13, %v3030_v35, %v3094_v10  ;;  %v2726_v0 = vadd.f32 %v2634_v21, %v2394_v28 }
 0x292   :  { %3158 = vst.msk [vmem:[#allocation3 + $0x108] sm:$0xff] %vm44_vm2, %v3126_v4  ;;  %v2403_v4 = vadd.f32 %v6628_v50, %v6660_v23 }
 0x293   :  { %v2999_v18 = vadd.f32 %v2907_v58, %v2726_v0  ;;  %5029 = vmatmul.msk.f32.gmra.mxu0 %vm39_vm1, %v6501_v51  ;;  %v3419_v58 = vld [vmem:[#allocation4 + $0x18] sm:$0xff] }
 0x294   :  { %5061 = vmatmul.msk.f32.gmra.mxu1 %vm39_vm1, %v6520_v2  ;;  %v6798_v51 = vpop.f32.mrf.mxu3 }
 0x295   :  { %v3031_v5 = vadd.f32 %v6605_v3, %v2999_v18 }
 0x296   :  { %5075 = vmatmul.msk.f32.vlgmr.msra.gmra.mxu2 %vm44_vm2, %v3432_v54 }
 0x297   :  { %5092 = vmatmul.msk.f32.gmra.mxu3 %vm44_vm2, %v3417_v49  ;;  %vm3063_vm14 = vcmp.ge.f32.partialorder %v3031_v5, 0.0  ;;  %v3095_v63 = vmul.f32 0.01, %v3031_v5 }
 0x298   :  { %v2637_v45 = vpop.f32.mrf.mxu0 }
 0x299   :  { %v2910_v37 = vpop.f32.mrf.mxu1  ;;  %v3127_v2 = vsel %vm3063_vm14, %v3031_v5, %v3095_v63  ;;  %v2727_v8 = vadd.f32 %v2637_v45, %v2397_v34  ;;  %v3285_v9 = vld [vmem:[#allocation3 + $0x100] ss:$2 sm:$0xff]  ;;  %v3287_v10 = vld [vmem:[#allocation3 + $0x101] ss:$2 sm:$0xff] }
 0x29a   :  { %3159 = vst.msk [vmem:[#allocation3 + $0x110] sm:$0xff] %vm44_vm2, %v3127_v2  ;;  %v3288_v5 = vmax.f32 %v3285_v9, %v3287_v10 }
 0x29b   :  { %v3000_v25 = vadd.f32 %v2910_v37, %v2727_v8  ;;  %5030 = vmatmul.msk.f32.gmra.mxu0 %vm39_vm1, %v6522_v43  ;;  %v3435_v8 = vld [vmem:[#allocation4 + $0x19] sm:$0xff] }
 0x29c   :  { %5062 = vmatmul.msk.f32.gmra.mxu1 %vm39_vm1, %v6539_v13  ;;  %v6811_v13 = vpop.f32.mrf.mxu2  ;;  %v6813_v39 = vpop.f32.mrf.mxu3 }
 0x29d   :  { %v3032_v42 = vadd.f32 %v6605_v3, %v3000_v25  ;;  %v3420_v25 = vld [vmem:[#allocation4 + $0x20] sm:$0xff] }
 0x29e   :  { %5076 = vmatmul.msk.f32.gmra.mxu2 %vm44_vm2, %v3433_v32 }
 0x29f   :  { %5093 = vmatmul.msk.f32.gmra.mxu3 %vm44_vm2, %v3418_v62  ;;  %vm3064_vm15 = vcmp.ge.f32.partialorder %v3032_v42, 0.0  ;;  %v3096_v57 = vmul.f32 0.01, %v3032_v42 }
 0x2a0   :  { %v2640_v41 = vpop.f32.mrf.mxu0 }
 0x2a1   :  { %v2913_v56 = vpop.f32.mrf.mxu1  ;;  %v3128_v35 = vsel %vm3064_vm15, %v3032_v42, %v3096_v57  ;;  %v2728_v43 = vadd.f32 %v2640_v41, %v2400_v22 }
 0x2a2   :  { %3160 = vst.msk [vmem:[#allocation3 + $0x118] sm:$0xff] %vm44_vm2, %v3128_v35  ;;  %v3421_v35 = vld [vmem:[#allocation4 + $0x28] sm:$0xff] }
 0x2a3   :  { %v3001_v28 = vadd.f32 %v2913_v56, %v2728_v43  ;;  %5031 = vmatmul.msk.f32.gmra.mxu0 %vm39_vm1, %v6541_v47  ;;  %v3436_v56 = vld [vmem:[#allocation4 + $0x21] sm:$0xff] }
 0x2a4   :  { %5063 = vmatmul.msk.f32.gmra.mxu1 %vm39_vm1, %v6558_v53  ;;  %v6829_v23 = vpop.f32.mrf.mxu2  ;;  %v6831_v37 = vpop.f32.mrf.mxu3 }
 0x2a5   :  { %v3033_v21 = vadd.f32 %v6605_v3, %v3001_v28 }
 0x2a6   :  { %5077 = vmatmul.msk.f32.gmra.mxu2 %vm44_vm2, %v3434_v24 }
 0x2a7   :  { %5094 = vmatmul.msk.f32.gmra.mxu3 %vm44_vm2, %v3419_v58  ;;  %vm3065_vm3 = vcmp.ge.f32.partialorder %v3033_v21, 0.0  ;;  %v3097_v0 = vmul.f32 0.01, %v3033_v21  ;;  %v2412_v58 = vadd.f32 %v6731_v40, %v6755_v17  ;;  %v6875_v40 = vld [vmem:[#allocation4 + $0x31] sm:$0xff] }
 0x2a8   :  { %v2643_v18 = vpop.f32.mrf.mxu0 }
 0x2a9   :  { %v2916_v47 = vpop.f32.mrf.mxu1  ;;  %v3129_v54 = vsel %vm3065_vm3, %v3033_v21, %v3097_v0  ;;  %v2729_v53 = vadd.f32 %v2643_v18, %v2403_v4  ;;  %v3290_v49 = vld [vmem:[#allocation3 + $0x110] ss:$2 sm:$0xff]  ;;  %v3293_v45 = vld [vmem:[#allocation3 + $0x111] ss:$2 sm:$0xff] }
 0x2aa   :  { %3161 = vst.msk [vmem:[#allocation3 + $0x120] sm:$0xff] %vm44_vm2, %v3129_v54  ;;  %v3291_v34 = vmax.f32 %v3288_v5, %v3290_v49  ;;  %v3422_v21 = vld [vmem:[#allocation4 + $0x30] sm:$0xff] }
 0x2ab   :  { %v3002_v63 = vadd.f32 %v2916_v47, %v2729_v53  ;;  %5032 = vmatmul.msk.f32.gmra.mxu0 %vm39_vm1, %v6561_v44  ;;  %v2406_v44 = vadd.f32 %v6662_v1, %v6699_v60  ;;  %v2409_v1 = vadd.f32 %v6701_v38, %v6729_v20  ;;  %v6859_v20 = vld [vmem:[#allocation4 + $0x29] sm:$0xff] }
 0x2ac   :  { %5064 = vmatmul.msk.f32.gmra.mxu1 %vm39_vm1, %v6582_v30  ;;  %v3294_v50 = vmax.f32 %v3291_v34, %v3293_v45  ;;  %v6849_v60 = vpop.f32.mrf.mxu2  ;;  %v6851_v43 = vpop.f32.mrf.mxu3  ;;  %v3423_v34 = vld [vmem:[#allocation4 + $0x38] sm:$0xff] }
 0x2ad   :  { %v3034_v2 = vadd.f32 %v6605_v3, %v3002_v63  ;;  %v2415_v63 = vadd.f32 %v6757_v27, %v6782_v11 }
 0x2ae   :  { %5078 = vmatmul.msk.f32.gmra.mxu2 %vm44_vm2, %v3435_v8  ;;  %3295 = vst.msk [vmem:[#allocation4 + $0x40] sm:$0xff] %vm44_vm2, %v3294_v50 }
 0x2af   :  { %5095 = vmatmul.msk.f32.gmra.mxu3 %vm44_vm2, %v3420_v25  ;;  %vm3066_vm4 = vcmp.ge.f32.partialorder %v3034_v2, 0.0  ;;  %v3098_v30 = vmul.f32 0.01, %v3034_v2 }
 0x2b0   :  { %v2646_v42 = vpop.f32.mrf.mxu0 }
 0x2b1   :  { %v2919_v32 = vpop.f32.mrf.mxu1  ;;  %v3130_v62 = vsel %vm3066_vm4, %v3034_v2, %v3098_v30  ;;  %v2730_v22 = vadd.f32 %v2646_v42, %v2406_v44 }
 0x2b2   :  { %3162 = vst.msk [vmem:[#allocation3 + $0x128] sm:$0xff] %vm44_vm2, %v3130_v62 }
 0x2b3   :  { %v3003_v57 = vadd.f32 %v2919_v32, %v2730_v22  ;;  %5033 = vmatmul.msk.f32.gmra.mxu0 %vm39_vm1, %v6584_v55 }
 0x2b4   :  { %5065 = vmatmul.msk.f32.gmra.mxu1 %vm39_vm1, %v6608_v46  ;;  %v6868_v5 = vpop.f32.mrf.mxu3 }
 0x2b5   :  { %v3035_v41 = vadd.f32 %v6605_v3, %v3003_v57  ;;  %v6893_v22 = vld [vmem:[#allocation4 + $0x39] sm:$0xff] }
 0x2b6   :  { %5079 = vmatmul.msk.f32.gmra.mxu2 %vm44_vm2, %v3436_v56  ;;  %v6895_v57 = vld [vmem:[#allocation4 + $0x40] sm:$0xff] }
 0x2b7   :  { %5096 = vmatmul.msk.f32.gmra.mxu3 %vm44_vm2, %v3421_v35  ;;  %vm3067_vm5 = vcmp.ge.f32.partialorder %v3035_v41, 0.0  ;;  %v3099_v55 = vmul.f32 0.01, %v3035_v41 }
 0x2b8   :  { %v2649_v28 = vpop.f32.mrf.mxu0 }
 0x2b9   :  { %v2922_v24 = vpop.f32.mrf.mxu1  ;;  %v3131_v46 = vsel %vm3067_vm5, %v3035_v41, %v3099_v55  ;;  %v2731_v9 = vadd.f32 %v2649_v28, %v2409_v1  ;;  %v3297_v17 = vld [vmem:[#allocation3 + $0x120] ss:$2 sm:$0xff]  ;;  %v3299_v53 = vld [vmem:[#allocation3 + $0x121] ss:$2 sm:$0xff] }
 0x2ba   :  { %3163 = vst.msk [vmem:[#allocation3 + $0x130] sm:$0xff] %vm44_vm2, %v3131_v46 }
 0x2bb   :  { %v3004_v10 = vadd.f32 %v2922_v24, %v2731_v9  ;;  %5034 = vmatmul.msk.f32.gmra.mxu0 %vm39_vm1, %v6610_v36 }
 0x2bc   :  { %5066 = vmatmul.msk.f32.gmra.mxu1 %vm39_vm1, %v6631_v31  ;;  %v6866_v31 = vpop.f32.mrf.mxu2  ;;  %v6890_v11 = vpop.f32.mrf.mxu3 }
 0x2bd   :  { %v3036_v38 = vadd.f32 %v6605_v3, %v3004_v10 }
 0x2be   :  { %5080 = vmatmul.msk.f32.gmra.mxu2 %vm44_vm2, %v6859_v20 }
 0x2bf   :  { %5097 = vmatmul.msk.f32.gmra.mxu3 %vm44_vm2, %v3422_v21  ;;  %vm3068_vm0 = vcmp.ge.f32.partialorder %v3036_v38, 0.0  ;;  %v3100_v4 = vmul.f32 0.01, %v3036_v38 }
 0x2c0   :  { %v2652_v0 = vpop.f32.mrf.mxu0 }
 0x2c1   :  { %v2925_v36 = vpop.f32.mrf.mxu1  ;;  %v3132_v18 = vsel %vm3068_vm0, %v3036_v38, %v3100_v4  ;;  %v2732_v47 = vadd.f32 %v2652_v0, %v2412_v58 }
 0x2c2   :  { %3164 = vst.msk [vmem:[#allocation3 + $0x138] sm:$0xff] %vm44_vm2, %v3132_v18 }
 0x2c3   :  { %v3005_v54 = vadd.f32 %v2925_v36, %v2732_v47  ;;  %5035 = vmatmul.msk.f32.gmra.mxu0 %vm39_vm1, %v6633_v26 }
 0x2c4   :  { %5067 = vmatmul.msk.f32.gmra.mxu1 %vm39_vm1, %v6646_v16  ;;  %v3300_v16 = vmax.f32 %v3297_v17, %v3299_v53  ;;  %v6888_v27 = vpop.f32.mrf.mxu2  ;;  %v6916_v46 = vpop.f32.mrf.mxu3 }
 0x2c5   :  { %v3037_v49 = vadd.f32 %v6605_v3, %v3005_v54 }
 0x2c6   :  { %5081 = vmatmul.msk.f32.gmra.mxu2 %vm44_vm2, %v6875_v40 }
 0x2c7   :  { %5098 = vmatmul.msk.f32.gmra.mxu3 %vm44_vm2, %v3423_v34  ;;  %vm3069_vm6 = vcmp.ge.f32.partialorder %v3037_v49, 0.0  ;;  %v3101_v26 = vmul.f32 0.01, %v3037_v49 }
 0x2c8   :  { %v2655_v45 = vpop.f32.mrf.mxu0 }
 0x2c9   :  { %v2928_v50 = vpop.f32.mrf.mxu1  ;;  %v3133_v2 = vsel %vm3069_vm6, %v3037_v49, %v3101_v26  ;;  %v2733_v8 = vadd.f32 %v2655_v45, %v2415_v63  ;;  %v3302_v25 = vld [vmem:[#allocation3 + $0x130] ss:$2 sm:$0xff]  ;;  %v3305_v42 = vld [vmem:[#allocation3 + $0x131] ss:$2 sm:$0xff] }
 0x2ca   :  { %3165 = vst.msk [vmem:[#allocation3 + $0x140] sm:$0xff] %vm44_vm2, %v3133_v2  ;;  %v3303_v44 = vmax.f32 %v3300_v16, %v3302_v25  ;;  %v2430_v2 = vadd.f32 %v6851_v43, %v6866_v31 }
 0x2cb   :  { %v3006_v30 = vadd.f32 %v2928_v50, %v2733_v8  ;;  %5036 = vmatmul.msk.f32.gmra.mxu0 %vm39_vm1, %v6648_v19  ;;  %v2418_v19 = vadd.f32 %v6784_v33, %v6796_v61 }
 0x2cc   :  { %5068 = vmatmul.msk.f32.gmra.mxu1 %vm39_vm1, %v6682_v7  ;;  %v3306_v32 = vmax.f32 %v3303_v44, %v3305_v42  ;;  %v6914_v61 = vpop.f32.mrf.mxu2  ;;  %v2786_v42 = vld [vmem:[#allocation2 + $0x201] sm:$0xff] }
 0x2cd   :  { %v3038_v62 = vadd.f32 %v6605_v3, %v3006_v30  ;;  %v2513_v30 = vld [vmem:[#allocation2 + $0x200] sm:$0xff] }
 0x2ce   :  { %5082 = vmatmul.msk.f32.gmra.mxu2 %vm44_vm2, %v6893_v22  ;;  %3307 = vst.msk [vmem:[#allocation4 + $0x48] sm:$0xff] %vm44_vm2, %v3306_v32 }
 0x2cf   :  { %5099 = vmatmul.msk.f32.gmra.mxu3 %vm44_vm2, %v6895_v57  ;;  %vm3070_vm7 = vcmp.ge.f32.partialorder %v3038_v62, 0.0  ;;  %v3102_v7 = vmul.f32 0.01, %v3038_v62 }
 0x2d0   :  { %v2658_v41 = vpop.f32.mrf.mxu0 }
 0x2d1   :  { %v2931_v56 = vpop.f32.mrf.mxu1  ;;  %v3134_v35 = vsel %vm3070_vm7, %v3038_v62, %v3102_v7  ;;  %v2734_v1 = vadd.f32 %v2658_v41, %v2418_v19  ;;  %v2433_v41 = vadd.f32 %v6868_v5, %v6888_v27  ;;  %v2436_v5 = vadd.f32 %v6890_v11, %v6914_v61 }
 0x2d2   :  { %3166 = vst.msk [vmem:[#allocation3 + $0x148] sm:$0xff] %vm44_vm2, %v3134_v35 }
 0x2d3   :  { %v3007_v55 = vadd.f32 %v2931_v56, %v2734_v1  ;;  %5037 = vmatmul.msk.f32.gmra.mxu0 %vm39_vm1, %v6684_v6  ;;  %v2421_v6 = vadd.f32 %v6798_v51, %v6811_v13  ;;  %v2424_v51 = vadd.f32 %v6813_v39, %v6829_v23  ;;  %v2427_v39 = vadd.f32 %v6831_v37, %v6849_v60 }
 0x2d4   :  { %5069 = vmatmul.msk.f32.gmra.mxu1 %vm39_vm1, %v6715_v14  ;;  %v6940_v23 = vpop.f32.mrf.mxu2 }
 0x2d5   :  { %v3039_v28 = vadd.f32 %v6605_v3, %v3007_v55  ;;  %v6910_v24 = vld [vmem:[#allocation4 + $0x41] sm:$0xff] }
 0x2d6   :  { %v6912_v33 = vld [vmem:[#allocation4 + $0x48] sm:$0xff]  ;;  %5083 = vmatmul.msk.f32.gmra.mxu2 %vm44_vm2, %v6910_v24 }
 0x2d7   :  { %5100 = vmatmul.msk.f32.gmra.mxu3 %vm44_vm2, %v6912_v33  ;;  %vm3071_vm8 = vcmp.ge.f32.partialorder %v3039_v28, 0.0  ;;  %v3103_v14 = vmul.f32 0.01, %v3039_v28  ;;  %v2514_v55 = vld [vmem:[#allocation2 + $0x208] sm:$0xff] }
 0x2d8   :  { %v2661_v9 = vpop.f32.mrf.mxu0 }
 0x2d9   :  { %v2934_v10 = vpop.f32.mrf.mxu1  ;;  %v3135_v38 = vsel %vm3071_vm8, %v3039_v28, %v3103_v14  ;;  %v2735_v21 = vadd.f32 %v2661_v9, %v2421_v6  ;;  %v2787_v28 = vld [vmem:[#allocation2 + $0x209] sm:$0xff] }
 0x2da   :  { %3167 = vst.msk [vmem:[#allocation3 + $0x150] sm:$0xff] %vm44_vm2, %v3135_v38 }
 0x2db   :  { %v3008_v58 = vadd.f32 %v2934_v10, %v2735_v21  ;;  %5038 = vmatmul.msk.f32.gmra.mxu0 %vm39_vm1, %v6717_v52  ;;  %v3309_v52 = vld [vmem:[#allocation3 + $0x140] ss:$2 sm:$0xff] }
 0x2dc   :  { %5070 = vmatmul.msk.f32.gmra.mxu1 %vm39_vm1, %v6738_v48  ;;  %v3311_v48 = vld [vmem:[#allocation3 + $0x141] ss:$2 sm:$0xff]  ;;  %v2232_v32 = vpop.f32.mrf.mxu2 }
 0x2dd   :  { %v3040_v4 = vadd.f32 %v6605_v3, %v3008_v58  ;;  %v3312_v63 = vmax.f32 %v3309_v52, %v3311_v48  ;;  %v2439_v52 = vadd.f32 %v6916_v46, %v6940_v23 }
 0x2df   :  { %vm3072_vm9 = vcmp.ge.f32.partialorder %v3040_v4, 0.0  ;;  %v3104_v13 = vmul.f32 0.01, %v3040_v4 }
 0x2e0   :  { %v2664_v0 = vpop.f32.mrf.mxu0 }
 0x2e1   :  { %v2937_v36 = vpop.f32.mrf.mxu1  ;;  %v3136_v18 = vsel %vm3072_vm9, %v3040_v4, %v3104_v13  ;;  %v2736_v47 = vadd.f32 %v2664_v0, %v2424_v51 }
 0x2e2   :  { %3168 = vst.msk [vmem:[#allocation3 + $0x158] sm:$0xff] %vm44_vm2, %v3136_v18 }
 0x2e3   :  { %v3009_v54 = vadd.f32 %v2937_v36, %v2736_v47  ;;  %5039 = vmatmul.msk.f32.gmra.mxu0 %vm39_vm1, %v6740_v59 }
 0x2e4   :  { %5071 = vmatmul.msk.f32.gmra.mxu1 %vm39_vm1, %v6753_v12  ;;  %v2235_v9 = vpop.f32.mrf.mxu2 }
 0x2e5   :  { %v3041_v17 = vadd.f32 %v6605_v3, %v3009_v54 }
 0x2e7   :  { %vm3073_vm10 = vcmp.ge.f32.partialorder %v3041_v17, 0.0  ;;  %v3105_v53 = vmul.f32 0.01, %v3041_v17 }
 0x2e8   :  { %v2667_v49 = vpop.f32.mrf.mxu0 }
 0x2e9   :  { %v2940_v34 = vpop.f32.mrf.mxu1  ;;  %v3137_v26 = vsel %vm3073_vm10, %v3041_v17, %v3105_v53  ;;  %v2737_v45 = vadd.f32 %v2667_v49, %v2427_v39  ;;  %v3314_v59 = vld [vmem:[#allocation3 + $0x150] ss:$2 sm:$0xff]  ;;  %v3317_v37 = vld [vmem:[#allocation3 + $0x151] ss:$2 sm:$0xff] }
 0x2ea   :  { %3169 = vst.msk [vmem:[#allocation3 + $0x160] sm:$0xff] %vm44_vm2, %v3137_v26  ;;  %v3315_v12 = vmax.f32 %v3312_v63, %v3314_v59  ;;  %v3407_v26 = vld [vmem:[%s7622_s5 + $0xb8] sm:$0xff] }
 0x2eb   :  { %v3010_v50 = vadd.f32 %v2940_v34, %v2737_v45  ;;  %5040 = vmatmul.msk.f32.gmra.mxu0 %vm39_vm1, %v6760_v15  ;;  %3746 = vmatpush.msrb.mxu2 %v3407_v26  ;;  %v7011_v26 = vld [vmem:[%s7621_s4] ss:$0 sm:$0xff] }
 0x2ec   :  { %5072 = vmatmul.msk.f32.gmra.mxu1 %vm39_vm1, %v6774_v29  ;;  %v3318_v60 = vmax.f32 %v3315_v12, %v3317_v37  ;;  %v2441_v29 = vpop.f32.mrf.mxu3  ;;  %v2238_v36 = vpop.f32.mrf.mxu2 }
 0x2ed   :  { %v3042_v16 = vadd.f32 %v6605_v3, %v3010_v50  ;;  %v2442_v12 = vadd.f32 %v2441_v29, %v2232_v32 }
 0x2ee   :  { %3319 = vst.msk [vmem:[#allocation4 + $0x50] sm:$0xff] %vm44_vm2, %v3318_v60 }
 0x2ef   :  { %vm3074_vm11 = vcmp.ge.f32.partialorder %v3042_v16, 0.0  ;;  %v3106_v8 = vmul.f32 0.01, %v3042_v16 }
 0x2f0   :  { %v2670_v25 = vpop.f32.mrf.mxu0 }
 0x2f1   :  { %v2943_v44 = vpop.f32.mrf.mxu1  ;;  %v3138_v15 = vsel %vm3074_vm11, %v3042_v16, %v3106_v8  ;;  %v2738_v62 = vadd.f32 %v2670_v25, %v2430_v2 }
 0x2f2   :  { %3170 = vst.msk [vmem:[#allocation3 + $0x168] sm:$0xff] %vm44_vm2, %v3138_v15 }
 0x2f3   :  { %v3011_v19 = vadd.f32 %v2943_v44, %v2738_v62  ;;  %5041 = vmatmul.msk.f32.gmra.mxu0 %vm39_vm1, %v2513_v30 }
 0x2f4   :  { %5073 = vmatmul.msk.f32.gmra.mxu1 %vm39_vm1, %v2786_v42  ;;  %v2444_v38 = vpop.f32.mrf.mxu3  ;;  %v2241_v50 = vpop.f32.mrf.mxu2 }
 0x2f5   :  { %v3043_v7 = vadd.f32 %v6605_v3, %v3011_v19  ;;  %v6955_v43 = vld [vmem:[#allocation4 + $0x49] sm:$0xff]  ;;  %v2445_v32 = vadd.f32 %v2444_v38, %v2235_v9 }
 0x2f6   :  { %v6957_v31 = vld [vmem:[#allocation4 + $0x50] sm:$0xff]  ;;  %5084 = vmatmul.msk.f32.gmra.mxu2 %vm44_vm2, %v6955_v43 }
 0x2f7   :  { %5101 = vmatmul.msk.f32.gmra.mxu3 %vm44_vm2, %v6957_v31  ;;  %vm3075_vm12 = vcmp.ge.f32.partialorder %v3043_v7, 0.0  ;;  %v3107_v56 = vmul.f32 0.01, %v3043_v7 }
 0x2f8   :  { %v2673_v35 = vpop.f32.mrf.mxu0 }
 0x2f9   :  { %v2946_v1 = vpop.f32.mrf.mxu1  ;;  %v3139_v6 = vsel %vm3075_vm12, %v3043_v7, %v3107_v56  ;;  %v2739_v14 = vadd.f32 %v2673_v35, %v2433_v41  ;;  %v3321_v18 = vld [vmem:[#allocation3 + $0x160] ss:$2 sm:$0xff]  ;;  %v3323_v47 = vld [vmem:[#allocation3 + $0x161] ss:$2 sm:$0xff]  ;;  %v3415_v35 = vld [vmem:[%s7622_s5 + $0xf8] sm:$0xff] }
 0x2fa   :  { %3171 = vst.msk [vmem:[#allocation3 + $0x170] sm:$0xff] %vm44_vm2, %v3139_v6  ;;  %v3324_v39 = vmax.f32 %v3321_v18, %v3323_v47  ;;  %3891 = vmatpush.msrb.mxu3 %v3415_v35  ;;  %v4079_v35 = vld [vmem:[%s7624_s7 + $0xf8] sm:$0xff] }
 0x2fb   :  { %v3012_v10 = vadd.f32 %v2946_v1, %v2739_v14  ;;  %5042 = vmatmul.msk.f32.gmra.mxu0 %vm39_vm1, %v2514_v55  ;;  %v3406_v1 = vld [vmem:[%s7622_s5 + $0xb0] sm:$0xff] }
 0x2fc   :  { %5074 = vmatmul.msk.f32.gmra.mxu1 %vm39_vm1, %v2787_v28  ;;  %v2447_v48 = vpop.f32.mrf.mxu3  ;;  %v2244_v7 = vpop.f32.mrf.mxu2  ;;  %3747 = vmatpush.msrb.mxu2 %v3406_v1  ;;  %v4063_v1 = vld [vmem:[%s7624_s7 + $0x78] sm:$0xff] }
 0x2fd   :  { %v3044_v21 = vadd.f32 %v6605_v3, %v3012_v10  ;;  %v2448_v14 = vadd.f32 %v2447_v48, %v2238_v36  ;;  %4144 = vmatpush.msrb.mxu0 %v4079_v35  ;;  %4209 = vmatpush.msrb.mxu1 %v4063_v1 }
 0x2ff   :  { %vm3076_vm13 = vcmp.ge.f32.partialorder %v3044_v21, 0.0  ;;  %v3108_v27 = vmul.f32 0.01, %v3044_v21 }
 0x300   :  { %v2676_v58 = vpop.f32.mrf.mxu0 }
 0x301   :  { %v2949_v4 = vpop.f32.mrf.mxu1  ;;  %v3140_v51 = vsel %vm3076_vm13, %v3044_v21, %v3108_v27  ;;  %v2740_v13 = vadd.f32 %v2676_v58, %v2436_v5  ;;  %v3414_v27 = vld [vmem:[%s7622_s5 + $0xf0] sm:$0xff] }
 0x302   :  { %3172 = vst.msk [vmem:[#allocation3 + $0x178] sm:$0xff] %vm44_vm2, %v3140_v51  ;;  %3892 = vmatpush.msrb.mxu3 %v3414_v27 }
 0x303   :  { %v3013_v0 = vadd.f32 %v2949_v4, %v2740_v13 }
 0x304   :  { %v2450_v2 = vpop.f32.mrf.mxu3  ;;  %v2247_v58 = vpop.f32.mrf.mxu2 }
 0x305   :  { %v3045_v54 = vadd.f32 %v6605_v3, %v3013_v0  ;;  %v2451_v18 = vadd.f32 %v2450_v2, %v2241_v50 }
 0x307   :  { %vm3077_vm1 = vcmp.ge.f32.partialorder %v3045_v54, 0.0  ;;  %v3109_v11 = vmul.f32 0.01, %v3045_v54 }
 0x308   :  { %v2679_v61 = vpop.f32.mrf.mxu0 }
 0x309   :  { %v2952_v17 = vpop.f32.mrf.mxu1  ;;  %v3141_v53 = vsel %vm3077_vm1, %v3045_v54, %v3109_v11  ;;  %v2741_v49 = vadd.f32 %v2679_v61, %v2439_v52  ;;  %v3326_v34 = vld [vmem:[#allocation3 + $0x170] ss:$2 sm:$0xff]  ;;  %v3329_v59 = vld [vmem:[#allocation3 + $0x171] ss:$2 sm:$0xff] }
 0x30a   :  { %3173 = vst.msk [vmem:[#allocation3 + $0x180] sm:$0xff] %vm44_vm2, %v3141_v53  ;;  %v3327_v63 = vmax.f32 %v3324_v39, %v3326_v34  ;;  %v3405_v53 = vld [vmem:[%s7622_s5 + $0xa8] sm:$0xff] }
 0x30b   :  { %v3014_v45 = vadd.f32 %v2952_v17, %v2741_v49  ;;  %3748 = vmatpush.msrb.mxu2 %v3405_v53  ;;  %v4078_v53 = vld [vmem:[%s7624_s7 + $0xf0] sm:$0xff] }
 0x30c   :  { %v3330_v46 = vmax.f32 %v3327_v63, %v3329_v59  ;;  %v2453_v55 = vpop.f32.mrf.mxu3  ;;  %v2250_v63 = vpop.f32.mrf.mxu2  ;;  %4145 = vmatpush.msrb.mxu0 %v4078_v53 }
 0x30d   :  { %v3046_v23 = vadd.f32 %v6605_v3, %v3014_v45  ;;  %v2454_v59 = vadd.f32 %v2453_v55, %v2244_v7 }
 0x30e   :  { %3331 = vst.msk [vmem:[#allocation4 + $0x58] sm:$0xff] %vm44_vm2, %v3330_v46 }
 0x30f   :  { %vm3078_vm14 = vcmp.ge.f32.partialorder %v3046_v23, 0.0  ;;  %v3110_v37 = vmul.f32 0.01, %v3046_v23 }
 0x310   :  { %v2682_v60 = vpop.f32.mrf.mxu0 }
 0x311   :  { %v2955_v16 = vpop.f32.mrf.mxu1  ;;  %v3142_v8 = vsel %vm3078_vm14, %v3046_v23, %v3110_v37  ;;  %v2742_v25 = vadd.f32 %v2682_v60, %v2442_v12 }
 0x312   :  { %3174 = vst.msk [vmem:[#allocation3 + $0x188] sm:$0xff] %vm44_vm2, %v3142_v8 }
 0x313   :  { %v3015_v44 = vadd.f32 %v2955_v16, %v2742_v25 }
 0x314   :  { %v2456_v51 = vpop.f32.mrf.mxu3 }
 0x315   :  { %v3047_v30 = vadd.f32 %v6605_v3, %v3015_v44  ;;  %v6983_v42 = vld [vmem:[#allocation4 + $0x51] sm:$0xff]  ;;  %v2457_v44 = vadd.f32 %v2456_v51, %v2247_v58 }
 0x316   :  { %v6985_v15 = vld [vmem:[#allocation4 + $0x58] sm:$0xff]  ;;  %5085 = vmatmul.msk.f32.gmra.mxu2 %vm44_vm2, %v6983_v42 }
 0x317   :  { %5102 = vmatmul.msk.f32.gmra.mxu3 %vm44_vm2, %v6985_v15  ;;  %vm3079_vm15 = vcmp.ge.f32.partialorder %v3047_v30, 0.0  ;;  %v3111_v62 = vmul.f32 0.01, %v3047_v30 }
 0x318   :  { %v2685_v29 = vpop.f32.mrf.mxu0 }
 0x319   :  { %v2958_v19 = vpop.f32.mrf.mxu1  ;;  %v3143_v41 = vsel %vm3079_vm15, %v3047_v30, %v3111_v62  ;;  %v2743_v56 = vadd.f32 %v2685_v29, %v2445_v32  ;;  %v3333_v13 = vld [vmem:[#allocation3 + $0x180] ss:$2 sm:$0xff]  ;;  %v3335_v0 = vld [vmem:[#allocation3 + $0x181] ss:$2 sm:$0xff]  ;;  %v2253_v30 = vpop.f32.mrf.mxu2 }
 0x31a   :  { %3175 = vst.msk [vmem:[#allocation3 + $0x190] sm:$0xff] %vm44_vm2, %v3143_v41  ;;  %v3336_v48 = vmax.f32 %v3333_v13, %v3335_v0 }
 0x31b   :  { %v3016_v28 = vadd.f32 %v2958_v19, %v2743_v56  ;;  %v3413_v56 = vld [vmem:[%s7622_s5 + $0xe8] sm:$0xff] }
 0x31c   :  { %v2459_v46 = vpop.f32.mrf.mxu3  ;;  %3893 = vmatpush.msrb.mxu3 %v3413_v56 }
 0x31d   :  { %v3048_v6 = vadd.f32 %v6605_v3, %v3016_v28  ;;  %v3404_v28 = vld [vmem:[%s7622_s5 + $0xa0] sm:$0xff] }
 0x31e   :  { %3749 = vmatpush.msrb.mxu2 %v3404_v28  ;;  %v3411_v28 = vld [vmem:[%s7622_s5 + $0xd8] sm:$0xff] }
 0x31f   :  { %vm3080_vm3 = vcmp.ge.f32.partialorder %v3048_v6, 0.0  ;;  %v3112_v9 = vmul.f32 0.01, %v3048_v6 }
 0x320   :  { %v2688_v10 = vpop.f32.mrf.mxu0 }
 0x321   :  { %v2961_v38 = vpop.f32.mrf.mxu1  ;;  %v3144_v21 = vsel %vm3080_vm3, %v3048_v6, %v3112_v9  ;;  %v2744_v5 = vadd.f32 %v2688_v10, %v2448_v14  ;;  %v2460_v14 = vadd.f32 %v2459_v46, %v2250_v63 }
 0x322   :  { %3176 = vst.msk [vmem:[#allocation3 + $0x198] sm:$0xff] %vm44_vm2, %v3144_v21  ;;  %v2256_v21 = vpop.f32.mrf.mxu2 }
 0x323   :  { %v3017_v4 = vadd.f32 %v2961_v38, %v2744_v5 }
 0x324   :  { %v2462_v19 = vpop.f32.mrf.mxu3 }
 0x325   :  { %v3049_v36 = vadd.f32 %v6605_v3, %v3017_v4 }
 0x327   :  { %vm3081_vm4 = vcmp.ge.f32.partialorder %v3049_v36, 0.0  ;;  %v3113_v47 = vmul.f32 0.01, %v3049_v36 }
 0x328   :  { %v2691_v54 = vpop.f32.mrf.mxu0 }
 0x329   :  { %v2964_v52 = vpop.f32.mrf.mxu1  ;;  %v3145_v11 = vsel %vm3081_vm4, %v3049_v36, %v3113_v47  ;;  %v2745_v61 = vadd.f32 %v2691_v54, %v2451_v18  ;;  %v3338_v17 = vld [vmem:[#allocation3 + $0x190] ss:$2 sm:$0xff]  ;;  %v3341_v34 = vld [vmem:[#allocation3 + $0x191] ss:$2 sm:$0xff]  ;;  %v2463_v36 = vadd.f32 %v2462_v19, %v2253_v30 }
 0x32a   :  { %3177 = vst.msk [vmem:[#allocation3 + $0x1a0] sm:$0xff] %vm44_vm2, %v3145_v11  ;;  %v3339_v39 = vmax.f32 %v3336_v48, %v3338_v17  ;;  %v3412_v17 = vld [vmem:[%s7622_s5 + $0xe0] sm:$0xff] }
 0x32b   :  { %v3018_v49 = vadd.f32 %v2964_v52, %v2745_v61  ;;  %3894 = vmatpush.msrb.mxu3 %v3412_v17 }
 0x32c   :  { %v3342_v3 = vmax.f32 %v3339_v39, %v3341_v34  ;;  %v2465_v58 = vpop.f32.mrf.mxu3  ;;  %v3403_v34 = vld [vmem:[%s7622_s5 + $0x98] sm:$0xff] }
 0x32d   :  { %v3050_v45 = vadd.f32 %v7011_v26, %v3018_v49  ;;  %v4062_v49 = vld [vmem:[%s7624_s7 + $0x70] sm:$0xff]  ;;  %3750 = vmatpush.msrb.mxu2 %v3403_v34  ;;  %3895 = vmatpush.msrb.mxu3 %v3411_v28 }
 0x32e   :  { %3343 = vst.msk [vmem:[#allocation4 + $0x60] sm:$0xff] %vm44_vm2, %v3342_v3  ;;  %v2259_v3 = vpop.f32.mrf.mxu2  ;;  %4210 = vmatpush.msrb.mxu1 %v4062_v49 }
 0x32f   :  { %vm3082_vm5 = vcmp.ge.f32.partialorder %v3050_v45, 0.0  ;;  %v3114_v23 = vmul.f32 0.01, %v3050_v45 }
 0x330   :  { %v2694_v12 = vpop.f32.mrf.mxu0 }
 0x331   :  { %v2967_v50 = vpop.f32.mrf.mxu1  ;;  %v3146_v37 = vsel %vm3082_vm5, %v3050_v45, %v3114_v23  ;;  %v2746_v60 = vadd.f32 %v2694_v12, %v2454_v59  ;;  %v2466_v12 = vadd.f32 %v2465_v58, %v2256_v21 }
 0x332   :  { %3178 = vst.msk [vmem:[#allocation3 + $0x1a8] sm:$0xff] %vm44_vm2, %v3146_v37 }
 0x333   :  { %v3019_v16 = vadd.f32 %v2967_v50, %v2746_v60 }
 0x334   :  { %v2468_v46 = vpop.f32.mrf.mxu3 }
 0x335   :  { %v3051_v2 = vadd.f32 %v7011_v26, %v3019_v16  ;;  %v7017_v8 = vld [vmem:[#allocation4 + $0x59] sm:$0xff]  ;;  %v2469_v19 = vadd.f32 %v2468_v46, %v2259_v3  ;;  %v3401_v46 = vld [vmem:[%s7622_s5 + $0x88] sm:$0xff] }
 0x336   :  { %v7019_v25 = vld [vmem:[#allocation4 + $0x60] sm:$0xff]  ;;  %5086 = vmatmul.msk.f32.gmra.mxu2 %vm44_vm2, %v7017_v8  ;;  %v2262_v30 = vpop.f32.mrf.mxu2 }
 0x337   :  { %5103 = vmatmul.msk.f32.gmra.mxu3 %vm44_vm2, %v7019_v25  ;;  %vm3083_vm0 = vcmp.ge.f32.partialorder %v3051_v2, 0.0  ;;  %v3115_v32 = vmul.f32 0.01, %v3051_v2  ;;  %v4076_v3 = vld [vmem:[%s7624_s7 + $0xe0] sm:$0xff] }
 0x338   :  { %v2697_v62 = vpop.f32.mrf.mxu0 }
 0x339   :  { %v2970_v29 = vpop.f32.mrf.mxu1  ;;  %v3147_v7 = vsel %vm3083_vm0, %v3051_v2, %v3115_v32  ;;  %v2747_v41 = vadd.f32 %v2697_v62, %v2457_v44  ;;  %v3345_v51 = vld [vmem:[#allocation3 + $0x1a0] ss:$2 sm:$0xff]  ;;  %v3347_v13 = vld [vmem:[#allocation3 + $0x1a1] ss:$2 sm:$0xff] }
 0x33a   :  { %3179 = vst.msk [vmem:[#allocation3 + $0x1b0] sm:$0xff] %vm44_vm2, %v3147_v7  ;;  %v3348_v52 = vmax.f32 %v3345_v51, %v3347_v13 }
 0x33b   :  { %v3020_v55 = vadd.f32 %v2970_v29, %v2747_v41 }
 0x33c   :  { %v2471_v7 = vpop.f32.mrf.mxu3 }
 0x33d   :  { %v3052_v6 = vadd.f32 %v7011_v26, %v3020_v55 }
 0x33f   :  { %vm3084_vm6 = vcmp.ge.f32.partialorder %v3052_v6, 0.0  ;;  %v3116_v9 = vmul.f32 0.01, %v3052_v6 }
 0x340   :  { %v2700_v10 = vpop.f32.mrf.mxu0 }
 0x341   :  { %v2973_v38 = vpop.f32.mrf.mxu1  ;;  %v3148_v5 = vsel %vm3084_vm6, %v3052_v6, %v3116_v9  ;;  %v2748_v27 = vadd.f32 %v2700_v10, %v2460_v14  ;;  %v4077_v6 = vld [vmem:[%s7624_s7 + $0xe8] sm:$0xff]  ;;  %v3402_v10 = vld [vmem:[%s7622_s5 + $0x90] sm:$0xff] }
 0x342   :  { %3180 = vst.msk [vmem:[#allocation3 + $0x1b8] sm:$0xff] %vm44_vm2, %v3148_v5  ;;  %v4061_v14 = vld [vmem:[%s7624_s7 + $0x68] sm:$0xff]  ;;  %4146 = vmatpush.msrb.mxu0 %v4077_v6  ;;  %3751 = vmatpush.msrb.mxu2 %v3402_v10  ;;  %v2472_v5 = vadd.f32 %v2471_v7, %v2262_v30  ;;  %v3408_v10 = vld [vmem:[%s7622_s5 + $0xc0] sm:$0xff] }
 0x343   :  { %v3021_v4 = vadd.f32 %v2973_v38, %v2748_v27  ;;  %v3410_v38 = vld [vmem:[%s7622_s5 + $0xd0] sm:$0xff]  ;;  %4211 = vmatpush.msrb.mxu1 %v4061_v14  ;;  %v2265_v27 = vpop.f32.mrf.mxu2 }
 0x344   :  { %3896 = vmatpush.msrb.mxu3 %v3410_v38  ;;  %4147 = vmatpush.msrb.mxu0 %v4076_v3 }
 0x345   :  { %v3053_v0 = vadd.f32 %v7011_v26, %v3021_v4  ;;  %3752 = vmatpush.msrb.mxu2 %v3401_v46  ;;  %v4056_v46 = vld [vmem:[%s7624_s7 + $0x40] sm:$0xff] }
 0x347   :  { %vm3085_vm7 = vcmp.ge.f32.partialorder %v3053_v0, 0.0  ;;  %v3117_v18 = vmul.f32 0.01, %v3053_v0 }
 0x348   :  { %v2703_v47 = vpop.f32.mrf.mxu0 }
 0x349   :  { %v2976_v54 = vpop.f32.mrf.mxu1  ;;  %v3149_v48 = vsel %vm3085_vm7, %v3053_v0, %v3117_v18  ;;  %v2749_v11 = vadd.f32 %v2703_v47, %v2463_v36  ;;  %v3350_v61 = vld [vmem:[#allocation3 + $0x1b0] ss:$2 sm:$0xff]  ;;  %v3353_v45 = vld [vmem:[#allocation3 + $0x1b1] ss:$2 sm:$0xff]  ;;  %v2474_v36 = vpop.f32.mrf.mxu3 }
 0x34a   :  { %3181 = vst.msk [vmem:[#allocation3 + $0x1c0] sm:$0xff] %vm44_vm2, %v3149_v48  ;;  %v3351_v39 = vmax.f32 %v3348_v52, %v3350_v61  ;;  %v2475_v48 = vadd.f32 %v2474_v36, %v2265_v27 }
 0x34b   :  { %v3022_v63 = vadd.f32 %v2976_v54, %v2749_v11 }
 0x34c   :  { %v3354_v59 = vmax.f32 %v3351_v39, %v3353_v45 }
 0x34d   :  { %v3054_v23 = vadd.f32 %v7011_v26, %v3022_v63  ;;  %v2268_v63 = vpop.f32.mrf.mxu2 }
 0x34e   :  { %3355 = vst.msk [vmem:[#allocation4 + $0x68] sm:$0xff] %vm44_vm2, %v3354_v59  ;;  %v4060_v59 = vld [vmem:[%s7624_s7 + $0x60] sm:$0xff] }
 0x34f   :  { %vm3086_vm8 = vcmp.ge.f32.partialorder %v3054_v23, 0.0  ;;  %v3118_v50 = vmul.f32 0.01, %v3054_v23  ;;  %4212 = vmatpush.msrb.mxu1 %v4060_v59  ;;  %v4072_v59 = vld [vmem:[%s7624_s7 + $0xc0] sm:$0xff] }
 0x350   :  { %v2706_v37 = vpop.f32.mrf.mxu0 }
 0x351   :  { %v2979_v60 = vpop.f32.mrf.mxu1  ;;  %v3150_v16 = vsel %vm3086_vm8, %v3054_v23, %v3118_v50  ;;  %v2750_v2 = vadd.f32 %v2706_v37, %v2466_v12  ;;  %v3409_v23 = vld [vmem:[%s7622_s5 + $0xc8] sm:$0xff]  ;;  %v4075_v37 = vld [vmem:[%s7624_s7 + $0xd8] sm:$0xff] }
 0x352   :  { %3182 = vst.msk [vmem:[#allocation3 + $0x1c8] sm:$0xff] %vm44_vm2, %v3150_v16  ;;  %v2477_v16 = vpop.f32.mrf.mxu3  ;;  %3897 = vmatpush.msrb.mxu3 %v3409_v23  ;;  %4148 = vmatpush.msrb.mxu0 %v4075_v37 }
 0x353   :  { %v3023_v44 = vadd.f32 %v2979_v60, %v2750_v2  ;;  %v4059_v60 = vld [vmem:[%s7624_s7 + $0x58] sm:$0xff]  ;;  %v2478_v30 = vadd.f32 %v2477_v16, %v2268_v63 }
 0x354   :  { %4213 = vmatpush.msrb.mxu1 %v4059_v60  ;;  %3898 = vmatpush.msrb.mxu3 %v3408_v10  ;;  %v3674_v60 = vld [vmem:[#allocation4 + $0x8] sm:$0xff]  ;;  %v3820_v16 = vld [vmem:[#allocation4 + $0x11] sm:$0xff] }
 0x355   :  { %v3055_v32 = vadd.f32 %v7011_v26, %v3023_v44  ;;  %v7058_v62 = vld [vmem:[#allocation4 + $0x61] sm:$0xff] }
 0x356   :  { %v7060_v29 = vld [vmem:[#allocation4 + $0x68] sm:$0xff]  ;;  %5087 = vmatmul.msk.f32.gmra.mxu2 %vm44_vm2, %v7058_v62 }
 0x357   :  { %5104 = vmatmul.msk.f32.gmra.mxu3 %vm44_vm2, %v7060_v29  ;;  %vm3087_vm9 = vcmp.ge.f32.partialorder %v3055_v32, 0.0  ;;  %v3119_v41 = vmul.f32 0.01, %v3055_v32 }
 0x358   :  { %v2709_v56 = vpop.f32.mrf.mxu0 }
 0x359   :  { %v2982_v35 = vpop.f32.mrf.mxu1  ;;  %v3151_v1 = vsel %vm3087_vm9, %v3055_v32, %v3119_v41  ;;  %v2751_v55 = vadd.f32 %v2709_v56, %v2469_v19  ;;  %v3357_v47 = vld [vmem:[#allocation3 + $0x1c0] ss:$2 sm:$0xff]  ;;  %v3359_v54 = vld [vmem:[#allocation3 + $0x1c1] ss:$2 sm:$0xff] }
 0x35a   :  { %3183 = vst.msk [vmem:[#allocation3 + $0x1d0] sm:$0xff] %vm44_vm2, %v3151_v1  ;;  %v3360_v61 = vmax.f32 %v3357_v47, %v3359_v54  ;;  %v2271_v1 = vpop.f32.mrf.mxu2  ;;  %v2480_v14 = vpop.f32.mrf.mxu3 }
 0x35b   :  { %v3024_v9 = vadd.f32 %v2982_v35, %v2751_v55  ;;  %v2481_v38 = vadd.f32 %v2480_v14, %v2271_v1  ;;  %v4110_v1 = vld [vmem:[%s7624_s7 + $0x1f0] sm:$0xff]  ;;  %v3822_v14 = vld [vmem:[#allocation4 + $0x21] sm:$0xff] }
 0x35d   :  { %v3056_v21 = vadd.f32 %v7011_v26, %v3024_v9  ;;  %v3400_v9 = vld [vmem:[%s7622_s5 + $0x80] sm:$0xff] }
 0x35e   :  { %3753 = vmatpush.msrb.mxu2 %v3400_v9 }
 0x35f   :  { %vm3088_vm10 = vcmp.ge.f32.partialorder %v3056_v21, 0.0  ;;  %v3120_v58 = vmul.f32 0.01, %v3056_v21 }
 0x360   :  { %v2712_v4 = vpop.f32.mrf.mxu0 }
 0x361   :  { %v2985_v51 = vpop.f32.mrf.mxu1  ;;  %v3152_v13 = vsel %vm3088_vm10, %v3056_v21, %v3120_v58  ;;  %v2752_v0 = vadd.f32 %v2712_v4, %v2472_v5 }
 0x362   :  { %3184 = vst.msk [vmem:[#allocation3 + $0x1d8] sm:$0xff] %vm44_vm2, %v3152_v13  ;;  %v4058_v13 = vld [vmem:[%s7624_s7 + $0x50] sm:$0xff]  ;;  %v7148_v63 = vpop.f32.mrf.mxu2 }
 0x363   :  { %v3025_v18 = vadd.f32 %v2985_v51, %v2752_v0  ;;  %v4074_v51 = vld [vmem:[%s7624_s7 + $0xd0] sm:$0xff]  ;;  %4214 = vmatpush.msrb.mxu1 %v4058_v13 }
 0x364   :  { %4149 = vmatpush.msrb.mxu0 %v4074_v51  ;;  %v4108_v51 = vld [vmem:[%s7624_s7 + $0x1e0] sm:$0xff] }
 0x365   :  { %v3057_v52 = vadd.f32 %v7011_v26, %v3025_v18 }
 0x367   :  { %vm3089_vm11 = vcmp.ge.f32.partialorder %v3057_v52, 0.0  ;;  %v3121_v11 = vmul.f32 0.01, %v3057_v52 }
 0x368   :  { %v2715_v17 = vpop.f32.mrf.mxu0 }
 0x369   :  { %v2988_v39 = vpop.f32.mrf.mxu1  ;;  %v3362_v53 = vld [vmem:[#allocation3 + $0x1d0] ss:$2 sm:$0xff]  ;;  %v3153_v49 = vsel %vm3089_vm11, %v3057_v52, %v3121_v11  ;;  %v2753_v34 = vadd.f32 %v2715_v17, %v2475_v48  ;;  %v3365_v50 = vld [vmem:[#allocation3 + $0x1d1] ss:$2 sm:$0xff]  ;;  %v4073_v48 = vld [vmem:[%s7624_s7 + $0xc8] sm:$0xff] }
 0x36a   :  { %3185 = vst.msk [vmem:[#allocation3 + $0x1e0] sm:$0xff] %vm44_vm2, %v3153_v49  ;;  %v3363_v45 = vmax.f32 %v3360_v61, %v3362_v53  ;;  %v4057_v11 = vld [vmem:[%s7624_s7 + $0x48] sm:$0xff]  ;;  %4150 = vmatpush.msrb.mxu0 %v4073_v48  ;;  %v7138_v49 = vpop.f32.mrf.mxu3  ;;  %v3679_v48 = vld [vmem:[#allocation4 + $0x30] sm:$0xff] }
 0x36b   :  { %v3026_v12 = vadd.f32 %v2988_v39, %v2753_v34  ;;  %4215 = vmatpush.msrb.mxu1 %v4057_v11  ;;  %v4090_v11 = vld [vmem:[%s7624_s7 + $0x150] sm:$0xff] }
 0x36c   :  { %v3366_v2 = vmax.f32 %v3363_v45, %v3365_v50  ;;  %4151 = vmatpush.msrb.mxu0 %v4072_v59  ;;  %v7163_v50 = vpop.f32.mrf.mxu2  ;;  %v4068_v59 = vld [vmem:[%s7624_s7 + $0xa0] sm:$0xff] }
 0x36d   :  { %v3058_v44 = vadd.f32 %v7011_v26, %v3026_v12  ;;  %4216 = vmatpush.msrb.mxu1 %v4056_v46  ;;  %v3819_v12 = vld [vmem:[#allocation4 + $0x9] sm:$0xff]  ;;  %v4052_v46 = vld [vmem:[%s7624_s7 + $0x20] sm:$0xff] }
 0x36e   :  { %3367 = vst.msk [vmem:[#allocation4 + $0x70] sm:$0xff] %vm44_vm2, %v3366_v2  ;;  %v4095_v2 = vld [vmem:[%s7624_s7 + $0x178] sm:$0xff] }
 0x36f   :  { %vm3090_vm12 = vcmp.ge.f32.partialorder %v3058_v44, 0.0  ;;  %v3122_v32 = vmul.f32 0.01, %v3058_v44  ;;  %4290 = vmatpush.msra.mxu2 %v4095_v2  ;;  %v4067_v2 = vld [vmem:[%s7624_s7 + $0x98] sm:$0xff] }
 0x370   :  { %v2718_v19 = vpop.f32.mrf.mxu0 }
 0x371   :  { %v2991_v7 = vpop.f32.mrf.mxu1  ;;  %v3154_v41 = vsel %vm3090_vm12, %v3058_v44, %v3122_v32  ;;  %v2754_v56 = vadd.f32 %v2718_v19, %v2478_v30  ;;  %v4111_v44 = vld [vmem:[%s7624_s7 + $0x1f8] sm:$0xff] }
 0x372   :  { %3186 = vst.msk [vmem:[#allocation3 + $0x1e8] sm:$0xff] %vm44_vm2, %v3154_v41  ;;  %v7150_v45 = vpop.f32.mrf.mxu3  ;;  %v4071_v30 = vld [vmem:[%s7624_s7 + $0xb8] sm:$0xff]  ;;  %4387 = vmatpush.msra.mxu3 %v4111_v44  ;;  %v3675_v41 = vld [vmem:[#allocation4 + $0x10] sm:$0xff] }
 0x373   :  { %v3027_v35 = vadd.f32 %v2991_v7, %v2754_v56  ;;  %v4055_v32 = vld [vmem:[%s7624_s7 + $0x38] sm:$0xff]  ;;  %4152 = vmatpush.msrb.mxu0 %v4071_v30  ;;  %v4086_v30 = vld [vmem:[%s7624_s7 + $0x130] sm:$0xff] }
 0x374   :  { %4217 = vmatpush.msrb.mxu1 %v4055_v32  ;;  %v7181_v19 = vpop.f32.mrf.mxu2  ;;  %v3821_v56 = vld [vmem:[#allocation4 + $0x19] sm:$0xff]  ;;  %4388 = vmatpush.msra.mxu3 %v4110_v1  ;;  %v4102_v32 = vld [vmem:[%s7624_s7 + $0x1b0] sm:$0xff]  ;;  %v4101_v1 = vld [vmem:[%s7624_s7 + $0x1a8] sm:$0xff] }
 0x375   :  { %v3059_v55 = vadd.f32 %v7011_v26, %v3027_v35  ;;  %v7108_v28 = vld [vmem:[#allocation4 + $0x69] sm:$0xff] }
 0x376   :  { %v7110_v6 = vld [vmem:[#allocation4 + $0x70] sm:$0xff]  ;;  %5088 = vmatmul.msk.f32.gmra.mxu2 %vm44_vm2, %v7108_v28 }
 0x377   :  { %5105 = vmatmul.msk.f32.gmra.mxu3 %vm44_vm2, %v7110_v6  ;;  %vm3091_vm13 = vcmp.ge.f32.partialorder %v3059_v55, 0.0  ;;  %v3123_v21 = vmul.f32 0.01, %v3059_v55  ;;  %v4094_v35 = vld [vmem:[%s7624_s7 + $0x170] sm:$0xff] }
 0x378   :  { %v2721_v5 = vpop.f32.mrf.mxu0  ;;  %4291 = vmatpush.msra.mxu2 %v4094_v35  ;;  %v4085_v35 = vld [vmem:[%s7624_s7 + $0x128] sm:$0xff] }
 0x379   :  { %v2994_v27 = vpop.f32.mrf.mxu1  ;;  %v3155_v58 = vsel %vm3091_vm13, %v3059_v55, %v3123_v21  ;;  %v2755_v4 = vadd.f32 %v2721_v5, %v2481_v38  ;;  %v3369_v54 = vld [vmem:[#allocation3 + $0x1e0] ss:$2 sm:$0xff]  ;;  %v3371_v52 = vld [vmem:[#allocation3 + $0x1e1] ss:$2 sm:$0xff]  ;;  %v3676_v55 = vld [vmem:[#allocation4 + $0x18] sm:$0xff] }
 0x37a   :  { %3187 = vst.msk [vmem:[#allocation3 + $0x1f0] sm:$0xff] %vm44_vm2, %v3155_v58  ;;  %v3372_v61 = vmax.f32 %v3369_v54, %v3371_v52  ;;  %v7165_v37 = vpop.f32.mrf.mxu3  ;;  %v4093_v38 = vld [vmem:[%s7624_s7 + $0x168] sm:$0xff]  ;;  %v4070_v5 = vld [vmem:[%s7624_s7 + $0xb0] sm:$0xff]  ;;  %v3677_v58 = vld [vmem:[#allocation4 + $0x20] sm:$0xff] }
 0x37b   :  { %v3028_v0 = vadd.f32 %v2994_v27, %v2755_v4  ;;  %v4109_v21 = vld [vmem:[%s7624_s7 + $0x1e8] sm:$0xff]  ;;  %4292 = vmatpush.msra.mxu2 %v4093_v38  ;;  %v4054_v27 = vld [vmem:[%s7624_s7 + $0x30] sm:$0xff]  ;;  %4153 = vmatpush.msrb.mxu0 %v4070_v5  ;;  %v4092_v4 = vld [vmem:[%s7624_s7 + $0x160] sm:$0xff] }
 0x37c   :  { %v7195_v9 = vpop.f32.mrf.mxu2  ;;  %4389 = vmatpush.msra.mxu3 %v4109_v21  ;;  %4218 = vmatpush.msrb.mxu1 %v4054_v27  ;;  %v4053_v54 = vld [vmem:[%s7624_s7 + $0x28] sm:$0xff]  ;;  %v4084_v38 = vld [vmem:[%s7624_s7 + $0x120] sm:$0xff] }
 0x37d   :  { %v3060_v36 = vadd.f32 %v7011_v26, %v3028_v0  ;;  %4293 = vmatpush.msra.mxu2 %v4092_v4  ;;  %v4100_v21 = vld [vmem:[%s7624_s7 + $0x1a0] sm:$0xff]  ;;  %v4049_v5 = vld [vmem:[%s7624_s7 + $0x8] sm:$0xff] }
 0x37e   :  { %4390 = vmatpush.msra.mxu3 %v4108_v51  ;;  %4219 = vmatpush.msrb.mxu1 %v4053_v54  ;;  %v4065_v4 = vld [vmem:[%s7624_s7 + $0x88] sm:$0xff]  ;;  %v4082_v51 = vld [vmem:[%s7624_s7 + $0x110] sm:$0xff] }
 0x37f   :  { %vm3092_vm1 = vcmp.ge.f32.partialorder %v3060_v36, 0.0  ;;  %v3124_v18 = vmul.f32 0.01, %v3060_v36  ;;  %v4098_v54 = vld [vmem:[%s7624_s7 + $0x190] sm:$0xff] }
 0x380   :  { %4220 = vmatpush.msrb.mxu1 %v4052_v46  ;;  %v7417_v46 = vld [vmem:[%s7623_s6] ss:$0 sm:$0xff] }
 0x381   :  { %v3156_v47 = vsel %vm3092_vm1, %v3060_v36, %v3124_v18  ;;  %v3678_v36 = vld [vmem:[#allocation4 + $0x28] sm:$0xff]  ;;  %v4107_v18 = vld [vmem:[%s7624_s7 + $0x1d8] sm:$0xff] }
 0x382   :  { %3188 = vst.msk [vmem:[#allocation3 + $0x1f8] sm:$0xff] %vm44_vm2, %v3156_v47  ;;  %v7183_v7 = vpop.f32.mrf.mxu3  ;;  %v4069_v47 = vld [vmem:[%s7624_s7 + $0xa8] sm:$0xff]  ;;  %4391 = vmatpush.msra.mxu3 %v4107_v18 }
 0x383   :  { %4154 = vmatpush.msrb.mxu0 %v4069_v47  ;;  %v3689_v47 = vld [vmem:[#allocation4 + $0x80] sm:$0xff] }
 0x384   :  { %v7220_v13 = vpop.f32.mrf.mxu2 }
 0x385   :  { %4155 = vmatpush.msrb.mxu0 %v4068_v59 }
 0x387   :  { %4156 = vmatpush.msrb.mxu0 %v4067_v2  ;;  %v3630_v2 = vadd.f32 %v7150_v45, %v7163_v50 }
 0x389   :  { %v3374_v17 = vld [vmem:[#allocation3 + $0x1f0] ss:$2 sm:$0xff]  ;;  %v3377_v39 = vld [vmem:[#allocation3 + $0x1f1] ss:$2 sm:$0xff] }
 0x38a   :  { %v3375_v26 = vmax.f32 %v3372_v61, %v3374_v17  ;;  %v7197_v10 = vpop.f32.mrf.mxu3  ;;  %v4106_v61 = vld [vmem:[%s7624_s7 + $0x1d0] sm:$0xff] }
 0x38b   :  { %4392 = vmatpush.msra.mxu3 %v4106_v61  ;;  %v4064_v61 = vld [vmem:[%s7624_s7 + $0x80] sm:$0xff] }
 0x38c   :  { %v3378_v53 = vmax.f32 %v3375_v26, %v3377_v39  ;;  %v5148_v39 = vld [vmem:[#allocation4 + $0x38] sm:$0xff] }
 0x38e   :  { %3379 = vst.msk [vmem:[#allocation4 + $0x78] sm:$0xff] %vm44_vm2, %v3378_v53  ;;  %v4105_v53 = vld [vmem:[%s7624_s7 + $0x1c8] sm:$0xff] }
 0x38f   :  { %4393 = vmatpush.msra.mxu3 %v4105_v53 }
 0x392   :  { %v7222_v0 = vpop.f32.mrf.mxu3 }
 0x395   :  { %v7140_v34 = vld [vmem:[#allocation4 + $0x71] sm:$0xff]  ;;  %v7158_v23 = vld [vmem:[#allocation4 + $0x79] sm:$0xff] }
 0x396   :  { %v7142_v3 = vld [vmem:[#allocation4 + $0x78] sm:$0xff]  ;;  %5089 = vmatmul.msk.f32.gmra.mxu2 %vm44_vm2, %v7140_v34 }
 0x397   :  { %5106 = vmatmul.msk.f32.gmra.mxu3 %vm44_vm2, %v7142_v3 }
 0x39a   :  { %v7241_v52 = vpop.f32.mrf.mxu3 }
 0x39e   :  { %5090 = vmatmul.msk.f32.gmra.mxu2 %vm44_vm2, %v7158_v23 }
 0x39f   :  { %5123 = vmatmul.msk.f32.vlgmr.msrb.gmra.mxu3 %vm44_vm2, %v3819_v12  ;;  %v4104_v12 = vld [vmem:[%s7624_s7 + $0x1c0] sm:$0xff] }
 0x3a0   :  { %4394 = vmatpush.msra.mxu3 %v4104_v12  ;;  %v4096_v12 = vld [vmem:[%s7624_s7 + $0x180] sm:$0xff] }
 0x3a2   :  { %v7254_v26 = vpop.f32.mrf.mxu3 }
 0x3a6   :  { %5107 = vmatmul.msk.f32.vlgmr.msrb.gmra.mxu2 %vm44_vm2, %v3674_v60 }
 0x3a7   :  { %5124 = vmatmul.msk.f32.gmra.mxu3 %vm44_vm2, %v3820_v16 }
 0x3aa   :  { %v7283_v16 = vpop.f32.mrf.mxu3 }
 0x3ae   :  { %5108 = vmatmul.msk.f32.gmra.mxu2 %vm44_vm2, %v3675_v41 }
 0x3af   :  { %5125 = vmatmul.msk.f32.gmra.mxu3 %vm44_vm2, %v3821_v56 }
 0x3b2   :  { %v7303_v44 = vpop.f32.mrf.mxu3 }
 0x3b6   :  { %5109 = vmatmul.msk.f32.gmra.mxu2 %vm44_vm2, %v3676_v55  ;;  %v4066_v55 = vld [vmem:[%s7624_s7 + $0x90] sm:$0xff] }
 0x3b7   :  { %5126 = vmatmul.msk.f32.gmra.mxu3 %vm44_vm2, %v3822_v14  ;;  %4157 = vmatpush.msrb.mxu0 %v4066_v55  ;;  %v3633_v55 = vadd.f32 %v7165_v37, %v7181_v19 }
 0x3b9   :  { %4158 = vmatpush.msrb.mxu0 %v4065_v4 }
 0x3ba   :  { %v7317_v56 = vpop.f32.mrf.mxu3 }
 0x3bb   :  { %4159 = vmatpush.msrb.mxu0 %v4064_v61 }
 0x3be   :  { %5110 = vmatmul.msk.f32.gmra.mxu2 %vm44_vm2, %v3677_v58  ;;  %v4048_v58 = vld [vmem:[%s7624_s7] sm:$0xff] }
 0x3bf   :  { %5127 = vmatmul.msk.f32.gmra.mxu3 %vm44_vm2, %v6859_v20  ;;  %v4091_v20 = vld [vmem:[%s7624_s7 + $0x158] sm:$0xff] }
 0x3c0   :  { %4294 = vmatpush.msra.mxu2 %v4091_v20 }
 0x3c2   :  { %4295 = vmatpush.msra.mxu2 %v4090_v11 }
 0x3c6   :  { %5111 = vmatmul.msk.f32.gmra.mxu2 %vm44_vm2, %v3678_v36  ;;  %v4081_v36 = vld [vmem:[%s7624_s7 + $0x108] sm:$0xff] }
 0x3c7   :  { %5128 = vmatmul.msk.f32.gmra.mxu3 %vm44_vm2, %v6875_v40  ;;  %v7239_v40 = vpop.f32.mrf.mxu2 }
 0x3ce   :  { %5112 = vmatmul.msk.f32.gmra.mxu2 %vm44_vm2, %v3679_v48 }
 0x3cf   :  { %5129 = vmatmul.msk.f32.gmra.mxu3 %vm44_vm2, %v6893_v22  ;;  %v7252_v17 = vpop.f32.mrf.mxu2  ;;  %v4089_v22 = vld [vmem:[%s7624_s7 + $0x148] sm:$0xff] }
 0x3d0   :  { %4296 = vmatpush.msra.mxu2 %v4089_v22  ;;  %v3627_v22 = vadd.f32 %v7138_v49, %v7148_v63 }
 0x3d6   :  { %5113 = vmatmul.msk.f32.gmra.mxu2 %vm44_vm2, %v5148_v39  ;;  %v4097_v39 = vld [vmem:[%s7624_s7 + $0x188] sm:$0xff] }
 0x3d7   :  { %5130 = vmatmul.msk.f32.gmra.mxu3 %vm44_vm2, %v6910_v24  ;;  %v4088_v24 = vld [vmem:[%s7624_s7 + $0x140] sm:$0xff]  ;;  %v7281_v60 = vpop.f32.mrf.mxu2 }
 0x3d8   :  { %4297 = vmatpush.msra.mxu2 %v4088_v24 }
 0x3de   :  { %5114 = vmatmul.msk.f32.gmra.mxu2 %vm44_vm2, %v6895_v57  ;;  %v4087_v57 = vld [vmem:[%s7624_s7 + $0x138] sm:$0xff] }
 0x3df   :  { %5131 = vmatmul.msk.f32.gmra.mxu3 %vm44_vm2, %v6955_v43  ;;  %v4103_v43 = vld [vmem:[%s7624_s7 + $0x1b8] sm:$0xff]  ;;  %4298 = vmatpush.msra.mxu2 %v4087_v57 }
 0x3e0   :  { %4395 = vmatpush.msra.mxu3 %v4103_v43 }
 0x3e1   :  { %4299 = vmatpush.msra.mxu2 %v4086_v30 }
 0x3e2   :  { %4396 = vmatpush.msra.mxu3 %v4102_v32 }
 0x3e3   :  { %4300 = vmatpush.msra.mxu2 %v4085_v35 }
 0x3e4   :  { %4397 = vmatpush.msra.mxu3 %v4101_v1 }
 0x3e5   :  { %4301 = vmatpush.msra.mxu2 %v4084_v38 }
 0x3e6   :  { %5115 = vmatmul.msk.f32.gmra.mxu2 %vm44_vm2, %v6912_v33  ;;  %v4051_v33 = vld [vmem:[%s7624_s7 + $0x18] sm:$0xff]  ;;  %4398 = vmatpush.msra.mxu3 %v4100_v21 }
 0x3e7   :  { %5132 = vmatmul.msk.f32.gmra.mxu3 %vm44_vm2, %v6983_v42  ;;  %4221 = vmatpush.msrb.mxu1 %v4051_v33  ;;  %v7301_v42 = vpop.f32.mrf.mxu2 }
 0x3ee   :  { %5116 = vmatmul.msk.f32.gmra.mxu2 %vm44_vm2, %v6957_v31 }
 0x3ef   :  { %5133 = vmatmul.msk.f32.gmra.mxu3 %vm44_vm2, %v7017_v8  ;;  %v7315_v41 = vpop.f32.mrf.mxu2  ;;  %v7325_v8 = vpop.f32.mrf.mxu3 }
 0x3f6   :  { %5117 = vmatmul.msk.f32.gmra.mxu2 %vm44_vm2, %v6985_v15  ;;  %v4050_v15 = vld [vmem:[%s7624_s7 + $0x10] sm:$0xff] }
 0x3f7   :  { %5134 = vmatmul.msk.f32.gmra.mxu3 %vm44_vm2, %v7058_v62  ;;  %v7323_v31 = vpop.f32.mrf.mxu2  ;;  %4222 = vmatpush.msrb.mxu1 %v4050_v15  ;;  %v7345_v14 = vpop.f32.mrf.mxu3 }
 0x3f9   :  { %4223 = vmatpush.msrb.mxu1 %v4049_v5 }
 0x3fb   :  { %4224 = vmatpush.msrb.mxu1 %v4048_v58  ;;  %v3636_v58 = vadd.f32 %v7183_v7, %v7195_v9 }
 0x3fe   :  { %5118 = vmatmul.msk.f32.gmra.mxu2 %vm44_vm2, %v7019_v25 }
 0x3ff   :  { %5135 = vmatmul.msk.f32.gmra.mxu3 %vm44_vm2, %v7108_v28  ;;  %v7343_v62 = vpop.f32.mrf.mxu2  ;;  %v7359_v28 = vpop.f32.mrf.mxu3 }
 0x406   :  { %5119 = vmatmul.msk.f32.gmra.mxu2 %vm44_vm2, %v7060_v29 }
 0x407   :  { %5136 = vmatmul.msk.f32.gmra.mxu3 %vm44_vm2, %v7140_v34  ;;  %v7357_v25 = vpop.f32.mrf.mxu2  ;;  %v7370_v29 = vpop.f32.mrf.mxu3  ;;  %v3834_v34 = vld [vmem:[#allocation4 + $0x81] sm:$0xff] }
 0x40e   :  { %5120 = vmatmul.msk.f32.gmra.mxu2 %vm44_vm2, %v7110_v6  ;;  %v4083_v6 = vld [vmem:[%s7624_s7 + $0x118] sm:$0xff] }
 0x40f   :  { %5137 = vmatmul.msk.f32.gmra.mxu3 %vm44_vm2, %v7158_v23  ;;  %v7368_v27 = vpop.f32.mrf.mxu2  ;;  %v4099_v23 = vld [vmem:[%s7624_s7 + $0x198] sm:$0xff]  ;;  %4302 = vmatpush.msra.mxu2 %v4083_v6 }
 0x410   :  { %4399 = vmatpush.msra.mxu3 %v4099_v23 }
 0x411   :  { %4303 = vmatpush.msra.mxu2 %v4082_v51 }
 0x412   :  { %4400 = vmatpush.msra.mxu3 %v4098_v54 }
 0x413   :  { %4304 = vmatpush.msra.mxu2 %v4081_v36 }
 0x414   :  { %4401 = vmatpush.msra.mxu3 %v4097_v39 }
 0x416   :  { %5121 = vmatmul.msk.f32.gmra.mxu2 %vm44_vm2, %v7142_v3  ;;  %v4080_v3 = vld [vmem:[%s7624_s7 + $0x100] sm:$0xff]  ;;  %4402 = vmatpush.msra.mxu3 %v4096_v12 }
 0x417   :  { %5138 = vmatmul.msk.f32.gmra.mxu3 %vm44_vm2, %v3834_v34  ;;  %4305 = vmatpush.msra.mxu2 %v4080_v3 }
 0x419   :  { %v7393_v20 = vpop.f32.mrf.mxu2 }
 0x41a   :  { %v7395_v18 = vpop.f32.mrf.mxu3 }
 0x41e   :  { %5122 = vmatmul.msk.f32.gmra.mxu2 %vm44_vm2, %v3689_v47  ;;  %v3639_v47 = vadd.f32 %v7197_v10, %v7220_v13 }
 0x421   :  { %v7404_v48 = vpop.f32.mrf.mxu2 }
 0x422   :  { %v3900_v11 = vpop.f32.mrf.mxu3 }
 0x429   :  { %v3755_v53 = vpop.f32.mrf.mxu2 }
 0x42a   :  { %v3903_v59 = vpop.f32.mrf.mxu3  ;;  %v3803_v24 = vadd.f32 %v3755_v53, %v3627_v22 }
 0x42c   :  { %v3948_v57 = vadd.f32 %v3900_v11, %v3803_v24 }
 0x42e   :  { %v3964_v43 = vadd.f32 %v7417_v46, %v3948_v57 }
 0x430   :  { %vm3980_vm2 = vcmp.ge.f32.partialorder %v3964_v43, 0.0  ;;  %v3996_v49 = vmul.f32 0.01, %v3964_v43 }
 0x431   :  { %v3758_v63 = vpop.f32.mrf.mxu2 }
 0x432   :  { %v3906_v33 = vpop.f32.mrf.mxu3  ;;  %v4012_v30 = vsel %vm3980_vm2, %v3964_v43, %v3996_v49  ;;  %v3804_v32 = vadd.f32 %v3758_v63, %v3630_v2  ;;  %v3645_v63 = vadd.f32 %v7241_v52, %v7252_v17 }
 0x433   :  { %4028 = vst [vmem:[#allocation5] sm:$0xff] %v4012_v30  ;;  %4225 = vmatmul.f32.vlgmr.msrb.gmra.mxu1 %v4012_v30 }
 0x434   :  { %v3949_v35 = vadd.f32 %v3903_v59, %v3804_v32  ;;  %v3642_v59 = vadd.f32 %v7222_v0, %v7239_v40 }
 0x436   :  { %v3965_v1 = vadd.f32 %v7417_v46, %v3949_v35 }
 0x438   :  { %vm3981_vm14 = vcmp.ge.f32.partialorder %v3965_v1, 0.0  ;;  %v3997_v15 = vmul.f32 0.01, %v3965_v1 }
 0x439   :  { %v3761_v38 = vpop.f32.mrf.mxu2 }
 0x43a   :  { %v3909_v21 = vpop.f32.mrf.mxu3  ;;  %v4013_v5 = vsel %vm3981_vm14, %v3965_v1, %v3997_v15  ;;  %v3805_v45 = vadd.f32 %v3761_v38, %v3633_v55  ;;  %v3648_v15 = vadd.f32 %v7254_v26, %v7281_v60 }
 0x43b   :  { %4029 = vst [vmem:[#allocation5 + $0x8] sm:$0xff] %v4013_v5  ;;  %4228 = vmatmul.f32.gmra.mxu1 %v4013_v5  ;;  %4306 = vmatmul.f32.vlgmr.msra.gmra.mxu2 %v4013_v5 }
 0x43c   :  { %v3950_v50 = vadd.f32 %v3906_v33, %v3805_v45 }
 0x43e   :  { %v3966_v34 = vadd.f32 %v7417_v46, %v3950_v50 }
 0x440   :  { %vm3982_vm15 = vcmp.ge.f32.partialorder %v3966_v34, 0.0  ;;  %v3998_v6 = vmul.f32 0.01, %v3966_v34 }
 0x441   :  { %v3764_v23 = vpop.f32.mrf.mxu2 }
 0x442   :  { %v3912_v4 = vpop.f32.mrf.mxu3  ;;  %v4014_v37 = vsel %vm3982_vm15, %v3966_v34, %v3998_v6  ;;  %v3806_v19 = vadd.f32 %v3764_v23, %v3636_v58  ;;  %v4128_v51 = vld [vmem:[#allocation5 + $0x1] sm:$0xff]  ;;  %v3651_v58 = vadd.f32 %v7283_v16, %v7301_v42 }
 0x443   :  { %4030 = vst [vmem:[#allocation5 + $0x10] sm:$0xff] %v4014_v37  ;;  %4160 = vmatmul.f32.vlgmr.msrb.gmra.mxu0 %v4128_v51  ;;  %4231 = vmatmul.f32.gmra.mxu1 %v4014_v37 }
 0x444   :  { %v3951_v36 = vadd.f32 %v3909_v21, %v3806_v19  ;;  %4309 = vmatmul.f32.gmra.mxu2 %v4014_v37 }
 0x446   :  { %v3967_v3 = vadd.f32 %v7417_v46, %v3951_v36  ;;  %v3654_v36 = vadd.f32 %v7303_v44, %v7315_v41 }
 0x448   :  { %vm3983_vm3 = vcmp.ge.f32.partialorder %v3967_v3, 0.0  ;;  %v3999_v54 = vmul.f32 0.01, %v3967_v3 }
 0x449   :  { %v3767_v7 = vpop.f32.mrf.mxu2 }
 0x44a   :  { %v3915_v9 = vpop.f32.mrf.mxu3  ;;  %v4015_v11 = vsel %vm3983_vm3, %v3967_v3, %v3999_v54  ;;  %v3807_v61 = vadd.f32 %v3767_v7, %v3639_v47  ;;  %v4129_v39 = vld [vmem:[#allocation5 + $0x9] sm:$0xff] }
 0x44b   :  { %4031 = vst [vmem:[#allocation5 + $0x18] sm:$0xff] %v4015_v11  ;;  %4163 = vmatmul.f32.gmra.mxu0 %v4129_v39  ;;  %4403 = vmatmul.f32.vlgmr.msra.gmra.mxu3 %v4129_v39 }
 0x44c   :  { %v3952_v22 = vadd.f32 %v3912_v4, %v3807_v61  ;;  %4234 = vmatmul.f32.gmra.mxu1 %v4015_v11  ;;  %4312 = vmatmul.f32.gmra.mxu2 %v4015_v11  ;;  %v3657_v61 = vadd.f32 %v7317_v56, %v7323_v31 }
 0x44e   :  { %v3968_v53 = vadd.f32 %v7417_v46, %v3952_v22 }
 0x450   :  { %vm3984_vm4 = vcmp.ge.f32.partialorder %v3968_v53, 0.0  ;;  %v4000_v10 = vmul.f32 0.01, %v3968_v53 }
 0x451   :  { %v3770_v13 = vpop.f32.mrf.mxu2 }
 0x452   :  { %v3918_v24 = vpop.f32.mrf.mxu3  ;;  %v4016_v12 = vsel %vm3984_vm4, %v3968_v53, %v4000_v10  ;;  %v3808_v57 = vadd.f32 %v3770_v13, %v3642_v59  ;;  %v4130_v43 = vld [vmem:[#allocation5 + $0x11] sm:$0xff] }
 0x453   :  { %4032 = vst [vmem:[#allocation5 + $0x20] sm:$0xff] %v4016_v12  ;;  %4166 = vmatmul.f32.gmra.mxu0 %v4130_v43  ;;  %4406 = vmatmul.f32.gmra.mxu3 %v4130_v43 }
 0x454   :  { %v3953_v2 = vadd.f32 %v3915_v9, %v3808_v57  ;;  %4237 = vmatmul.f32.gmra.mxu1 %v4016_v12  ;;  %4315 = vmatmul.f32.gmra.mxu2 %v4016_v12 }
 0x456   :  { %v3969_v49 = vadd.f32 %v7417_v46, %v3953_v2 }
 0x458   :  { %vm3985_vm5 = vcmp.ge.f32.partialorder %v3969_v49, 0.0  ;;  %v4001_v0 = vmul.f32 0.01, %v3969_v49 }
 0x459   :  { %v3773_v40 = vpop.f32.mrf.mxu2 }
 0x45a   :  { %v3921_v33 = vpop.f32.mrf.mxu3  ;;  %v4017_v30 = vsel %vm3985_vm5, %v3969_v49, %v4001_v0  ;;  %v3809_v32 = vadd.f32 %v3773_v40, %v3645_v63  ;;  %v4131_v35 = vld [vmem:[#allocation5 + $0x19] sm:$0xff]  ;;  %v3663_v0 = vadd.f32 %v7345_v14, %v7357_v25 }
 0x45b   :  { %4033 = vst [vmem:[#allocation5 + $0x28] sm:$0xff] %v4017_v30  ;;  %4169 = vmatmul.f32.gmra.mxu0 %v4131_v35  ;;  %4409 = vmatmul.f32.gmra.mxu3 %v4131_v35 }
 0x45c   :  { %v3954_v1 = vadd.f32 %v3918_v24, %v3809_v32  ;;  %4240 = vmatmul.f32.gmra.mxu1 %v4017_v30  ;;  %4318 = vmatmul.f32.gmra.mxu2 %v4017_v30  ;;  %v3660_v24 = vadd.f32 %v7325_v8, %v7343_v62 }
 0x45e   :  { %v3970_v55 = vadd.f32 %v7417_v46, %v3954_v1 }
 0x460   :  { %vm3986_vm0 = vcmp.ge.f32.partialorder %v3970_v55, 0.0  ;;  %v4002_v52 = vmul.f32 0.01, %v3970_v55 }
 0x461   :  { %v3776_v17 = vpop.f32.mrf.mxu2 }
 0x462   :  { %v3924_v38 = vpop.f32.mrf.mxu3  ;;  %v4018_v21 = vsel %vm3986_vm0, %v3970_v55, %v4002_v52  ;;  %v3810_v5 = vadd.f32 %v3776_v17, %v3648_v15  ;;  %v4132_v45 = vld [vmem:[#allocation5 + $0x21] sm:$0xff]  ;;  %v3666_v55 = vadd.f32 %v7359_v28, %v7368_v27 }
 0x463   :  { %4034 = vst [vmem:[#allocation5 + $0x30] sm:$0xff] %v4018_v21  ;;  %4172 = vmatmul.f32.gmra.mxu0 %v4132_v45  ;;  %4412 = vmatmul.f32.gmra.mxu3 %v4132_v45 }
 0x464   :  { %v3955_v50 = vadd.f32 %v3921_v33, %v3810_v5  ;;  %4243 = vmatmul.f32.gmra.mxu1 %v4018_v21  ;;  %4321 = vmatmul.f32.gmra.mxu2 %v4018_v21  ;;  %v3669_v5 = vadd.f32 %v7370_v29, %v7393_v20 }
 0x466   :  { %v3971_v34 = vadd.f32 %v7417_v46, %v3955_v50 }
 0x468   :  { %vm3987_vm6 = vcmp.ge.f32.partialorder %v3971_v34, 0.0  ;;  %v4003_v26 = vmul.f32 0.01, %v3971_v34 }
 0x469   :  { %v3779_v60 = vpop.f32.mrf.mxu2 }
 0x46a   :  { %v3927_v6 = vpop.f32.mrf.mxu3  ;;  %v4019_v23 = vsel %vm3987_vm6, %v3971_v34, %v4003_v26  ;;  %v3811_v4 = vadd.f32 %v3779_v60, %v3651_v58  ;;  %v4133_v37 = vld [vmem:[#allocation5 + $0x29] sm:$0xff] }
 0x46b   :  { %4035 = vst [vmem:[#allocation5 + $0x38] sm:$0xff] %v4019_v23  ;;  %4175 = vmatmul.f32.gmra.mxu0 %v4133_v37  ;;  %4415 = vmatmul.f32.gmra.mxu3 %v4133_v37 }
 0x46c   :  { %v3956_v19 = vadd.f32 %v3924_v38, %v3811_v4  ;;  %4246 = vmatmul.f32.gmra.mxu1 %v4019_v23  ;;  %4324 = vmatmul.f32.gmra.mxu2 %v4019_v23 }
 0x46e   :  { %v3972_v51 = vadd.f32 %v7417_v46, %v3956_v19 }
 0x470   :  { %vm3988_vm7 = vcmp.ge.f32.partialorder %v3972_v51, 0.0  ;;  %v4004_v16 = vmul.f32 0.01, %v3972_v51 }
 0x471   :  { %v3782_v42 = vpop.f32.mrf.mxu2 }
 0x472   :  { %v3930_v3 = vpop.f32.mrf.mxu3  ;;  %v4020_v47 = vsel %vm3988_vm7, %v3972_v51, %v4004_v16  ;;  %v3812_v54 = vadd.f32 %v3782_v42, %v3654_v36  ;;  %v4134_v7 = vld [vmem:[#allocation5 + $0x31] sm:$0xff] }
 0x473   :  { %4036 = vst [vmem:[#allocation5 + $0x40] sm:$0xff] %v4020_v47  ;;  %4178 = vmatmul.f32.gmra.mxu0 %v4134_v7  ;;  %4418 = vmatmul.f32.gmra.mxu3 %v4134_v7 }
 0x474   :  { %v3957_v9 = vadd.f32 %v3927_v6, %v3812_v54  ;;  %4249 = vmatmul.f32.gmra.mxu1 %v4020_v47  ;;  %4327 = vmatmul.f32.gmra.mxu2 %v4020_v47  ;;  %v3672_v6 = vadd.f32 %v7395_v18, %v7404_v48  ;;  %v5149_v47 = vld [vmem:[#allocation5 + $0x80] sm:$0xff] }
 0x476   :  { %v3973_v11 = vadd.f32 %v7417_v46, %v3957_v9 }
 0x478   :  { %vm3989_vm8 = vcmp.ge.f32.partialorder %v3973_v11, 0.0  ;;  %v4005_v44 = vmul.f32 0.01, %v3973_v11 }
 0x479   :  { %v3785_v41 = vpop.f32.mrf.mxu2 }
 0x47a   :  { %v4021_v39 = vsel %vm3989_vm8, %v3973_v11, %v4005_v44  ;;  %v3813_v22 = vadd.f32 %v3785_v41, %v3657_v61  ;;  %v4135_v53 = vld [vmem:[#allocation5 + $0x39] sm:$0xff]  ;;  %v3933_v59 = vpop.f32.mrf.mxu3  ;;  %v4386_v11 = vld [vmem:[#allocation5 + $0x81] sm:$0xff] }
 0x47b   :  { %4037 = vst [vmem:[#allocation5 + $0x48] sm:$0xff] %v4021_v39  ;;  %4181 = vmatmul.f32.gmra.mxu0 %v4135_v53  ;;  %4421 = vmatmul.f32.gmra.mxu3 %v4135_v53 }
 0x47c   :  { %v3958_v10 = vadd.f32 %v3930_v3, %v3813_v22  ;;  %4252 = vmatmul.f32.gmra.mxu1 %v4021_v39  ;;  %4330 = vmatmul.f32.gmra.mxu2 %v4021_v39 }
 0x47e   :  { %v3974_v13 = vadd.f32 %v7417_v46, %v3958_v10 }
 0x480   :  { %vm3990_vm9 = vcmp.ge.f32.partialorder %v3974_v13, 0.0  ;;  %v4006_v56 = vmul.f32 0.01, %v3974_v13 }
 0x481   :  { %v3788_v31 = vpop.f32.mrf.mxu2 }
 0x482   :  { %v4022_v12 = vsel %vm3990_vm9, %v3974_v13, %v4006_v56  ;;  %v3814_v57 = vadd.f32 %v3788_v31, %v3660_v24  ;;  %v4136_v43 = vld [vmem:[#allocation5 + $0x41] sm:$0xff]  ;;  %v3936_v49 = vpop.f32.mrf.mxu3 }
 0x483   :  { %4038 = vst [vmem:[#allocation5 + $0x50] sm:$0xff] %v4022_v12  ;;  %4184 = vmatmul.f32.gmra.mxu0 %v4136_v43  ;;  %4424 = vmatmul.f32.gmra.mxu3 %v4136_v43 }
 0x484   :  { %v3959_v2 = vadd.f32 %v3933_v59, %v3814_v57  ;;  %4255 = vmatmul.f32.gmra.mxu1 %v4022_v12  ;;  %4333 = vmatmul.f32.gmra.mxu2 %v4022_v12  ;;  %v7471_v59 = vld [vmem:[%s7625_s8] ss:$0 sm:$0xff] }
 0x486   :  { %v3975_v63 = vadd.f32 %v7417_v46, %v3959_v2  ;;  %v7477_v2 = vld [vmem:[%s7626_s9 + $0x40] sm:$0xff] }
 0x488   :  { %vm3991_vm10 = vcmp.ge.f32.partialorder %v3975_v63, 0.0  ;;  %v4007_v8 = vmul.f32 0.01, %v3975_v63 }
 0x489   :  { %v3791_v62 = vpop.f32.mrf.mxu2 }
 0x48a   :  { %v4023_v40 = vsel %vm3991_vm10, %v3975_v63, %v4007_v8  ;;  %v3815_v33 = vadd.f32 %v3791_v62, %v3663_v0  ;;  %v4137_v30 = vld [vmem:[#allocation5 + $0x49] sm:$0xff]  ;;  %v3939_v1 = vpop.f32.mrf.mxu3 }
 0x48b   :  { %4039 = vst [vmem:[#allocation5 + $0x58] sm:$0xff] %v4023_v40  ;;  %4187 = vmatmul.f32.gmra.mxu0 %v4137_v30  ;;  %4427 = vmatmul.f32.gmra.mxu3 %v4137_v30 }
 0x48c   :  { %v3960_v32 = vadd.f32 %v3936_v49, %v3815_v33  ;;  %4258 = vmatmul.f32.gmra.mxu1 %v4023_v40  ;;  %4336 = vmatmul.f32.gmra.mxu2 %v4023_v40  ;;  %v7482_v49 = vld [vmem:[%s7626_s9] sm:$0xff] }
 0x48e   :  { %v3976_v35 = vadd.f32 %v7417_v46, %v3960_v32 }
 0x490   :  { %vm3992_vm11 = vcmp.ge.f32.partialorder %v3976_v35, 0.0  ;;  %v4008_v14 = vmul.f32 0.01, %v3976_v35 }
 0x491   :  { %v3794_v25 = vpop.f32.mrf.mxu2 }
 0x492   :  { %v4024_v15 = vsel %vm3992_vm11, %v3976_v35, %v4008_v14  ;;  %v3816_v52 = vadd.f32 %v3794_v25, %v3666_v55  ;;  %v4138_v17 = vld [vmem:[#allocation5 + $0x51] sm:$0xff]  ;;  %v3942_v28 = vpop.f32.mrf.mxu3 }
 0x493   :  { %4040 = vst [vmem:[#allocation5 + $0x60] sm:$0xff] %v4024_v15  ;;  %4190 = vmatmul.f32.gmra.mxu0 %v4138_v17  ;;  %4430 = vmatmul.f32.gmra.mxu3 %v4138_v17  ;;  %v7490_v14 = vld [vmem:[%s7626_s9 + $0x48] sm:$0xff] }
 0x494   :  { %v3961_v38 = vadd.f32 %v3939_v1, %v3816_v52  ;;  %4261 = vmatmul.f32.gmra.mxu1 %v4024_v15  ;;  %4339 = vmatmul.f32.gmra.mxu2 %v4024_v15  ;;  %v7495_v25 = vld [vmem:[%s7626_s9 + $0x8] sm:$0xff] }
 0x496   :  { %v3977_v21 = vadd.f32 %v7417_v46, %v3961_v38 }
 0x498   :  { %vm3993_vm12 = vcmp.ge.f32.partialorder %v3977_v21, 0.0  ;;  %v4009_v45 = vmul.f32 0.01, %v3977_v21 }
 0x499   :  { %v3797_v27 = vpop.f32.mrf.mxu2 }
 0x49a   :  { %v4025_v50 = vsel %vm3993_vm12, %v3977_v21, %v4009_v45  ;;  %v3817_v34 = vadd.f32 %v3797_v27, %v3669_v5  ;;  %v4139_v58 = vld [vmem:[#allocation5 + $0x59] sm:$0xff]  ;;  %v3945_v23 = vpop.f32.mrf.mxu3 }
 0x49b   :  { %4041 = vst [vmem:[#allocation5 + $0x68] sm:$0xff] %v4025_v50  ;;  %4193 = vmatmul.f32.gmra.mxu0 %v4139_v58  ;;  %4433 = vmatmul.f32.gmra.mxu3 %v4139_v58 }
 0x49c   :  { %v3962_v26 = vadd.f32 %v3942_v28, %v3817_v34  ;;  %4264 = vmatmul.f32.gmra.mxu1 %v4025_v50  ;;  %4342 = vmatmul.f32.gmra.mxu2 %v4025_v50 }
 0x49e   :  { %v3978_v60 = vadd.f32 %v7417_v46, %v3962_v26  ;;  %v7503_v26 = vld [vmem:[%s7626_s9 + $0x50] sm:$0xff] }
 0x4a0   :  { %vm3994_vm13 = vcmp.ge.f32.partialorder %v3978_v60, 0.0  ;;  %v4010_v29 = vmul.f32 0.01, %v3978_v60 }
 0x4a1   :  { %v3800_v20 = vpop.f32.mrf.mxu2 }
 0x4a2   :  { %v4026_v4 = vsel %vm3994_vm13, %v3978_v60, %v4010_v29  ;;  %v3818_v37 = vadd.f32 %v3800_v20, %v3672_v6  ;;  %v4140_v19 = vld [vmem:[#allocation5 + $0x61] sm:$0xff] }
 0x4a3   :  { %4042 = vst [vmem:[#allocation5 + $0x70] sm:$0xff] %v4026_v4  ;;  %4196 = vmatmul.f32.gmra.mxu0 %v4140_v19  ;;  %4436 = vmatmul.f32.gmra.mxu3 %v4140_v19  ;;  %v7508_v60 = vld [vmem:[%s7626_s9 + $0x10] sm:$0xff] }
 0x4a4   :  { %v3963_v51 = vadd.f32 %v3945_v23, %v3818_v37  ;;  %4267 = vmatmul.f32.gmra.mxu1 %v4026_v4  ;;  %4345 = vmatmul.f32.gmra.mxu2 %v4026_v4 }
 0x4a6   :  { %v3979_v36 = vadd.f32 %v7417_v46, %v3963_v51 }
 0x4a8   :  { %vm3995_vm1 = vcmp.ge.f32.partialorder %v3979_v36, 0.0  ;;  %v4011_v16 = vmul.f32 0.01, %v3979_v36 }
 0x4aa   :  { %v4027_v42 = vsel %vm3995_vm1, %v3979_v36, %v4011_v16  ;;  %v4141_v3 = vld [vmem:[#allocation5 + $0x69] sm:$0xff] }
 0x4ab   :  { %4043 = vst [vmem:[#allocation5 + $0x78] sm:$0xff] %v4027_v42  ;;  %4199 = vmatmul.f32.gmra.mxu0 %v4141_v3  ;;  %4439 = vmatmul.f32.gmra.mxu3 %v4141_v3 }
 0x4ac   :  { %4270 = vmatmul.f32.gmra.mxu1 %v4027_v42  ;;  %4348 = vmatmul.f32.gmra.mxu2 %v4027_v42 }
 0x4b0   :  { %v4226_v18 = vpop.f32.mrf.mxu1 }
 0x4b2   :  { %v4142_v48 = vld [vmem:[#allocation5 + $0x71] sm:$0xff]  ;;  %v4143_v7 = vld [vmem:[#allocation5 + $0x79] sm:$0xff] }
 0x4b3   :  { %4202 = vmatmul.f32.gmra.mxu0 %v4142_v48  ;;  %4442 = vmatmul.f32.gmra.mxu3 %v4142_v48  ;;  %v7521_v48 = vld [vmem:[%s7626_s9 + $0x18] sm:$0xff] }
 0x4b4   :  { %4351 = vmatmul.f32.gmra.mxu2 %v5149_v47 }
 0x4b8   :  { %v4229_v54 = vpop.f32.mrf.mxu1 }
 0x4bb   :  { %4205 = vmatmul.f32.gmra.mxu0 %v4143_v7  ;;  %4445 = vmatmul.f32.gmra.mxu3 %v4143_v7 }
 0x4be   :  { %v4307_v46 = vpop.f32.mrf.mxu2 }
 0x4c0   :  { %v4161_v9 = vpop.f32.mrf.mxu0  ;;  %v4232_v61 = vpop.f32.mrf.mxu1 }
 0x4c1   :  { %v4227_v39 = vadd.f32 %v4226_v18, %v4161_v9  ;;  %v7516_v18 = vld [vmem:[%s7626_s9 + $0x58] sm:$0xff] }
 0x4c3   :  { %4448 = vmatmul.f32.gmra.mxu3 %v4386_v11  ;;  %v4355_v53 = vadd.f32 %v4307_v46, %v4227_v39 }
 0x4c7   :  { %v4310_v44 = vpop.f32.mrf.mxu2 }
 0x4c8   :  { %v4164_v41 = vpop.f32.mrf.mxu0 }
 0x4c9   :  { %v4235_v22 = vpop.f32.mrf.mxu1  ;;  %v4230_v31 = vadd.f32 %v4229_v54, %v4164_v41 }
 0x4cb   :  { %v4356_v63 = vadd.f32 %v4310_v44, %v4230_v31 }
 0x4ce   :  { %v4404_v10 = vpop.f32.mrf.mxu3 }
 0x4cf   :  { %v4452_v13 = vadd.f32 %v4404_v10, %v4355_v53  ;;  %v4313_v24 = vpop.f32.mrf.mxu2  ;;  %v7529_v10 = vld [vmem:[%s7626_s9 + $0x60] sm:$0xff] }
 0x4d0   :  { %v4167_v56 = vpop.f32.mrf.mxu0 }
 0x4d1   :  { %v4468_v12 = vadd.f32 %v7471_v59, %v4452_v13  ;;  %v4238_v57 = vpop.f32.mrf.mxu1  ;;  %v4233_v35 = vadd.f32 %v4232_v61, %v4167_v56  ;;  %v7534_v13 = vld [vmem:[%s7626_s9 + $0x20] sm:$0xff] }
 0x4d3   :  { %vm4484_vm2 = vcmp.ge.f32.partialorder %v4468_v12, 0.0  ;;  %v4500_v43 = vmul.f32 0.01, %v4468_v12  ;;  %v4357_v52 = vadd.f32 %v4313_v24, %v4233_v35 }
 0x4d5   :  { %v4516_v0 = vsel %vm4484_vm2, %v4468_v12, %v4500_v43  ;;  %vm4611_vm2 = vcmask 0  }
 0x4d6   :  { %v4407_v8 = vpop.f32.mrf.mxu3  ;;  %v4613_v62 = vmul.f32 %v7477_v2, %v4516_v0  ;;  %v4573_v40 = vmul.f32 %v7482_v49, %v4516_v0 }
 0x4d7   :  { %v4453_v33 = vadd.f32 %v4407_v8, %v4356_v63  ;;  %v4316_v30 = vpop.f32.mrf.mxu2 }
 0x4d8   :  { %v4170_v32 = vpop.f32.mrf.mxu0  ;;  %4621 = vadd.xlane.f32.xlu2 %v4613_v62  ;;  %4581 = vadd.xlane.f32.xlu0 %v4573_v40 }
 0x4d9   :  { %v4469_v1 = vadd.f32 %v7471_v59, %v4453_v33  ;;  %v4241_v15 = vpop.f32.mrf.mxu1  ;;  %v4236_v50 = vadd.f32 %v4235_v22, %v4170_v32  ;;  %v7547_v32 = vld [vmem:[%s7626_s9 + $0x28] sm:$0xff] }
 0x4db   :  { %vm4485_vm14 = vcmp.ge.f32.partialorder %v4469_v1, 0.0  ;;  %v4501_v55 = vmul.f32 0.01, %v4469_v1  ;;  %v4358_v6 = vadd.f32 %v4316_v30, %v4236_v50  ;;  %v7542_v30 = vld [vmem:[%s7626_s9 + $0x68] sm:$0xff] }
 0x4dd   :  { %v4517_v17 = vsel %vm4485_vm14, %v4469_v1, %v4501_v55  ;;  %vm4651_vm14 = vcmask 8200  }
 0x4de   :  { %v4410_v38 = vpop.f32.mrf.mxu3  ;;  %v4614_v21 = vmul.f32 %v7490_v14, %v4517_v17  ;;  %v4574_v5 = vmul.f32 %v7495_v25, %v4517_v17 }
 0x4df   :  { %v4454_v45 = vadd.f32 %v4410_v38, %v4357_v52  ;;  %v4319_v28 = vpop.f32.mrf.mxu2 }
 0x4e0   :  { %v4173_v27 = vpop.f32.mrf.mxu0  ;;  %4623 = vadd.xlane.f32.xlu2 %v4614_v21  ;;  %4583 = vadd.xlane.f32.xlu0 %v4574_v5 }
 0x4e1   :  { %v4470_v34 = vadd.f32 %v7471_v59, %v4454_v45  ;;  %v4244_v23 = vpop.f32.mrf.mxu1  ;;  %v4239_v16 = vadd.f32 %v4238_v57, %v4173_v27  ;;  %v7555_v27 = vld [vmem:[%s7626_s9 + $0x30] sm:$0xff] }
 0x4e3   :  { %vm4486_vm15 = vcmp.ge.f32.partialorder %v4470_v34, 0.0  ;;  %v4502_v58 = vmul.f32 0.01, %v4470_v34  ;;  %v4359_v47 = vadd.f32 %v4319_v28, %v4239_v16 }
 0x4e5   :  { %v4518_v29 = vsel %vm4486_vm15, %v4470_v34, %v4502_v58 }
 0x4e6   :  { %v4413_v20 = vpop.f32.mrf.mxu3  ;;  %v4615_v4 = vmul.f32 %v7503_v26, %v4518_v29  ;;  %v4575_v37 = vmul.f32 %v7508_v60, %v4518_v29 }
 0x4e7   :  { %v4455_v19 = vadd.f32 %v4413_v20, %v4358_v6  ;;  %v4322_v51 = vpop.f32.mrf.mxu2 }
 0x4e8   :  { %v4176_v36 = vpop.f32.mrf.mxu0  ;;  %4625 = vadd.xlane.f32.xlu0 %v4615_v4  ;;  %4585 = vadd.xlane.f32.xlu1 %v4575_v37 }
 0x4e9   :  { %v4471_v42 = vadd.f32 %v7471_v59, %v4455_v19  ;;  %v4247_v41 = vpop.f32.mrf.mxu1  ;;  %v4242_v39 = vadd.f32 %v4241_v15, %v4176_v36  ;;  %v7562_v36 = vld [vmem:[%s7626_s9 + $0x38] sm:$0xff] }
 0x4eb   :  { %vm4487_vm3 = vcmp.ge.f32.partialorder %v4471_v42, 0.0  ;;  %v4503_v3 = vmul.f32 0.01, %v4471_v42  ;;  %v4360_v24 = vadd.f32 %v4322_v51, %v4242_v39 }
 0x4ed   :  { %v4519_v54 = vsel %vm4487_vm3, %v4471_v42, %v4503_v3 }
 0x4ee   :  { %v4416_v7 = vpop.f32.mrf.mxu3  ;;  %v4616_v46 = vmul.f32 %v7516_v18, %v4519_v54  ;;  %v4576_v9 = vmul.f32 %v7521_v48, %v4519_v54 }
 0x4ef   :  { %v4456_v11 = vadd.f32 %v4416_v7, %v4359_v47  ;;  %v4325_v61 = vpop.f32.mrf.mxu2 }
 0x4f0   :  { %v4179_v44 = vpop.f32.mrf.mxu0  ;;  %4627 = vadd.xlane.f32.xlu0 %v4616_v46  ;;  %4587 = vadd.xlane.f32.xlu1 %v4576_v9 }
 0x4f1   :  { %v4472_v22 = vadd.f32 %v7471_v59, %v4456_v11  ;;  %v4245_v8 = vadd.f32 %v4244_v23, %v4179_v44  ;;  %v4250_v40 = vpop.f32.mrf.mxu1 }
 0x4f3   :  { %vm4488_vm4 = vcmp.ge.f32.partialorder %v4472_v22, 0.0  ;;  %v4504_v53 = vmul.f32 0.01, %v4472_v22  ;;  %v4361_v35 = vadd.f32 %v4325_v61, %v4245_v8 }
 0x4f5   :  { %v4520_v56 = vsel %vm4488_vm4, %v4472_v22, %v4504_v53 }
 0x4f6   :  { %v4419_v31 = vpop.f32.mrf.mxu3  ;;  %v4617_v12 = vmul.f32 %v7529_v10, %v4520_v56  ;;  %v4577_v57 = vmul.f32 %v7534_v13, %v4520_v56 }
 0x4f7   :  { %v4457_v43 = vadd.f32 %v4419_v31, %v4360_v24  ;;  %v4328_v63 = vpop.f32.mrf.mxu2 }
 0x4f8   :  { %v4182_v0 = vpop.f32.mrf.mxu0  ;;  %4629 = vadd.xlane.f32.xlu0 %v4617_v12  ;;  %4589 = vadd.xlane.f32.xlu2 %v4577_v57 }
 0x4f9   :  { %v4473_v62 = vadd.f32 %v7471_v59, %v4457_v43  ;;  %v4248_v5 = vadd.f32 %v4247_v41, %v4182_v0  ;;  %v4253_v50 = vpop.f32.mrf.mxu1 }
 0x4fb   :  { %vm4489_vm5 = vcmp.ge.f32.partialorder %v4473_v62, 0.0  ;;  %v4505_v33 = vmul.f32 0.01, %v4473_v62  ;;  %v4362_v34 = vadd.f32 %v4328_v63, %v4248_v5 }
 0x4fd   :  { %v4521_v1 = vsel %vm4489_vm5, %v4473_v62, %v4505_v33 }
 0x4fe   :  { %v4422_v55 = vpop.f32.mrf.mxu3  ;;  %v4618_v15 = vmul.f32 %v7542_v30, %v4521_v1  ;;  %v4578_v52 = vmul.f32 %v7547_v32, %v4521_v1 }
 0x4ff   :  { %v4458_v17 = vadd.f32 %v4422_v55, %v4361_v35  ;;  %v4331_v38 = vpop.f32.mrf.mxu2 }
 0x500   :  { %v4185_v21 = vpop.f32.mrf.mxu0  ;;  %4631 = vadd.xlane.f32.xlu0 %v4618_v15  ;;  %4591 = vadd.xlane.f32.xlu2 %v4578_v52  ;;  %v7574_v52 = vld [vmem:[%s7626_s9 + $0x70] sm:$0xff] }
 0x501   :  { %v4474_v45 = vadd.f32 %v7471_v59, %v4458_v17  ;;  %v4251_v37 = vadd.f32 %v4250_v40, %v4185_v21  ;;  %v4256_v3 = vpop.f32.mrf.mxu1 }
 0x503   :  { %vm4490_vm0 = vcmp.ge.f32.partialorder %v4474_v45, 0.0  ;;  %v4506_v28 = vmul.f32 0.01, %v4474_v45  ;;  %v4363_v16 = vadd.f32 %v4331_v38, %v4251_v37 }
 0x505   :  { %v4522_v58 = vsel %vm4490_vm0, %v4474_v45, %v4506_v28 }
 0x506   :  { %v4425_v6 = vpop.f32.mrf.mxu3  ;;  %v4579_v29 = vmul.f32 %v7555_v27, %v4522_v58 }
 0x507   :  { %v4459_v20 = vadd.f32 %v4425_v6, %v4362_v34  ;;  %v4334_v4 = vpop.f32.mrf.mxu2 }
 0x508   :  { %v4188_v23 = vpop.f32.mrf.mxu0  ;;  %4593 = vadd.xlane.f32.xlu0 %v4579_v29 }
 0x509   :  { %v4475_v19 = vadd.f32 %v7471_v59, %v4459_v20  ;;  %v4254_v9 = vadd.f32 %v4253_v50, %v4188_v23  ;;  %v4259_v56 = vpop.f32.mrf.mxu1  ;;  %v7583_v20 = vld [vmem:[%s7626_s9 + $0x78] sm:$0xff] }
 0x50b   :  { %vm4491_vm6 = vcmp.ge.f32.partialorder %v4475_v19, 0.0  ;;  %v4507_v51 = vmul.f32 0.01, %v4475_v19  ;;  %v4364_v41 = vadd.f32 %v4334_v4, %v4254_v9 }
 0x50d   :  { %v4523_v42 = vsel %vm4491_vm6, %v4475_v19, %v4507_v51 }
 0x50e   :  { %v4428_v47 = vpop.f32.mrf.mxu3  ;;  %v4580_v54 = vmul.f32 %v7562_v36, %v4523_v42 }
 0x50f   :  { %v4460_v7 = vadd.f32 %v4428_v47, %v4363_v16  ;;  %v4337_v61 = vpop.f32.mrf.mxu2 }
 0x510   :  { %v4191_v46 = vpop.f32.mrf.mxu0  ;;  %4595 = vadd.xlane.f32.xlu1 %v4580_v54 }
 0x511   :  { %v4476_v11 = vadd.f32 %v7471_v59, %v4460_v7  ;;  %v4257_v12 = vadd.f32 %v4256_v3, %v4191_v46  ;;  %v4262_v15 = vpop.f32.mrf.mxu1 }
 0x513   :  { %vm4492_vm7 = vcmp.ge.f32.partialorder %v4476_v11, 0.0  ;;  %v4508_v44 = vmul.f32 0.01, %v4476_v11  ;;  %v4365_v0 = vadd.f32 %v4337_v61, %v4257_v12 }
 0x515   :  { %v4524_v39 = vsel %vm4492_vm7, %v4476_v11, %v4508_v44 }
 0x516   :  { %v4431_v22 = vpop.f32.mrf.mxu3  ;;  %v4661_v53 = vmul.f32 %v7482_v49, %v4524_v39  ;;  %v4700_v40 = vmul.f32 %v7477_v2, %v4524_v39 }
 0x517   :  { %v4461_v24 = vadd.f32 %v4431_v22, %v4364_v41  ;;  %v4340_v63 = vpop.f32.mrf.mxu2 }
 0x518   :  { %v4194_v31 = vpop.f32.mrf.mxu0  ;;  %4669 = vadd.xlane.f32.xlu0 %v4661_v53 }
 0x519   :  { %v4477_v57 = vadd.f32 %v7471_v59, %v4461_v24  ;;  %v4260_v49 = vadd.f32 %v4259_v56, %v4194_v31 }
 0x51b   :  { %vm4493_vm8 = vcmp.ge.f32.partialorder %v4477_v57, 0.0  ;;  %v4509_v43 = vmul.f32 0.01, %v4477_v57  ;;  %v4366_v38 = vadd.f32 %v4340_v63, %v4260_v49 }
 0x51d   :  { %v4525_v8 = vsel %vm4493_vm8, %v4477_v57, %v4509_v43 }
 0x51e   :  { %v4434_v62 = vpop.f32.mrf.mxu3  ;;  %v4662_v33 = vmul.f32 %v7495_v25, %v4525_v8  ;;  %v4619_v25 = vmul.f32 %v7574_v52, %v4522_v58  ;;  %v4701_v45 = vmul.f32 %v7490_v14, %v4525_v8  ;;  %v4265_v58 = vpop.f32.mrf.mxu1 }
 0x51f   :  { %v4462_v35 = vadd.f32 %v4434_v62, %v4365_v0  ;;  %v4343_v2 = vpop.f32.mrf.mxu2 }
 0x520   :  { %v4197_v1 = vpop.f32.mrf.mxu0  ;;  %4708 = vadd.xlane.f32.xlu0 %v4700_v40  ;;  %4671 = vadd.xlane.f32.xlu1 %v4662_v33 }
 0x521   :  { %v4478_v55 = vadd.f32 %v7471_v59, %v4462_v35  ;;  %v4263_v34 = vadd.f32 %v4262_v15, %v4197_v1 }
 0x523   :  { %vm4494_vm9 = vcmp.ge.f32.partialorder %v4478_v55, 0.0  ;;  %v4510_v17 = vmul.f32 0.01, %v4478_v55  ;;  %v4367_v4 = vadd.f32 %v4343_v2, %v4263_v34 }
 0x525   :  { %v4526_v21 = vsel %vm4494_vm9, %v4478_v55, %v4510_v17 }
 0x526   :  { %v4437_v5 = vpop.f32.mrf.mxu3  ;;  %v4663_v28 = vmul.f32 %v7508_v60, %v4526_v21  ;;  %v4620_v60 = vmul.f32 %v7583_v20, %v4523_v42  ;;  %v4702_v19 = vmul.f32 %v7503_v26, %v4526_v21  ;;  %v4268_v61 = vpop.f32.mrf.mxu1 }
 0x527   :  { %v4463_v50 = vadd.f32 %v4437_v5, %v4366_v38  ;;  %v4346_v3 = vpop.f32.mrf.mxu2 }
 0x528   :  { %4633 = vadd.xlane.f32.xlu0 %v4619_v25  ;;  %4710 = vadd.xlane.f32.xlu1 %v4701_v45  ;;  %v4200_v29 = vpop.f32.mrf.mxu0 }
 0x529   :  { %v4479_v6 = vadd.f32 %v7471_v59, %v4463_v50  ;;  %4673 = vadd.xlane.f32.xlu2 %v4663_v28  ;;  %v4266_v47 = vadd.f32 %v4265_v58, %v4200_v29 }
 0x52b   :  { %vm4495_vm10 = vcmp.ge.f32.partialorder %v4479_v6, 0.0  ;;  %v4511_v23 = vmul.f32 0.01, %v4479_v6  ;;  %v4368_v9 = vadd.f32 %v4346_v3, %v4266_v47 }
 0x52d   :  { %v4527_v14 = vsel %vm4495_vm10, %v4479_v6, %v4511_v23 }
 0x52e   :  { %v4440_v37 = vpop.f32.mrf.mxu3  ;;  %v4664_v51 = vmul.f32 %v7521_v48, %v4527_v14  ;;  %v4703_v42 = vmul.f32 %v7516_v18, %v4527_v14  ;;  %v4271_v63 = vpop.f32.mrf.mxu1 }
 0x52f   :  { %v4464_v16 = vadd.f32 %v4440_v37, %v4367_v4  ;;  %v4349_v22 = vpop.f32.mrf.mxu2 }
 0x530   :  { %4635 = vadd.xlane.f32.xlu0 %v4620_v60  ;;  %4712 = vadd.xlane.f32.xlu1 %v4702_v19  ;;  %v4203_v46 = vpop.f32.mrf.mxu0 }
 0x531   :  { %v4480_v54 = vadd.f32 %v7471_v59, %v4464_v16  ;;  %4675 = vadd.xlane.f32.xlu2 %v4664_v51  ;;  %v4269_v41 = vadd.f32 %v4268_v61, %v4203_v46 }
 0x533   :  { %vm4496_vm11 = vcmp.ge.f32.partialorder %v4480_v54, 0.0  ;;  %v4512_v7 = vmul.f32 0.01, %v4480_v54  ;;  %v4369_v24 = vadd.f32 %v4349_v22, %v4269_v41 }
 0x535   :  { %v4528_v11 = vsel %vm4496_vm11, %v4480_v54, %v4512_v7  ;;  %v7604_v7 = vld [vmem:[%s7627_s10] sm:$0x1]  ;;  %s5177_s10 = smov [#allocation7]  }
 0x536   :  { %v4443_v44 = vpop.f32.mrf.mxu3  ;;  %v4665_v26 = vmul.f32 %v7534_v13, %v4528_v11  ;;  %v4704_v57 = vmul.f32 %v7529_v10, %v4528_v11  ;;  %s4744_s26 = sshll.u32 %s5177_s10, 4  ;;  %s4745_s26 = int_to_ptr.vmem [resolvable:$true] %s4744_s26 }
 0x537   :  { %v4465_v48 = vadd.f32 %v4443_v44, %v4368_v9  ;;  %v4352_v8 = vpop.f32.mrf.mxu2 }
 0x538   :  { %4714 = vadd.xlane.f32.xlu1 %v4703_v42  ;;  %v4206_v31 = vpop.f32.mrf.mxu0 }
 0x539   :  { %v4481_v39 = vadd.f32 %v7471_v59, %v4465_v48  ;;  %4677 = vadd.xlane.f32.xlu2 %v4665_v26  ;;  %v4272_v13 = vadd.f32 %v4271_v63, %v4206_v31 }
 0x53b   :  { %vm4497_vm12 = vcmp.ge.f32.partialorder %v4481_v39, 0.0  ;;  %v4513_v53 = vmul.f32 0.01, %v4481_v39  ;;  %v4370_v40 = vadd.f32 %v4352_v8, %v4272_v13 }
 0x53d   :  { %v4529_v56 = vsel %vm4497_vm12, %v4481_v39, %v4513_v53 }
 0x53e   :  { %v4446_v12 = vpop.f32.mrf.mxu3  ;;  %v4666_v43 = vmul.f32 %v7547_v32, %v4529_v56  ;;  %v4705_v1 = vmul.f32 %v7542_v30, %v4529_v56 }
 0x53f   :  { %v4466_v18 = vadd.f32 %v4446_v12, %v4369_v24 }
 0x540   :  { %4716 = vadd.xlane.f32.xlu1 %v4704_v57 }
 0x541   :  { %v4482_v0 = vadd.f32 %v7471_v59, %v4466_v18  ;;  %4679 = vadd.xlane.f32.xlu2 %v4666_v43 }
 0x543   :  { %vm4498_vm13 = vcmp.ge.f32.partialorder %v4482_v0, 0.0  ;;  %v4514_v62 = vmul.f32 0.01, %v4482_v0 }
 0x545   :  { %v4530_v33 = vsel %vm4498_vm13, %v4482_v0, %v4514_v62 }
 0x546   :  { %v4449_v35 = vpop.f32.mrf.mxu3  ;;  %v4667_v49 = vmul.f32 %v7555_v27, %v4530_v33  ;;  %v4706_v38 = vmul.f32 %v7574_v52, %v4530_v33 }
 0x547   :  { %v4467_v10 = vadd.f32 %v4449_v35, %v4370_v40 }
 0x548   :  { %4718 = vadd.xlane.f32.xlu1 %v4705_v1 }
 0x549   :  { %v4483_v32 = vadd.f32 %v7471_v59, %v4467_v10  ;;  %4681 = vadd.xlane.f32.xlu2 %v4667_v49 }
 0x54b   :  { %v4582_v55 = vpop.xlane.xlu0 %4581  ;;  %vm4499_vm1 = vcmp.ge.f32.partialorder %v4483_v32, 0.0  ;;  %v4515_v15 = vmul.f32 0.01, %v4483_v32  ;;  %v4622_v5 = vpop.xlane.xlu2 %4621 }
 0x54d   :  { %v4531_v17 = vsel %vm4499_vm1, %v4483_v32, %v4515_v15 }
 0x54e   :  { %v4668_v21 = vmul.f32 %v7562_v36, %v4531_v17  ;;  %v4707_v30 = vmul.f32 %v7583_v20, %v4531_v17 }
 0x550   :  { %4720 = vadd.xlane.f32.xlu1 %v4706_v38 }
 0x551   :  { %4683 = vadd.xlane.f32.xlu2 %v4668_v21 }
 0x553   :  { %v4584_v2 = vpop.xlane.xlu0 %4583  ;;  %v4624_v45 = vpop.xlane.xlu2 %4623 }
 0x554   :  { %v4597_v6 = vadd.f32 %v4584_v2, %v4582_v55  ;;  %v4637_v44 = vadd.f32 %v4624_v45, %v4622_v5 }
 0x558   :  { %4722 = vadd.xlane.f32.xlu1 %v4707_v30 }
 0x55b   :  { %v4626_v27 = vpop.xlane.xlu0 %4625  ;;  %v4586_v28 = vpop.xlane.xlu1 %4585 }
 0x55c   :  { %v4598_v23 = vadd.f32 %v4597_v6, %v4586_v28  ;;  %v4638_v42 = vadd.f32 %v4637_v44, %v4626_v27 }
 0x563   :  { %v4628_v25 = vpop.xlane.xlu0 %4627  ;;  %v4588_v29 = vpop.xlane.xlu1 %4587 }
 0x564   :  { %v4599_v52 = vadd.f32 %v4598_v23, %v4588_v29  ;;  %v4639_v41 = vadd.f32 %v4638_v42, %v4628_v25 }
 0x56b   :  { %v4630_v59 = vpop.xlane.xlu0 %4629  ;;  %v4590_v50 = vpop.xlane.xlu2 %4589 }
 0x56c   :  { %v4600_v36 = vadd.f32 %v4599_v52, %v4590_v50  ;;  %v4640_v22 = vadd.f32 %v4639_v41, %v4630_v59 }
 0x573   :  { %v4632_v34 = vpop.xlane.xlu0 %4631  ;;  %v4592_v58 = vpop.xlane.xlu2 %4591 }
 0x574   :  { %v4601_v14 = vadd.f32 %v4600_v36, %v4592_v58  ;;  %v4641_v53 = vadd.f32 %v4640_v22, %v4632_v34 }
 0x57b   :  { %v4594_v4 = vpop.xlane.xlu0 %4593 }
 0x57c   :  { %v4602_v37 = vadd.f32 %v4601_v14, %v4594_v4 }
 0x583   :  { %v4596_v60 = vpop.xlane.xlu1 %4595 }
 0x584   :  { %v4603_v20 = vadd.f32 %v4602_v37, %v4596_v60 }
 0x586   :  { %v4604_v19 = vrot.slane %v4603_v20, 4 }
 0x588   :  { %v4605_v51 = vadd.f32 %v4604_v19, %v4603_v20 }
 0x58a   :  { %v4606_v16 = vrot.slane %v4605_v51, 2 }
 0x58b   :  { %v4670_v3 = vpop.xlane.xlu0 %4669 }
 0x58c   :  { %v4607_v47 = vadd.f32 %v4606_v16, %v4605_v51 }
 0x58e   :  { %v4608_v54 = vrot.slane %v4607_v47, 1 }
 0x590   :  { %v4609_v46 = vadd.f32 %v4608_v54, %v4607_v47 }
 0x592   :  { %v4610_v9 = vadd.f32 %v4609_v46, %v7604_v7 }
 0x593   :  { %v4709_v11 = vpop.xlane.xlu0 %4708  ;;  %v4672_v61 = vpop.xlane.xlu1 %4671 }
 0x594   :  { %4612 = vst.msk [vmem:[#allocation7] sm:$0x1] %vm4611_vm2, %v4610_v9  ;;  %v4685_v49 = vadd.f32 %v4672_v61, %v4670_v3 }
 0x59b   :  { %v4634_v26 = vpop.xlane.xlu0 %4633  ;;  %v4711_v48 = vpop.xlane.xlu1 %4710 }
 0x59c   :  { %v4674_v39 = vpop.xlane.xlu2 %4673  ;;  %v4642_v24 = vadd.f32 %v4641_v53, %v4634_v26  ;;  %v4724_v38 = vadd.f32 %v4711_v48, %v4709_v11 }
 0x59d   :  { %v4686_v10 = vadd.f32 %v4685_v49, %v4674_v39 }
 0x5a3   :  { %v4636_v56 = vpop.xlane.xlu0 %4635  ;;  %v4713_v31 = vpop.xlane.xlu1 %4712 }
 0x5a4   :  { %v4643_v12 = vadd.f32 %v4642_v24, %v4636_v56  ;;  %v4676_v57 = vpop.xlane.xlu2 %4675  ;;  %v4725_v2 = vadd.f32 %v4724_v38, %v4713_v31 }
 0x5a5   :  { %v4687_v15 = vadd.f32 %v4686_v10, %v4676_v57 }
 0x5a6   :  { %v4644_v43 = vrot.slane %v4643_v12, 4 }
 0x5a8   :  { %v4645_v18 = vadd.f32 %v4644_v43, %v4643_v12 }
 0x5aa   :  { %v4646_v63 = vrot.slane %v4645_v18, 2 }
 0x5ab   :  { %v4715_v13 = vpop.xlane.xlu1 %4714 }
 0x5ac   :  { %v4647_v0 = vadd.f32 %v4646_v63, %v4645_v18  ;;  %v4678_v8 = vpop.xlane.xlu2 %4677  ;;  %v4726_v5 = vadd.f32 %v4725_v2, %v4715_v13 }
 0x5ad   :  { %v4688_v17 = vadd.f32 %v4687_v15, %v4678_v8 }
 0x5ae   :  { %v4648_v62 = vrot.slane %v4647_v0, 1 }
 0x5b0   :  { %v4649_v40 = vadd.f32 %v4648_v62, %v4647_v0 }
 0x5b2   :  { %v4650_v33 = vadd.f32 %v4649_v40, %v7604_v7 }
 0x5b3   :  { %v4717_v35 = vpop.xlane.xlu1 %4716 }
 0x5b4   :  { %v4680_v1 = vpop.xlane.xlu2 %4679  ;;  %4652 = vst.msk [vmem:[#allocation7] sm:$0x1] %vm4651_vm14, %v4650_v33  ;;  %v4727_v59 = vadd.f32 %v4726_v5, %v4717_v35 }
 0x5b5   :  { %v4689_v21 = vadd.f32 %v4688_v17, %v4680_v1 }
 0x5bb   :  { %v4719_v32 = vpop.xlane.xlu1 %4718 }
 0x5bc   :  { %v4682_v55 = vpop.xlane.xlu2 %4681  ;;  %v4728_v50 = vadd.f32 %v4727_v59, %v4719_v32 }
 0x5bd   :  { %v4690_v30 = vadd.f32 %v4689_v21, %v4682_v55 }
 0x5c3   :  { %v4721_v27 = vpop.xlane.xlu1 %4720 }
 0x5c4   :  { %v4684_v25 = vpop.xlane.xlu2 %4683  ;;  %v4729_v6 = vadd.f32 %v4728_v50, %v4721_v27 }
 0x5c5   :  { %v4691_v45 = vadd.f32 %v4690_v30, %v4684_v25 }
 0x5c7   :  { %v4692_v28 = vrot.slane %v4691_v45, 4 }
 0x5c9   :  { %v4693_v34 = vadd.f32 %v4692_v28, %v4691_v45 }
 0x5cb   :  { %v4694_v29 = vrot.slane %v4693_v34, 2  ;;  %v4723_v23 = vpop.xlane.xlu1 %4722 }
 0x5cc   :  { %v4730_v52 = vadd.f32 %v4729_v6, %v4723_v23 }
 0x5cd   :  { %v4695_v58 = vadd.f32 %v4694_v29, %v4693_v34 }
 0x5ce   :  { %v4731_v36 = vrot.slane %v4730_v52, 4 }
 0x5cf   :  { %v4696_v4 = vrot.slane %v4695_v58, 1 }
 0x5d0   :  { %v4732_v14 = vadd.f32 %v4731_v36, %v4730_v52 }
 0x5d1   :  { %v4697_v37 = vadd.f32 %v4696_v4, %v4695_v58 }
 0x5d2   :  { %v4733_v60 = vrot.slane %v4732_v14, 2 }
 0x5d3   :  { %v4698_v20 = vadd.f32 %v4697_v37, %v7604_v7 }
 0x5d4   :  { %v4734_v19 = vadd.f32 %v4733_v60, %v4732_v14 }
 0x5d5   :  { %4699 = vst.msk [vmem:[#allocation7 + $0x1] sm:$0x1] %vm4611_vm2, %v4698_v20 }
 0x5d6   :  { %v4735_v51 = vrot.slane %v4734_v19, 1 }
 0x5d8   :  { %v4736_v16 = vadd.f32 %v4735_v51, %v4734_v19 }
 0x5da   :  { %v4737_v3 = vadd.f32 %v4736_v16, %v7604_v7 }
 0x5dc   :  { %4738 = vst.msk [vmem:[#allocation7 + $0x1] sm:$0x1] %vm4651_vm14, %v4737_v3 }
 0x5dd   :  { %4749 = dma.vmem_to_hbm [thread:$0]  %s4745_s26, 32, %s4747_s28, [#allocation8]  }
 0x5de   :  { %5174 = dma.done.wait [#allocation8], 32  }
 0x5df   :  { %5175 = vsyncadd [#allocation8], 4294967264 }
 0x5e0   :  { %4754 = vsyncpa [#allocation8], 1 }

</bundles_post_ra>
